<compile_context>
chip_gen: v5e
topology: v5e:2x2
jax: 0.10.0
libtpu: 0.0.40
codegen_flags: <defaults>
</compile_context>

<pallas_src>
import jax
import jax.numpy as jnp
from jax.experimental import pallas as pl
from jax.experimental.pallas import tpu as pltpu

SPLIT = 256       # stand-in for args.split
H1 = 512
H2 = 64
NCLS = 4
OUT_PAD = 128     # fc3 padded to a full 128-lane slab for the MXU / softmax
BN_EPS = 1e-5
NEG_BIG = -1e30   # pad-lane bias: exp(NEG_BIG - max) == 0 exactly


# --------------------------------------------------------------------------- #
# Kernel: one grid step == `group` independent micro-batch forward passes.
# --------------------------------------------------------------------------- #
def logistic_kernel(x_ref,
                    w1_ref, g1_ref, be1_ref,
                    w2_ref, g2_ref, be2_ref,
                    w3_ref, b3_ref,
                    out_ref):
    G, MB, S = x_ref.shape                                   # static block shape
    x2d = x_ref[...].reshape(G * MB, S)                      # bf16, merged rows

    # ---- fc1 (bias cancelled by BN) + BatchNorm(batch stats) + relu --------
    h1 = jnp.dot(x2d, w1_ref[...],
                 preferred_element_type=jnp.float32)         # (G*MB, H1) f32
    h1 = h1.reshape(G, MB, H1)
    m1 = jnp.mean(h1, axis=1, keepdims=True)                 # (G, 1, H1)
    c1 = h1 - m1
    v1 = jnp.mean(c1 * c1, axis=1, keepdims=True)            # biased batch var
    s1 = g1_ref[...] * jax.lax.rsqrt(v1 + BN_EPS)            # (G, 1, H1) row
    h1 = jnp.maximum(c1 * s1 + be1_ref[...], 0.0)            # (G, MB, H1)

    # ---- fc2 (bias cancelled by BN) + BatchNorm + relu ----------------------
    h2 = jnp.dot(h1.astype(jnp.bfloat16).reshape(G * MB, H1), w2_ref[...],
                 preferred_element_type=jnp.float32)         # (G*MB, H2)
    h2 = h2.reshape(G, MB, H2)
    m2 = jnp.mean(h2, axis=1, keepdims=True)
    c2 = h2 - m2
    v2 = jnp.mean(c2 * c2, axis=1, keepdims=True)
    s2 = g2_ref[...] * jax.lax.rsqrt(v2 + BN_EPS)
    h2 = jnp.maximum(c2 * s2 + be2_ref[...], 0.0)            # (G, MB, H2)

    # ---- fc3 (128-lane padded) + log_softmax over the real classes ---------
    logits = jnp.dot(h2.astype(jnp.bfloat16).reshape(G * MB, H2), w3_ref[...],
                     preferred_element_type=jnp.float32)     # (G*MB, OUT_PAD)
    logits = logits.reshape(G, MB, OUT_PAD) + b3_ref[...]    # pad lanes = -1e30
    mx = jnp.max(logits, axis=-1, keepdims=True)
    shifted = logits - mx
    lse = jnp.log(jnp.sum(jnp.exp(shifted), axis=-1, keepdims=True))
    out_ref[...] = (shifted - lse)[..., :NCLS]               # (G, MB, NCLS)


# --------------------------------------------------------------------------- #
# Wrappers
# --------------------------------------------------------------------------- #
def logistic_forward_stacked(x_stack, kparams, *, group=None):
    """x_stack: (NB, MB, SPLIT); each leading slice is one independent module
    forward (BatchNorm stats per micro-batch).  Returns (NB, MB, NCLS) f32."""
    NB, MB, split = x_stack.shape
    assert split == SPLIT
    if group is None:
        group = next(g for g in (4, 2, 1) if NB % g == 0)
    assert NB % group == 0
    steps = NB // group

    (w1t, g1, be1, w2t, g2, be2, w3t_pad, b3_pad) = kparams

    # Cast once in the wrapper: halves activation HBM traffic, numerically
    # identical to the previous in-kernel bf16 truncation.
    x_bf = x_stack.astype(jnp.bfloat16)

    flops = 2 * NB * MB * (SPLIT * H1 + H1 * H2 + H2 * OUT_PAD)
    transcendentals = NB * (MB * OUT_PAD + MB) + NB * (H1 + H2)
    bytes_accessed = int(
        x_bf.size * x_bf.dtype.itemsize
        + NB * MB * NCLS * 4
        + sum(int(p.size) * p.dtype.itemsize for p in kparams))

    out = pl.pallas_call(
        logistic_kernel,
        out_shape=jax.ShapeDtypeStruct((NB, MB, NCLS), jnp.float32),
        grid_spec=pltpu.PrefetchScalarGridSpec(
            num_scalar_prefetch=0,
            grid=(steps,),
            in_specs=[
                # activations: `group` micro-batches per grid step
                pl.BlockSpec((group, MB, SPLIT), lambda i: (i, 0, 0)),
                # weights / BN params: pinned to block (0,0) -> VMEM-resident
                pl.BlockSpec((SPLIT, H1), lambda i: (0, 0)),
                pl.BlockSpec((1, H1), lambda i: (0, 0)),
                pl.BlockSpec((1, H1), lambda i: (0, 0)),
                pl.BlockSpec((H1, H2), lambda i: (0, 0)),
                pl.BlockSpec((1, H2), lambda i: (0, 0)),
                pl.BlockSpec((1, H2), lambda i: (0, 0)),
                pl.BlockSpec((H2, OUT_PAD), lambda i: (0, 0)),
                pl.BlockSpec((1, OUT_PAD), lambda i: (0, 0)),
            ],
            # full-extent last dim (NCLS) -> no padded writeback, no XLA slice
            out_specs=pl.BlockSpec((group, MB, NCLS), lambda i: (i, 0, 0)),
        ),
        compiler_params=pltpu.CompilerParams(
            dimension_semantics=("parallel",),
        ),
        cost_estimate=pl.CostEstimate(
            flops=flops,
            transcendentals=transcendentals,
            bytes_accessed=bytes_accessed,
        ),
    )(x_bf, w1t, g1, be1, w2t, g2, be2, w3t_pad, b3_pad)

    return out


def logistic_forward(x, kparams):
    """x: (B, SPLIT) -- one module forward over the whole 2-D batch."""
    return logistic_forward_stacked(x[None], kparams, group=1)[0]


# --------------------------------------------------------------------------- #
# Parameters
# --------------------------------------------------------------------------- #
def init_params(key):
    """PyTorch-faithful synthetic parameters (f32, Linear default init)."""
    ks = jax.random.split(key, 10)

    def linear(kw, kb, fan_in, fan_out):
        bound = 1.0 / jnp.sqrt(fan_in)
        wt = jax.random.uniform(kw, (fan_in, fan_out), jnp.float32, -bound, bound)
        b = jax.random.uniform(kb, (1, fan_out), jnp.float32, -bound, bound)
        return wt, b

    w1t, b1 = linear(ks[0], ks[1], SPLIT, H1)
    w2t, b2 = linear(ks[2], ks[3], H1, H2)
    w3t, b3 = linear(ks[4], ks[5], H2, NCLS)

    g1 = 1.0 + 0.1 * jax.random.normal(ks[6], (1, H1), jnp.float32)
    be1 = 0.1 * jax.random.normal(ks[7], (1, H1), jnp.float32)
    g2 = 1.0 + 0.1 * jax.random.normal(ks[8], (1, H2), jnp.float32)
    be2 = 0.1 * jax.random.normal(ks[9], (1, H2), jnp.float32)

    return (w1t, b1, g1, be1, w2t, b2, g2, be2, w3t, b3)


def pack_kernel_params(params):
    """Kernel-side params: bf16 matmul weights, fc1/fc2 biases dropped
    (exactly cancelled by BN mean subtraction), fc3 padded to 128 lanes."""
    (w1t, b1, g1, be1, w2t, b2, g2, be2, w3t, b3) = params
    del b1, b2  # cancelled by BatchNorm mean subtraction
    w3t_pad = jnp.zeros((H2, OUT_PAD), jnp.bfloat16).at[:, :NCLS].set(
        w3t.astype(jnp.bfloat16))
    b3_pad = jnp.full((1, OUT_PAD), NEG_BIG, jnp.float32).at[:, :NCLS].set(b3)
    return (w1t.astype(jnp.bfloat16), g1, be1,
            w2t.astype(jnp.bfloat16), g2, be2,
            w3t_pad, b3_pad)


# --------------------------------------------------------------------------- #
# Pure-JAX reference (faithful to the module, incl. fc1/fc2 biases; matmuls
# use the same bf16-input / f32-accumulate arithmetic as the kernel).
# --------------------------------------------------------------------------- #
def reference_forward(x, params):
    (w1t, b1, g1, be1, w2t, b2, g2, be2, w3t, b3) = params

    def bn(h, g, be):
        m = jnp.mean(h, axis=0, keepdims=True)
        c = h - m
        v = jnp.mean(c * c, axis=0, keepdims=True)
        return g * c * jax.lax.rsqrt(v + BN_EPS) + be

    def dot_bf16(a, w):
        return jnp.dot(a.astype(jnp.bfloat16), w.astype(jnp.bfloat16),
                       preferred_element_type=jnp.float32)

    h = jnp.maximum(bn(dot_bf16(x, w1t) + b1, g1, be1), 0.0)
    h = jnp.maximum(bn(dot_bf16(h, w2t) + b2, g2, be2), 0.0)
    logits = dot_bf16(h, w3t) + b3
    return jax.nn.log_softmax(logits, axis=1)


if __name__ == "__main__":
    key = jax.random.PRNGKey(0)
    k_x, k_x2, k_p = jax.random.split(key, 3)

    params = init_params(k_p)
    kparams = pack_kernel_params(params)

    # Stacked path: 16 independent micro-batches of 128 rows; G=2 fused per
    # grid step -> 8 "parallel" steps (>=4 per TensorCore on v7x), weights
    # stay VMEM-resident across all of them.
    NB, MB, G = 16, 128, 2
    x_stack = jax.random.normal(k_x, (NB, MB, SPLIT), jnp.float32)

    out = logistic_forward_stacked(x_stack, kparams, group=G)
    out = jax.block_until_ready(out)
    assert out.shape == (NB, MB, NCLS)

    ref = jnp.stack([reference_forward(x_stack[i], params) for i in range(NB)])
    assert jnp.allclose(out, ref, atol=2e-3, rtol=2e-3), "stacked mismatch vs reference"
    assert jnp.allclose(jnp.sum(jnp.exp(out), axis=-1), 1.0, atol=1e-4)

    # 2-D convenience path: a single small-batch forward call.
    B2 = 32
    x2 = jax.random.normal(k_x2, (B2, SPLIT), jnp.float32)
    out2 = jax.block_until_ready(logistic_forward(x2, kparams))
    ref2 = reference_forward(x2, params)
    assert out2.shape == (B2, NCLS)
    assert jnp.allclose(out2, ref2, atol=2e-3, rtol=2e-3), "2-D mismatch vs reference"

    print("KERNEL_OK")
</pallas_src>

<mosaic_0001>
module attributes {stable_mosaic.version = 11 : i64} {
  func.func @logistic_kernel(%arg0: i32, %arg1: memref<2x128x256xbf16, #tpu.memory_space<vmem>>, %arg2: memref<256x512xbf16, #tpu.memory_space<vmem>>, %arg3: memref<1x512xf32, #tpu.memory_space<vmem>>, %arg4: memref<1x512xf32, #tpu.memory_space<vmem>>, %arg5: memref<512x64xbf16, #tpu.memory_space<vmem>>, %arg6: memref<1x64xf32, #tpu.memory_space<vmem>>, %arg7: memref<1x64xf32, #tpu.memory_space<vmem>>, %arg8: memref<64x128xbf16, #tpu.memory_space<vmem>>, %arg9: memref<1x128xf32, #tpu.memory_space<vmem>>, %arg10: memref<2x128x4xf32, #tpu.memory_space<vmem>>) attributes {dimension_semantics = [#tpu.dimension_semantics<parallel>], iteration_bounds = array<i64: 8>, scalar_prefetch = 0 : i64, scratch_operands = 0 : i64, tpu.core_type = #tpu.core_type<tc>, window_params = [{transform_indices = @transform_0, window_bounds = array<i64: 2, 128, 256>}, {pipeline_mode = #tpu.pipeline_mode<synchronous>, transform_indices = @transform_1, window_bounds = array<i64: 256, 512>}, {pipeline_mode = #tpu.pipeline_mode<synchronous>, transform_indices = @transform_2, window_bounds = array<i64: 1, 512>}, {pipeline_mode = #tpu.pipeline_mode<synchronous>, transform_indices = @transform_3, window_bounds = array<i64: 1, 512>}, {pipeline_mode = #tpu.pipeline_mode<synchronous>, transform_indices = @transform_4, window_bounds = array<i64: 512, 64>}, {pipeline_mode = #tpu.pipeline_mode<synchronous>, transform_indices = @transform_5, window_bounds = array<i64: 1, 64>}, {pipeline_mode = #tpu.pipeline_mode<synchronous>, transform_indices = @transform_6, window_bounds = array<i64: 1, 64>}, {pipeline_mode = #tpu.pipeline_mode<synchronous>, transform_indices = @transform_7, window_bounds = array<i64: 64, 128>}, {pipeline_mode = #tpu.pipeline_mode<synchronous>, transform_indices = @transform_8, window_bounds = array<i64: 1, 128>}, {transform_indices = @transform_9, window_bounds = array<i64: 2, 128, 4>}]} {
    %c0 = arith.constant 0 : index
    %c0_0 = arith.constant 0 : index
    %c0_1 = arith.constant 0 : index
    %0 = vector.load %arg1[%c0, %c0_0, %c0_1] : memref<2x128x256xbf16, #tpu.memory_space<vmem>>, vector<2x128x256xbf16>
    %1 = vector.shape_cast %0 : vector<2x128x256xbf16> to vector<256x256xbf16>
    %c0_2 = arith.constant 0 : index
    %c0_3 = arith.constant 0 : index
    %2 = vector.load %arg2[%c0_2, %c0_3] : memref<256x512xbf16, #tpu.memory_space<vmem>>, vector<256x512xbf16>
    %cst = arith.constant dense<0.000000e+00> : vector<256x512xf32>
    %3 = tpu.matmul %1, %2, %cst {dimension_numbers = #tpu.dot_dimension_numbers<[1], [0], [0], [1], [0, 0, 1, 1], [], []>} : vector<256x256xbf16>, vector<256x512xbf16>, vector<256x512xf32> -> vector<256x512xf32>
    %4 = vector.shape_cast %3 : vector<256x512xf32> to vector<2x128x512xf32>
    %cst_4 = arith.constant dense<0.000000e+00> : vector<2x512xf32>
    %5 = vector.multi_reduction <add>, %4, %cst_4 [1] : vector<2x128x512xf32> to vector<2x512xf32>
    %6 = vector.shape_cast %5 : vector<2x512xf32> to vector<2x1x512xf32>
    %cst_5 = arith.constant 1.280000e+02 : f32
    %7 = vector.broadcast %cst_5 : f32 to vector<2x1x512xf32>
    %8 = arith.divf %6, %7 : vector<2x1x512xf32>
    %9 = vector.broadcast %8 : vector<2x1x512xf32> to vector<2x128x512xf32>
    %10 = arith.subf %4, %9 : vector<2x128x512xf32>
    %11 = arith.mulf %10, %10 : vector<2x128x512xf32>
    %cst_6 = arith.constant dense<0.000000e+00> : vector<2x512xf32>
    %12 = vector.multi_reduction <add>, %11, %cst_6 [1] : vector<2x128x512xf32> to vector<2x512xf32>
    %13 = vector.shape_cast %12 : vector<2x512xf32> to vector<2x1x512xf32>
    %cst_7 = arith.constant 1.280000e+02 : f32
    %14 = vector.broadcast %cst_7 : f32 to vector<2x1x512xf32>
    %15 = arith.divf %13, %14 : vector<2x1x512xf32>
    %c0_8 = arith.constant 0 : index
    %c0_9 = arith.constant 0 : index
    %16 = vector.load %arg3[%c0_8, %c0_9] : memref<1x512xf32, #tpu.memory_space<vmem>>, vector<1x512xf32>
    %cst_10 = arith.constant 9.99999974E-6 : f32
    %17 = vector.broadcast %cst_10 : f32 to vector<2x1x512xf32>
    %18 = arith.addf %15, %17 : vector<2x1x512xf32>
    %19 = math.rsqrt %18 : vector<2x1x512xf32>
    %20 = vector.shape_cast %16 : vector<1x512xf32> to vector<1x1x512xf32>
    %21 = vector.broadcast %20 : vector<1x1x512xf32> to vector<2x1x512xf32>
    %22 = arith.mulf %21, %19 : vector<2x1x512xf32>
    %23 = vector.broadcast %22 : vector<2x1x512xf32> to vector<2x128x512xf32>
    %24 = arith.mulf %10, %23 : vector<2x128x512xf32>
    %c0_11 = arith.constant 0 : index
    %c0_12 = arith.constant 0 : index
    %25 = vector.load %arg4[%c0_11, %c0_12] : memref<1x512xf32, #tpu.memory_space<vmem>>, vector<1x512xf32>
    %26 = vector.shape_cast %25 : vector<1x512xf32> to vector<1x1x512xf32>
    %27 = vector.broadcast %26 : vector<1x1x512xf32> to vector<2x128x512xf32>
    %28 = arith.addf %24, %27 : vector<2x128x512xf32>
    %cst_13 = arith.constant 0.000000e+00 : f32
    %29 = vector.broadcast %cst_13 : f32 to vector<2x128x512xf32>
    %30 = arith.maximumf %28, %29 : vector<2x128x512xf32>
    %31 = arith.truncf %30 : vector<2x128x512xf32> to vector<2x128x512xbf16>
    %32 = vector.shape_cast %31 : vector<2x128x512xbf16> to vector<256x512xbf16>
    %c0_14 = arith.constant 0 : index
    %c0_15 = arith.constant 0 : index
    %33 = vector.load %arg5[%c0_14, %c0_15] : memref<512x64xbf16, #tpu.memory_space<vmem>>, vector<512x64xbf16>
    %cst_16 = arith.constant dense<0.000000e+00> : vector<256x64xf32>
    %34 = tpu.matmul %32, %33, %cst_16 {dimension_numbers = #tpu.dot_dimension_numbers<[1], [0], [0], [1], [0, 0, 1, 1], [], []>} : vector<256x512xbf16>, vector<512x64xbf16>, vector<256x64xf32> -> vector<256x64xf32>
    %35 = vector.shape_cast %34 : vector<256x64xf32> to vector<2x128x64xf32>
    %cst_17 = arith.constant dense<0.000000e+00> : vector<2x64xf32>
    %36 = vector.multi_reduction <add>, %35, %cst_17 [1] : vector<2x128x64xf32> to vector<2x64xf32>
    %37 = vector.shape_cast %36 : vector<2x64xf32> to vector<2x1x64xf32>
    %cst_18 = arith.constant 1.280000e+02 : f32
    %38 = vector.broadcast %cst_18 : f32 to vector<2x1x64xf32>
    %39 = arith.divf %37, %38 : vector<2x1x64xf32>
    %40 = vector.broadcast %39 : vector<2x1x64xf32> to vector<2x128x64xf32>
    %41 = arith.subf %35, %40 : vector<2x128x64xf32>
    %42 = arith.mulf %41, %41 : vector<2x128x64xf32>
    %cst_19 = arith.constant dense<0.000000e+00> : vector<2x64xf32>
    %43 = vector.multi_reduction <add>, %42, %cst_19 [1] : vector<2x128x64xf32> to vector<2x64xf32>
    %44 = vector.shape_cast %43 : vector<2x64xf32> to vector<2x1x64xf32>
    %cst_20 = arith.constant 1.280000e+02 : f32
    %45 = vector.broadcast %cst_20 : f32 to vector<2x1x64xf32>
    %46 = arith.divf %44, %45 : vector<2x1x64xf32>
    %c0_21 = arith.constant 0 : index
    %c0_22 = arith.constant 0 : index
    %47 = vector.load %arg6[%c0_21, %c0_22] : memref<1x64xf32, #tpu.memory_space<vmem>>, vector<1x64xf32>
    %cst_23 = arith.constant 9.99999974E-6 : f32
    %48 = vector.broadcast %cst_23 : f32 to vector<2x1x64xf32>
    %49 = arith.addf %46, %48 : vector<2x1x64xf32>
    %50 = math.rsqrt %49 : vector<2x1x64xf32>
    %51 = vector.shape_cast %47 : vector<1x64xf32> to vector<1x1x64xf32>
    %52 = vector.broadcast %51 : vector<1x1x64xf32> to vector<2x1x64xf32>
    %53 = arith.mulf %52, %50 : vector<2x1x64xf32>
    %54 = vector.broadcast %53 : vector<2x1x64xf32> to vector<2x128x64xf32>
    %55 = arith.mulf %41, %54 : vector<2x128x64xf32>
    %c0_24 = arith.constant 0 : index
    %c0_25 = arith.constant 0 : index
    %56 = vector.load %arg7[%c0_24, %c0_25] : memref<1x64xf32, #tpu.memory_space<vmem>>, vector<1x64xf32>
    %57 = vector.shape_cast %56 : vector<1x64xf32> to vector<1x1x64xf32>
    %58 = vector.broadcast %57 : vector<1x1x64xf32> to vector<2x128x64xf32>
    %59 = arith.addf %55, %58 : vector<2x128x64xf32>
    %cst_26 = arith.constant 0.000000e+00 : f32
    %60 = vector.broadcast %cst_26 : f32 to vector<2x128x64xf32>
    %61 = arith.maximumf %59, %60 : vector<2x128x64xf32>
    %62 = arith.truncf %61 : vector<2x128x64xf32> to vector<2x128x64xbf16>
    %63 = vector.shape_cast %62 : vector<2x128x64xbf16> to vector<256x64xbf16>
    %c0_27 = arith.constant 0 : index
    %c0_28 = arith.constant 0 : index
    %64 = vector.load %arg8[%c0_27, %c0_28] : memref<64x128xbf16, #tpu.memory_space<vmem>>, vector<64x128xbf16>
    %cst_29 = arith.constant dense<0.000000e+00> : vector<256x128xf32>
    %65 = tpu.matmul %63, %64, %cst_29 {dimension_numbers = #tpu.dot_dimension_numbers<[1], [0], [0], [1], [0, 0, 1, 1], [], []>} : vector<256x64xbf16>, vector<64x128xbf16>, vector<256x128xf32> -> vector<256x128xf32>
    %66 = vector.shape_cast %65 : vector<256x128xf32> to vector<2x128x128xf32>
    %c0_30 = arith.constant 0 : index
    %c0_31 = arith.constant 0 : index
    %67 = vector.load %arg9[%c0_30, %c0_31] : memref<1x128xf32, #tpu.memory_space<vmem>>, vector<1x128xf32>
    %68 = vector.shape_cast %67 : vector<1x128xf32> to vector<1x1x128xf32>
    %69 = vector.broadcast %68 : vector<1x1x128xf32> to vector<2x128x128xf32>
    %70 = arith.addf %66, %69 : vector<2x128x128xf32>
    %cst_32 = arith.constant dense<0xFF800000> : vector<2x128xf32>
    %71 = vector.multi_reduction <maximumf>, %70, %cst_32 [2] : vector<2x128x128xf32> to vector<2x128xf32>
    %72 = vector.shape_cast %71 : vector<2x128xf32> to vector<2x128x1xf32>
    %73 = vector.broadcast %72 : vector<2x128x1xf32> to vector<2x128x128xf32>
    %74 = arith.subf %70, %73 : vector<2x128x128xf32>
    %75 = math.exp %74 : vector<2x128x128xf32>
    %cst_33 = arith.constant dense<0.000000e+00> : vector<2x128xf32>
    %76 = vector.multi_reduction <add>, %75, %cst_33 [2] : vector<2x128x128xf32> to vector<2x128xf32>
    %77 = vector.shape_cast %76 : vector<2x128xf32> to vector<2x128x1xf32>
    %78 = math.log %77 : vector<2x128x1xf32>
    %79 = vector.broadcast %78 : vector<2x128x1xf32> to vector<2x128x128xf32>
    %80 = arith.subf %74, %79 : vector<2x128x128xf32>
    %81 = vector.extract_strided_slice %80 {offsets = [0, 0, 0], sizes = [2, 128, 4], strides = [1, 1, 1]} : vector<2x128x128xf32> to vector<2x128x4xf32>
    %c0_34 = arith.constant 0 : index
    %c0_35 = arith.constant 0 : index
    %c0_36 = arith.constant 0 : index
    %82 = vector.load %arg10[%c0_34, %c0_35, %c0_36] : memref<2x128x4xf32, #tpu.memory_space<vmem>>, vector<2x128x4xf32>
    tpu.vector_store %arg10[%c0_34, %c0_35, %c0_36], %81 {strides = array<i32>} : memref<2x128x4xf32, #tpu.memory_space<vmem>>, vector<2x128x4xf32>,
    return
  }
  func.func @transform_0(%arg0: i32) -> (i32, i32, i32) {
    %c0_i32 = arith.constant 0 : i32
    %c0_i32_0 = arith.constant 0 : i32
    %c0_i32_1 = arith.constant 0 : i32
    return %arg0, %c0_i32, %c0_i32_0 : i32, i32, i32
  }
  func.func @transform_1(%arg0: i32) -> (i32, i32) {
    %c0_i32 = arith.constant 0 : i32
    %c0_i32_0 = arith.constant 0 : i32
    %c0_i32_1 = arith.constant 0 : i32
    return %c0_i32, %c0_i32_0 : i32, i32
  }
  func.func @transform_2(%arg0: i32) -> (i32, i32) {
    %c0_i32 = arith.constant 0 : i32
    %c0_i32_0 = arith.constant 0 : i32
    %c0_i32_1 = arith.constant 0 : i32
    return %c0_i32, %c0_i32_0 : i32, i32
  }
  func.func @transform_3(%arg0: i32) -> (i32, i32) {
    %c0_i32 = arith.constant 0 : i32
    %c0_i32_0 = arith.constant 0 : i32
    %c0_i32_1 = arith.constant 0 : i32
    return %c0_i32, %c0_i32_0 : i32, i32
  }
  func.func @transform_4(%arg0: i32) -> (i32, i32) {
    %c0_i32 = arith.constant 0 : i32
    %c0_i32_0 = arith.constant 0 : i32
    %c0_i32_1 = arith.constant 0 : i32
    return %c0_i32, %c0_i32_0 : i32, i32
  }
  func.func @transform_5(%arg0: i32) -> (i32, i32) {
    %c0_i32 = arith.constant 0 : i32
    %c0_i32_0 = arith.constant 0 : i32
    %c0_i32_1 = arith.constant 0 : i32
    return %c0_i32, %c0_i32_0 : i32, i32
  }
  func.func @transform_6(%arg0: i32) -> (i32, i32) {
    %c0_i32 = arith.constant 0 : i32
    %c0_i32_0 = arith.constant 0 : i32
    %c0_i32_1 = arith.constant 0 : i32
    return %c0_i32, %c0_i32_0 : i32, i32
  }
  func.func @transform_7(%arg0: i32) -> (i32, i32) {
    %c0_i32 = arith.constant 0 : i32
    %c0_i32_0 = arith.constant 0 : i32
    %c0_i32_1 = arith.constant 0 : i32
    return %c0_i32, %c0_i32_0 : i32, i32
  }
  func.func @transform_8(%arg0: i32) -> (i32, i32) {
    %c0_i32 = arith.constant 0 : i32
    %c0_i32_0 = arith.constant 0 : i32
    %c0_i32_1 = arith.constant 0 : i32
    return %c0_i32, %c0_i32_0 : i32, i32
  }
  func.func @transform_9(%arg0: i32) -> (i32, i32, i32) {
    %c0_i32 = arith.constant 0 : i32
    %c0_i32_0 = arith.constant 0 : i32
    %c0_i32_1 = arith.constant 0 : i32
    return %arg0, %c0_i32, %c0_i32_0 : i32, i32, i32
  }
}

</mosaic_0001>

<bundles_post_ra>
// kernel: tpu_custom_call.1
= control target key start
LH: loop header
LB: loop body
LE: loop exit
PB: predicated region body
PF: predicated region fallthrough
CT: control target
= control target key end

     0   :  { %s9366_s0 = inlined_call_operand.hbm [shape: bf16[16,128,256], index: 0, kind: input, shape index: {}]   ;;  %s9367_s1 = inlined_call_operand.hbm [shape: bf16[256,512], index: 1, kind: input, shape index: {}]   ;;  %s9368_s2 = inlined_call_operand.vmem [shape: f32[1,512], index: 2, kind: input, shape index: {}]   ;;  %s9369_s3 = inlined_call_operand.vmem [shape: f32[1,512], index: 3, kind: input, shape index: {}]   ;;  %s9370_s4 = inlined_call_operand.vmem [shape: bf16[512,64], index: 4, kind: input, shape index: {}]   ;;  %s9371_s5 = inlined_call_operand.vmem [shape: f32[1,64], index: 5, kind: input, shape index: {}]   ;;  %s9372_s6 = inlined_call_operand.vmem [shape: f32[1,64], index: 6, kind: input, shape index: {}]   ;;  %s9373_s7 = inlined_call_operand.vmem [shape: bf16[64,128], index: 7, kind: input, shape index: {}]   ;;  %s9374_s8 = inlined_call_operand.vmem [shape: f32[1,128], index: 8, kind: input, shape index: {}]   ;;  %s9375_s9 = inlined_call_operand.vmem [shape: f32[16,128,4], index: 9, kind: output, shape index: {}]  }
   0x1   :  { %9558 = sst [smem:[#allocation104_spill]] %s9367_s1 }
   0x2   :  { %9559 = sst [smem:[#allocation105_spill]] %s9375_s9 }
   0x3   :  { %14 = vsyncpa [#allocation3], 0 }
   0x4   :  { %16 = vsyncpa [#allocation3 + $0x1], 0 }
   0x5   :  { %17 = vsyncpa [#allocation5], 0  ;;  %s5986_s30 = smov 0   ;;  %s5988_s10 = smov 0  }
   0x6   :  { %s5990_s11 = smov 0   ;;  %s5992_s12 = smov 0  }
   0x7 LB: > { %s9376_s13 = sadd.s32 4294967295, %s5928_s12   ;;  %p43_p0 = scmp.ne.s32.totalorder %s5920_s10, %s5916_s30  ;;  %s5928_s12 = sphi %s5992_s12, %s9956_s12   ;;  %s5924_s11 = sphi %s5990_s11, %s9955_s11   ;;  %s5920_s10 = sphi %s5988_s10, %s9954_s10   ;;  %s5916_s30 = sphi %s5986_s30, %s9953_s30  }
   0x8   : > { %p6008_p1 = scmp.eq.s32.totalorder %s9376_s13, 0  ;;  %p4904_p2 = scmp.ge.s32.totalorder %s5928_s12, 1 }
   0x9   : > { %p248_p3 = scmp.lt.s32.totalorder %s5928_s12, 9  ;;  %s9562_s1 = sld [smem:[#allocation104_spill]] }
   0xa   : > { %p6016_p4 = por %p6008_p1, %p43_p0  ;;  %s5930_s20 = smov [#allocation4]  }
   0xb   : > { %p6023_p5 = pnand %p4904_p2, %p248_p3  ;;  %s261_s21 = sshll.u32 %s5930_s20, 4  ;;  %s262_s21 = int_to_ptr.vmem [resolvable:$true] %s261_s21 }
   0xc   : > { %s6032_s22 = sadd.s32 1, %s5928_s12   ;;  %s5931_s23 = smov 256  }
   0xd   : > { %p5628_p6 = pneg %p6023_p5  ;;  %s5932_s24 = smov 16  }
   0xe   : > { %s27_s25 = ssub.s32 %s5928_s12, %s6032_s22  ;;  %s30_s26 = sadd.s32 1, %s5924_s11 }
   0xf   : > { %s259_s18 = sshll.u32 %s9562_s1, 4  ;;  %p5629_p7 = pnand %p5628_p6, %p6008_p1  ;;  %s260_s18 = int_to_ptr.hbm [resolvable:$true] %s259_s18 }
  0x10   : > { %p28_p8 = scmp.eq.s32.totalorder %s27_s25, 0  ;;  %p37_p9 = scmp.ne.s32.totalorder %s5924_s11, %s5920_s10 }
  0x11   : > { %5631 = dma.hbm_to_vmem [thread:$0]  (!%p5629_p7), %s260_s18, 8192, %s262_s21, [#allocation5], %s5931_s23, %s5931_s23, %s5932_s24  }
  0x12   : > { %p38_p10 = scmp.eq.s32.totalorder %s5928_s12, 0  ;;  %p5637_p11 = scmp.lt.s32.totalorder %s5928_s12, 8 }
  0x13   : > { %s6042_s27 = scalar_select %p28_p8, %s5924_s11, %s30_s26  }
  0x14   : > { %p39_p12 = por %p38_p10, %p37_p9  ;;  %s296_s28 = sand.u32 1, %s5924_s11  }
  0x15   : > { %s4907_s29 = sshll.u32 %s296_s28, 8  ;;  %s5464_s30 = sshll.u32 %s5928_s12, 8 }
  0x16   : > { %s306_s20 = scalar_lea.hbm %s9366_s0, %s5464_s30  ;;  %s300_s13 = scalar_lea.vmem [#allocation2], %s4907_s29 }
  0x17   : > { %s309_s1 = sshll.u32 %s300_s13, 4  ;;  %s307_s9 = sshll.u32 %s306_s20, 4  ;;  %s310_s1 = int_to_ptr.vmem [resolvable:$true] %s309_s1  ;;  %s308_s9 = int_to_ptr.hbm [resolvable:$true] %s307_s9 }
  0x18   : > { %p6049_p13 = pnand %p5637_p11, %p39_p12  ;;  %s297_s21 = scalar_lea.sflag [#allocation3], %s296_s28 }
  0x19   : > { %s5860_s23 = sshra.s32 %s308_s9, 4  ;;  %s5867_s13 = scalar_lea.hbm %s9366_s0, 2048  ;;  %s5861_s23 = int_to_ptr.hbm [resolvable:$true] %s5860_s23 }
  0x1a   : > { %s5862_s24 = scalar_lea.hbm %s5861_s23, 256  ;;  %p5864_p2 = pneg %p6049_p13 }
  0x1b   : > { %p5863_p0 = scmp.ne.s32.totalorder %s5861_s23, %s5862_s24  ;;  %p5868_p7 = scmp.lt.s32.totalorder %s5861_s23, %s9366_s0 }
  0x1c   : > { %p5869_p8 = scmp.lt.s32.totalorder %s5867_s13, %s5862_s24 }
  0x1d   : > { %p5865_p3 = pnand %p5864_p2, %p5863_p0 }
  0x1e   : > { %p5870_p9 = por %p5869_p8, %p5868_p7 }
  0x1f   : > { %p5866_p6 = pneg %p5865_p3 }
  0x21   : > { %p5871_p10 = pnand %p5870_p9, %p5866_p6 }
  0x23   : > { %5874 = shalt.err (!%p5871_p10)
}
  0x24   : > { %s5933_s28 = smov 128   ;;  %s5934_s16 = smov 8  }
  0x25   : > { %5635 = dma.hbm_to_vmem [thread:$0]  (!%p6049_p13), %s308_s9, 4096, %s310_s1, %s297_s21, %s5933_s28, %s5933_s28, %s5934_s16  }
  0x26   : > { %321 = sbr.rel (%p6023_p5) target bundleno = 1811 (0x713), region = 56 }
  0x2b   : > { %s323_s17 = sand.u32 1, %s5920_s10  }
  0x2c   : > { %s4912_s20 = sshll.u32 %s323_s17, 8  ;;  %s324_s25 = scalar_lea.sflag [#allocation3], %s323_s17 }
  0x2d   : > { %s6066_s26 = scalar_lea.vmem [#allocation2], %s4912_s20 }
  0x2e   : > { %5907 = dma.done.wait (%p6016_p4), %s324_s25, 4096  }
  0x2f   : > { %5909 = vsyncadd (%p6016_p4), %s324_s25, 4294963200 }
  0x30   : > { %5911 = dma.done.wait (%p6008_p1), [#allocation5], 8192  }
  0x31   : > { %5913 = vsyncadd (%p6008_p1), [#allocation5], 4294959104  ;;  %v5159_v0 = vld [vmem:[#allocation4 + $0xe0] sm:$0xf]  ;;  %v5528_v1 = vld [vmem:[#allocation4 + $0xec] sm:$0xf0] }
  0x32   : > { %v5143_v2 = vld [vmem:[#allocation4 + $0xc0] sm:$0xf]  ;;  %v5160_v3 = vor.u32 %v5528_v1, %v5159_v0  ;;  %v5524_v4 = vld [vmem:[#allocation4 + $0xcc] sm:$0xf0]  ;;  %v5526_v24 = vld [vmem:[#allocation4 + $0xe4] sm:$0xf] }
  0x33   : > { %v5144_v5 = vor.u32 %v5524_v4, %v5143_v2  ;;  %v5127_v6 = vld [vmem:[#allocation4 + $0xa0] sm:$0xf]  ;;  %v5520_v7 = vld [vmem:[#allocation4 + $0xac] sm:$0xf0]  ;;  %v5161_v25 = vld [vmem:[#allocation4 + $0xf0] sm:$0xf0] }
  0x34   : > { %5598 = vmatpush.bf16.msra.mxu1 %v5160_v3  ;;  %5599 = vmatpush.bf16.msra.mxu2 %v5160_v3  ;;  %v5128_v8 = vor.u32 %v5520_v7, %v5127_v6  ;;  %v5111_v9 = vld [vmem:[#allocation4 + $0x80] sm:$0xf]  ;;  %v5516_v10 = vld [vmem:[#allocation4 + $0x8c] sm:$0xf0]  ;;  %v5558_v26 = vld [vmem:[#allocation4 + $0x1e4] sm:$0xf]  ;;  %v5164_v36 = vor.u32 %v5526_v24, %v5161_v25 }
  0x35   : > { %5600 = vmatpush.bf16.msra.mxu3 %v5160_v3  ;;  %954 = vmatpush.bf16.msra.mxu0 %v5160_v3  ;;  %v5112_v11 = vor.u32 %v5516_v10, %v5111_v9  ;;  %v5095_v12 = vld [vmem:[#allocation4 + $0x60] sm:$0xf]  ;;  %v5512_v13 = vld [vmem:[#allocation4 + $0x6c] sm:$0xf0]  ;;  %v5289_v27 = vld [vmem:[#allocation4 + $0x1f0] sm:$0xf0] }
  0x36   : > { %v5096_v14 = vor.u32 %v5512_v13, %v5095_v12  ;;  %v5079_v15 = vld [vmem:[#allocation4 + $0x40] sm:$0xf]  ;;  %v5508_v16 = vld [vmem:[#allocation4 + $0x4c] sm:$0xf0]  ;;  %v5475_v31 = vld [vmem:[%s6066_s26 + $0x44] sm:$0xf0]  ;;  %v5292_v37 = vor.u32 %v5558_v26, %v5289_v27 }
  0x37   : > { %v5080_v17 = vor.u32 %v5508_v16, %v5079_v15  ;;  %v5063_v18 = vld [vmem:[#allocation4 + $0x20] sm:$0xf]  ;;  %v5504_v19 = vld [vmem:[#allocation4 + $0x2c] sm:$0xf0]  ;;  %v5483_v33 = vld [vmem:[%s6066_s26 + $0x84] sm:$0xf0] }
  0x38   : > { %5601 = vmatpush.bf16.msra.mxu1 %v5144_v5  ;;  %5602 = vmatpush.bf16.msra.mxu2 %v5144_v5  ;;  %v5064_v20 = vor.u32 %v5504_v19, %v5063_v18  ;;  %v5047_v21 = vld [vmem:[#allocation4] sm:$0xf]  ;;  %v5500_v22 = vld [vmem:[#allocation4 + $0xc] sm:$0xf0]  ;;  %v5491_v35 = vld [vmem:[%s6066_s26 + $0xc4] sm:$0xf0] }
  0x39   : > { %5603 = vmatpush.bf16.msra.mxu3 %v5144_v5  ;;  %955 = vmatpush.bf16.msra.mxu0 %v5144_v5  ;;  %v4951_v23 = vld [vmem:[%s6066_s26 + $0x40] sm:$0xf]  ;;  %v5560_v29 = vld [vmem:[#allocation4 + $0x1ec] sm:$0xf0]  ;;  %v5048_v30 = vor.u32 %v5500_v22, %v5047_v21  ;;  %v5522_v39 = vld [vmem:[#allocation4 + $0xc4] sm:$0xf] }
  0x3a   : > { %v5287_v28 = vld [vmem:[#allocation4 + $0x1e0] sm:$0xf]  ;;  %v5145_v40 = vld [vmem:[#allocation4 + $0xd0] sm:$0xf0]  ;;  %v5554_v41 = vld [vmem:[#allocation4 + $0x1c4] sm:$0xf]  ;;  %v6082_v42 = vor.u32 %v5475_v31, %v4951_v23 }
  0x3b   : > { %v4983_v32 = vld [vmem:[%s6066_s26 + $0x80] sm:$0xf]  ;;  %v5288_v38 = vor.u32 %v5560_v29, %v5287_v28  ;;  %v5273_v44 = vld [vmem:[#allocation4 + $0x1d0] sm:$0xf0]  ;;  %v5556_v46 = vld [vmem:[#allocation4 + $0x1cc] sm:$0xf0]  ;;  %v5148_v48 = vor.u32 %v5522_v39, %v5145_v40 }
  0x3c   : > { %5604 = vmatpush.bf16.msra.mxu1 %v5128_v8  ;;  %5605 = vmatpush.bf16.msra.mxu2 %v5128_v8  ;;  %v5015_v34 = vld [vmem:[%s6066_s26 + $0xc0] sm:$0xf]  ;;  %9565 = vst [vmem:[#allocation8_spill] sm:$0xff] %v6082_v42  ;;  %v6084_v43 = vor.u32 %v5483_v33, %v4983_v32  ;;  %v5276_v49 = vor.u32 %v5554_v41, %v5273_v44  ;;  %v5518_v51 = vld [vmem:[#allocation4 + $0xa4] sm:$0xf]  ;;  %vm2384_vm6 = vcmask 1040384  }
  0x3d   : > { %5606 = vmatpush.bf16.msra.mxu3 %v5128_v8  ;;  %956 = vmatpush.bf16.msra.mxu0 %v5128_v8  ;;  %v5271_v45 = vld [vmem:[#allocation4 + $0x1c0] sm:$0xf]  ;;  %v6086_v47 = vor.u32 %v5491_v35, %v5015_v34  ;;  %v5129_v52 = vld [vmem:[#allocation4 + $0xb0] sm:$0xf0]  ;;  %v5550_v53 = vld [vmem:[#allocation4 + $0x1a4] sm:$0xf] }
  0x3e   : > { %9566 = vst [vmem:[#allocation9_spill] sm:$0xff] %v6084_v43  ;;  %v5272_v50 = vor.u32 %v5556_v46, %v5271_v45  ;;  %v5257_v54 = vld [vmem:[#allocation4 + $0x1b0] sm:$0xf0]  ;;  %v5255_v55 = vld [vmem:[#allocation4 + $0x1a0] sm:$0xf]  ;;  %v5132_v57 = vor.u32 %v5518_v51, %v5129_v52  ;;  %vm2386_vm13 = vcmask 1042434  }
  0x3f   : > { %9567 = vst [vmem:[#allocation10_spill] sm:$0xff] %v6086_v47  ;;  %v5552_v56 = vld [vmem:[#allocation4 + $0x1ac] sm:$0xf0]  ;;  %v5260_v58 = vor.u32 %v5550_v53, %v5257_v54  ;;  %v5514_v60 = vld [vmem:[#allocation4 + $0x84] sm:$0xf]  ;;  %vm2388_vm15 = vcmask 1041408  }
  0x40   : > { %5607 = vmatpush.bf16.msra.mxu1 %v5112_v11  ;;  %5608 = vmatpush.bf16.msra.mxu2 %v5112_v11  ;;  %v5256_v59 = vor.u32 %v5552_v56, %v5255_v55  ;;  %v5113_v61 = vld [vmem:[#allocation4 + $0x90] sm:$0xf0]  ;;  %v5546_v62 = vld [vmem:[#allocation4 + $0x184] sm:$0xf]  ;;  %v5239_v0 = vld [vmem:[#allocation4 + $0x180] sm:$0xf] }
  0x41   : > { %5609 = vmatpush.bf16.msra.mxu3 %v5112_v11  ;;  %957 = vmatpush.bf16.msra.mxu0 %v5112_v11  ;;  %v5241_v63 = vld [vmem:[#allocation4 + $0x190] sm:$0xf0]  ;;  %v5548_v1 = vld [vmem:[#allocation4 + $0x18c] sm:$0xf0]  ;;  %v5116_v2 = vor.u32 %v5514_v60, %v5113_v61  ;;  %v5510_v6 = vld [vmem:[#allocation4 + $0x64] sm:$0xf] }
  0x42   : > { %v4959_v3 = vld [vmem:[%s6066_s26 + $0x50] sm:$0xf]  ;;  %v5244_v4 = vor.u32 %v5546_v62, %v5241_v63  ;;  %v5240_v5 = vor.u32 %v5548_v1, %v5239_v0  ;;  %v5097_v7 = vld [vmem:[#allocation4 + $0x70] sm:$0xf0]  ;;  %v5542_v8 = vld [vmem:[#allocation4 + $0x164] sm:$0xf] }
  0x43   : > { %v5225_v9 = vld [vmem:[#allocation4 + $0x170] sm:$0xf0]  ;;  %v5223_v10 = vld [vmem:[#allocation4 + $0x160] sm:$0xf]  ;;  %v5544_v11 = vld [vmem:[#allocation4 + $0x16c] sm:$0xf0] }
  0x44   : > { %5610 = vmatpush.bf16.msra.mxu1 %v5096_v14  ;;  %5611 = vmatpush.bf16.msra.mxu2 %v5096_v14  ;;  %v5477_v12 = vld [vmem:[%s6066_s26 + $0x54] sm:$0xf0]  ;;  %v4991_v13 = vld [vmem:[%s6066_s26 + $0x90] sm:$0xf]  ;;  %v5228_v18 = vor.u32 %v5542_v8, %v5225_v9  ;;  %v5224_v19 = vor.u32 %v5544_v11, %v5223_v10  ;;  %v5081_v21 = vld [vmem:[#allocation4 + $0x50] sm:$0xf0] }
  0x45   : > { %5612 = vmatpush.bf16.msra.mxu3 %v5096_v14  ;;  %958 = vmatpush.bf16.msra.mxu0 %v5096_v14  ;;  %v5485_v14 = vld [vmem:[%s6066_s26 + $0x94] sm:$0xf0]  ;;  %v5023_v15 = vld [vmem:[%s6066_s26 + $0xd0] sm:$0xf]  ;;  %v5538_v22 = vld [vmem:[#allocation4 + $0x144] sm:$0xf]  ;;  %v6097_v23 = vor.u32 %v5477_v12, %v4959_v3 }
  0x46   : > { %v5493_v16 = vld [vmem:[%s6066_s26 + $0xd4] sm:$0xf0]  ;;  %v6099_v24 = vor.u32 %v5485_v14, %v4991_v13  ;;  %v5209_v25 = vld [vmem:[#allocation4 + $0x150] sm:$0xf0]  ;;  %v5207_v26 = vld [vmem:[#allocation4 + $0x140] sm:$0xf] }
  0x47   : > { %9568 = vst [vmem:[#allocation11_spill] sm:$0xff] %v6097_v23  ;;  %v5540_v27 = vld [vmem:[#allocation4 + $0x14c] sm:$0xf0]  ;;  %v6101_v28 = vor.u32 %v5493_v16, %v5023_v15  ;;  %v5502_v32 = vld [vmem:[#allocation4 + $0x24] sm:$0xf]  ;;  %s9951_s28 = sadd.s32 4294967295, %s5928_s12  }
  0x48   : > { %5613 = vmatpush.bf16.msra.mxu1 %v5080_v17  ;;  %5614 = vmatpush.bf16.msra.mxu2 %v5080_v17  ;;  %9569 = vst [vmem:[#allocation12_spill] sm:$0xff] %v6099_v24  ;;  %v5208_v31 = vor.u32 %v5540_v27, %v5207_v26  ;;  %v5065_v33 = vld [vmem:[#allocation4 + $0x30] sm:$0xf0]  ;;  %v5534_v34 = vld [vmem:[#allocation4 + $0x124] sm:$0xf]  ;;  %s4914_s16 = sshll.u32 %s9951_s28, 1 }
  0x49   : > { %5615 = vmatpush.bf16.msra.mxu3 %v5080_v17  ;;  %959 = vmatpush.bf16.msra.mxu0 %v5080_v17  ;;  %v5100_v17 = vor.u32 %v5510_v6, %v5097_v7  ;;  %9570 = vst [vmem:[#allocation13_spill] sm:$0xff] %v6101_v28  ;;  %v5068_v35 = vor.u32 %v5502_v32, %v5065_v33  ;;  %v5498_v41 = vld [vmem:[#allocation4 + $0x4] sm:$0xf]  ;;  %v5049_v44 = vld [vmem:[#allocation4 + $0x10] sm:$0xf0]  ;;  %p371_p1 = scmp.lt.s32.totalorder %s4914_s16, 15 }
  0x4a   : > { %v5530_v45 = vld [vmem:[#allocation4 + $0x104] sm:$0xf]  ;;  %v5177_v46 = vld [vmem:[#allocation4 + $0x110] sm:$0xf0]  ;;  %v5467_v51 = vld [vmem:[%s6066_s26 + $0x4] sm:$0xf0]  ;;  %v5052_v52 = vor.u32 %v5498_v41, %v5049_v44 }
  0x4b   : > { %v5180_v54 = vor.u32 %v5530_v45, %v5177_v46  ;;  %v4967_v56 = vld [vmem:[%s6066_s26 + $0x60] sm:$0xf]  ;;  %v5495_v61 = vld [vmem:[%s6066_s26 + $0xe4] sm:$0xf0]  ;;  %v5527_v1 = vld [vmem:[#allocation4 + $0xec] sm:$0xf] }
  0x4c   : > { %5616 = vmatpush.bf16.msra.mxu1 %v5064_v20  ;;  %5617 = vmatpush.bf16.msra.mxu2 %v5064_v20  ;;  %v5031_v60 = vld [vmem:[%s6066_s26 + $0xe0] sm:$0xf]  ;;  %v5559_v3 = vld [vmem:[#allocation4 + $0x1ec] sm:$0xf]  ;;  %v5295_v6 = vld [vmem:[#allocation4 + $0x1e8] sm:$0xf] }
  0x4d   : > { %5618 = vmatpush.bf16.msra.mxu3 %v5064_v20  ;;  %960 = vmatpush.bf16.msra.mxu0 %v5064_v20  ;;  %v5506_v20 = vld [vmem:[#allocation4 + $0x44] sm:$0xf]  ;;  %v6121_v0 = vor.u32 %v5495_v61, %v5031_v60  ;;  %v5561_v7 = vld [vmem:[#allocation4 + $0x1f4] sm:$0xf0]  ;;  %v4927_v10 = vld [vmem:[%s6066_s26 + $0x10] sm:$0xf] }
  0x4e   : > { %v5084_v29 = vor.u32 %v5506_v20, %v5081_v21  ;;  %v5296_v9 = vor.u32 %v5561_v7, %v5295_v6  ;;  %v5469_v11 = vld [vmem:[%s6066_s26 + $0x14] sm:$0xf0]  ;;  %v4975_v13 = vld [vmem:[%s6066_s26 + $0x70] sm:$0xf]  ;;  %v5466_v27 = vld [vmem:[%s6066_s26 + $0x4] sm:$0xf] }
  0x4f   : > { %9573 = vst [vmem:[#allocation16_spill] sm:$0xff] %v6121_v0  ;;  %v6128_v12 = vor.u32 %v5469_v11, %v4927_v10  ;;  %v5481_v14 = vld [vmem:[%s6066_s26 + $0x74] sm:$0xf0]  ;;  %v5007_v15 = vld [vmem:[%s6066_s26 + $0xb0] sm:$0xf]  ;;  %s9958_s16 = smov (!%p371_p1, %s4914_s16), 15 }
  0x50   : > { %5619 = vmatpush.bf16.msra.mxu1 %v5048_v30  ;;  %5620 = vmatpush.bf16.msra.mxu2 %v5048_v30  ;;  %v5489_v16 = vld [vmem:[%s6066_s26 + $0xb4] sm:$0xf0]  ;;  %v5153_v32 = vld [vmem:[#allocation4 + $0xd8] sm:$0xf0]  ;;  %v5555_v33 = vld [vmem:[#allocation4 + $0x1cc] sm:$0xf] }
  0x51   : > { %5621 = vmatpush.bf16.msra.mxu3 %v5048_v30  ;;  %961 = vmatpush.bf16.msra.mxu0 %v5048_v30  ;;  %v5212_v30 = vor.u32 %v5538_v22, %v5209_v25  ;;  %v6139_v20 = vor.u32 %v5489_v16, %v5007_v15  ;;  %v4935_v22 = vld [vmem:[%s6066_s26 + $0x20] sm:$0xf]  ;;  %v5471_v25 = vld [vmem:[%s6066_s26 + $0x24] sm:$0xf0]  ;;  %v5473_v41 = vld [vmem:[%s6066_s26 + $0x34] sm:$0xf0] }
  0x52   : > { %v6148_v26 = vor.u32 %v5471_v25, %v4935_v22  ;;  %v5468_v45 = vld [vmem:[%s6066_s26 + $0x14] sm:$0xf]  ;;  %v4929_v46 = vld [vmem:[%s6066_s26 + $0x18] sm:$0xf0]  ;;  %v5553_v60 = vld [vmem:[#allocation4 + $0x1b4] sm:$0xf0] }
  0x53   : > { %982 = vmatmul.bf16.vlgmr.msra.gmra.mxu1 %v6082_v42  ;;  %1002 = vmatmul.bf16.vlgmr.msra.gmra.mxu2 %v6084_v43  ;;  %9575 = vst [vmem:[#allocation18_spill] sm:$0xff] %v6139_v20  ;;  %v5547_v10 = vld [vmem:[#allocation4 + $0x18c] sm:$0xf]  ;;  %v5549_v22 = vld [vmem:[#allocation4 + $0x194] sm:$0xf0]  ;;  %s5465_s17 = sshll.u32 %s9958_s16, 7 }
  0x54   : > { %1132 = vmatpush.bf16.msrb.mxu2 %v5164_v36  ;;  %1043 = vmatpush.bf16.msrb.mxu1 %v5288_v38  ;;  %v5193_v36 = vld [vmem:[#allocation4 + $0x130] sm:$0xf0]  ;;  %v5536_v38 = vld [vmem:[#allocation4 + $0x12c] sm:$0xf0]  ;;  %s9952_s25 = sld [smem:[#allocation105_spill]] }
  0x55   : > { %1221 = vmatpush.bf16.msrb.mxu3 %v5292_v37  ;;  %v5191_v37 = vld [vmem:[#allocation4 + $0x120] sm:$0xf]  ;;  %v5196_v39 = vor.u32 %v5534_v34, %v5193_v36  ;;  %v5279_v36 = vld [vmem:[#allocation4 + $0x1c8] sm:$0xf] }
  0x56   : > { %1022 = vmatmul.bf16.vlgmr.msra.gmra.mxu3 %v6086_v47  ;;  %v5192_v40 = vor.u32 %v5536_v38, %v5191_v37  ;;  %v5557_v37 = vld [vmem:[#allocation4 + $0x1d4] sm:$0xf0] }
  0x58   : > { %1133 = vmatpush.bf16.msrb.mxu2 %v5148_v48  ;;  %1044 = vmatpush.bf16.msrb.mxu1 %v5272_v50  ;;  %v5175_v48 = vld [vmem:[#allocation4 + $0x100] sm:$0xf] }
  0x59   : > { %1222 = vmatpush.bf16.msrb.mxu3 %v5276_v49  ;;  %v5532_v49 = vld [vmem:[#allocation4 + $0x10c] sm:$0xf0]  ;;  %v4919_v50 = vld [vmem:[%s6066_s26] sm:$0xf] }
  0x5a   : > { %v6108_v53 = vor.u32 %v5467_v51, %v4919_v50  ;;  %v5176_v55 = vor.u32 %v5532_v49, %v5175_v48  ;;  %v6165_v48 = vor.u32 %v5468_v45, %v4929_v46  ;;  %v5470_v49 = vld [vmem:[%s6066_s26 + $0x24] sm:$0xf]  ;;  %v4937_v50 = vld [vmem:[%s6066_s26 + $0x28] sm:$0xf0] }
  0x5b   : > { %v6172_v51 = vor.u32 %v5470_v49, %v4937_v50  ;;  %v5511_v49 = vld [vmem:[#allocation4 + $0x6c] sm:$0xf]  ;;  %v5105_v50 = vld [vmem:[#allocation4 + $0x78] sm:$0xf0] }
  0x5c   : > { %1134 = vmatpush.bf16.msrb.mxu2 %v5132_v57  ;;  %1045 = vmatpush.bf16.msrb.mxu1 %v5256_v59  ;;  %v5479_v57 = vld [vmem:[%s6066_s26 + $0x64] sm:$0xf0] }
  0x5d   : > { %1223 = vmatpush.bf16.msrb.mxu3 %v5260_v58  ;;  %962 = vmatmul.bf16.vlgmr.msra.gmra.mxu0 %v6108_v53  ;;  %v4999_v58 = vld [vmem:[%s6066_s26 + $0xa0] sm:$0xf]  ;;  %v5487_v59 = vld [vmem:[%s6066_s26 + $0xa4] sm:$0xf0]  ;;  %v6117_v62 = vor.u32 %v5479_v57, %v4967_v56  ;;  %v5265_v57 = vld [vmem:[#allocation4 + $0x1b8] sm:$0xf0] }
  0x5e   : > { %v6119_v63 = vor.u32 %v5487_v59, %v4999_v58  ;;  %v5263_v59 = vld [vmem:[#allocation4 + $0x1a8] sm:$0xf] }
  0x5f   : > { %9571 = vst [vmem:[#allocation14_spill] sm:$0xff] %v6117_v62  ;;  %v5264_v61 = vor.u32 %v5553_v60, %v5263_v59  ;;  %v5231_v60 = vld [vmem:[#allocation4 + $0x168] sm:$0xf] }
  0x60   : > { %1135 = vmatpush.bf16.msrb.mxu2 %v5116_v2  ;;  %1046 = vmatpush.bf16.msrb.mxu1 %v5240_v5  ;;  %9572 = vst [vmem:[#allocation15_spill] sm:$0xff] %v6119_v63  ;;  %v5169_v2 = vld [vmem:[#allocation4 + $0xf8] sm:$0xf0] }
  0x61   : > { %1224 = vmatpush.bf16.msrb.mxu3 %v5244_v4  ;;  %v5172_v4 = vor.u32 %v5527_v1, %v5169_v2  ;;  %v5297_v5 = vld [vmem:[#allocation4 + $0x1f8] sm:$0xf0]  ;;  %v5472_v1 = vld [vmem:[%s6066_s26 + $0x34] sm:$0xf] }
  0x62   : > { %v5300_v8 = vor.u32 %v5559_v3, %v5297_v5  ;;  %v4945_v2 = vld [vmem:[%s6066_s26 + $0x38] sm:$0xf0]  ;;  %v4953_v5 = vld [vmem:[%s6066_s26 + $0x48] sm:$0xf0] }
  0x63   : > { %987 = vmatmul.bf16.gmra.mxu1 %v6097_v23  ;;  %1007 = vmatmul.bf16.gmra.mxu2 %v6099_v24  ;;  %v6179_v3 = vor.u32 %v5472_v1, %v4945_v2  ;;  %v5480_v1 = vld [vmem:[%s6066_s26 + $0x74] sm:$0xf]  ;;  %v4977_v2 = vld [vmem:[%s6066_s26 + $0x78] sm:$0xf0] }
  0x64   : > { %1136 = vmatpush.bf16.msrb.mxu2 %v5100_v17  ;;  %1047 = vmatpush.bf16.msrb.mxu1 %v5224_v19  ;;  %v5039_v17 = vld [vmem:[%s6066_s26 + $0xf0] sm:$0xf]  ;;  %v6137_v19 = vor.u32 %v5481_v14, %v4975_v13  ;;  %v5249_v13 = vld [vmem:[#allocation4 + $0x198] sm:$0xf0] }
  0x65   : > { %1225 = vmatpush.bf16.msrb.mxu3 %v5228_v18  ;;  %v5497_v18 = vld [vmem:[%s6066_s26 + $0xf4] sm:$0xf0]  ;;  %9577 = vst [vmem:[#allocation20_spill] sm:$0xff] %v6179_v3  ;;  %v5252_v15 = vor.u32 %v5547_v10, %v5249_v13 }
  0x66   : > { %1027 = vmatmul.bf16.gmra.mxu3 %v6101_v28  ;;  %9574 = vst [vmem:[#allocation17_spill] sm:$0xff] %v6137_v19  ;;  %v6141_v21 = vor.u32 %v5497_v18, %v5039_v17  ;;  %v5247_v18 = vld [vmem:[#allocation4 + $0x188] sm:$0xf] }
  0x67   : > { %v5248_v25 = vor.u32 %v5549_v22, %v5247_v18 }
  0x68   : > { %1137 = vmatpush.bf16.msrb.mxu2 %v5084_v29  ;;  %1048 = vmatpush.bf16.msrb.mxu1 %v5208_v31  ;;  %9576 = vst [vmem:[#allocation19_spill] sm:$0xff] %v6141_v21  ;;  %v4921_v29 = vld [vmem:[%s6066_s26 + $0x8] sm:$0xf0] }
  0x69   : > { %1226 = vmatpush.bf16.msrb.mxu3 %v5212_v30  ;;  %v6153_v30 = vor.u32 %v5466_v27, %v4921_v29  ;;  %v5523_v31 = vld [vmem:[#allocation4 + $0xcc] sm:$0xf]  ;;  %v5476_v27 = vld [vmem:[%s6066_s26 + $0x54] sm:$0xf]  ;;  %v4961_v29 = vld [vmem:[%s6066_s26 + $0x58] sm:$0xf0] }
  0x6a   : > { %v5156_v34 = vor.u32 %v5523_v31, %v5153_v32 }
  0x6c   : > { %1138 = vmatpush.bf16.msrb.mxu2 %v5068_v35  ;;  %1049 = vmatpush.bf16.msrb.mxu1 %v5192_v40  ;;  %v5281_v35 = vld [vmem:[#allocation4 + $0x1d8] sm:$0xf0]  ;;  %v4943_v40 = vld [vmem:[%s6066_s26 + $0x30] sm:$0xf] }
  0x6d   : > { %1227 = vmatpush.bf16.msrb.mxu3 %v5196_v39  ;;  %967 = vmatmul.bf16.gmra.mxu0 %v6128_v12  ;;  %v5284_v38 = vor.u32 %v5555_v33, %v5281_v35  ;;  %v5280_v39 = vor.u32 %v5557_v37, %v5279_v36  ;;  %v6160_v44 = vor.u32 %v5473_v41, %v4943_v40 }
  0x6e   : > { %v6205_v33 = vor.u32 %v5476_v27, %v4961_v29  ;;  %v4985_v27 = vld [vmem:[%s6066_s26 + $0x88] sm:$0xf0] }
  0x70   : > { %1139 = vmatpush.bf16.msrb.mxu2 %v5052_v52  ;;  %1050 = vmatpush.bf16.msrb.mxu1 %v5176_v55  ;;  %v5519_v52 = vld [vmem:[#allocation4 + $0xac] sm:$0xf]  ;;  %9581 = vst [vmem:[#allocation24_spill] sm:$0xff] %v6205_v33 }
  0x71   : > { %1228 = vmatpush.bf16.msrb.mxu3 %v5180_v54  ;;  %v5137_v54 = vld [vmem:[#allocation4 + $0xb8] sm:$0xf0]  ;;  %v5551_v55 = vld [vmem:[#allocation4 + $0x1ac] sm:$0xf] }
  0x72   : > { %v5140_v56 = vor.u32 %v5519_v52, %v5137_v54  ;;  %v5268_v58 = vor.u32 %v5551_v55, %v5265_v57  ;;  %v5543_v52 = vld [vmem:[#allocation4 + $0x16c] sm:$0xf]  ;;  %v5108_v54 = vor.u32 %v5511_v49, %v5105_v50  ;;  %v5233_v55 = vld [vmem:[#allocation4 + $0x178] sm:$0xf0] }
  0x73   : > { %992 = vmatmul.bf16.gmra.mxu1 %v6117_v62  ;;  %1012 = vmatmul.bf16.gmra.mxu2 %v6119_v63  ;;  %v5236_v57 = vor.u32 %v5543_v52, %v5233_v55  ;;  %v5089_v55 = vld [vmem:[#allocation4 + $0x58] sm:$0xf0] }
  0x74   : > { %1488 = vmatpush.bf16.msra.mxu2 %v5172_v4  ;;  %1399 = vmatpush.bf16.msra.mxu1 %v5296_v9  ;;  %v5474_v4 = vld [vmem:[%s6066_s26 + $0x44] sm:$0xf]  ;;  %v5121_v9 = vld [vmem:[#allocation4 + $0x98] sm:$0xf0] }
  0x75   : > { %1577 = vmatpush.bf16.msra.mxu3 %v5300_v8  ;;  %v6186_v6 = vor.u32 %v5474_v4, %v4953_v5  ;;  %v5515_v8 = vld [vmem:[#allocation4 + $0x8c] sm:$0xf] }
  0x76   : > { %1032 = vmatmul.bf16.gmra.mxu3 %v6121_v0  ;;  %v5124_v11 = vor.u32 %v5515_v8, %v5121_v9  ;;  %v6243_v9 = vor.u32 %v5480_v1, %v4977_v2 }
  0x77   : > { %9578 = vst [vmem:[#allocation21_spill] sm:$0xff] %v6186_v6 }
  0x78   : > { %1489 = vmatpush.bf16.msra.mxu2 %v5156_v34  ;;  %1400 = vmatpush.bf16.msra.mxu1 %v5280_v39  ;;  %v4969_v39 = vld [vmem:[%s6066_s26 + $0x68] sm:$0xf0]  ;;  %9587 = vst [vmem:[#allocation30_spill] sm:$0xff] %v6243_v9 }
  0x79   : > { %1578 = vmatpush.bf16.msra.mxu3 %v5284_v38  ;;  %v5478_v38 = vld [vmem:[%s6066_s26 + $0x64] sm:$0xf] }
  0x7a   : > { %v6224_v45 = vor.u32 %v5478_v38, %v4969_v39 }
  0x7c   : > { %1490 = vmatpush.bf16.msra.mxu2 %v5140_v56  ;;  %1401 = vmatpush.bf16.msra.mxu1 %v5264_v61  ;;  %9584 = vst [vmem:[#allocation27_spill] sm:$0xff] %v6224_v45  ;;  %v5545_v61 = vld [vmem:[#allocation4 + $0x174] sm:$0xf0] }
  0x7d   : > { %972 = vmatmul.bf16.gmra.mxu0 %v6148_v26  ;;  %1579 = vmatpush.bf16.msra.mxu3 %v5268_v58  ;;  %v5232_v4 = vor.u32 %v5545_v61, %v5231_v60  ;;  %v5217_v61 = vld [vmem:[#allocation4 + $0x158] sm:$0xf0] }
  0x80   : > { %1491 = vmatpush.bf16.msra.mxu2 %v5124_v11  ;;  %1402 = vmatpush.bf16.msra.mxu1 %v5248_v25  ;;  %v5482_v25 = vld [vmem:[%s6066_s26 + $0x84] sm:$0xf] }
  0x81   : > { %1580 = vmatpush.bf16.msra.mxu3 %v5252_v15  ;;  %v6262_v39 = vor.u32 %v5482_v25, %v4985_v27 }
  0x83   : > { %997 = vmatmul.bf16.gmra.mxu1 %v6137_v19  ;;  %1017 = vmatmul.bf16.gmra.mxu2 %v6139_v20  ;;  %9592 = vst [vmem:[#allocation35_spill] sm:$0xff] %v6262_v39 }
  0x84   : > { %1492 = vmatpush.bf16.msra.mxu2 %v5108_v54  ;;  %1403 = vmatpush.bf16.msra.mxu1 %v5232_v4  ;;  %v5507_v54 = vld [vmem:[#allocation4 + $0x4c] sm:$0xf] }
  0x85   : > { %1581 = vmatpush.bf16.msra.mxu3 %v5236_v57  ;;  %v5539_v57 = vld [vmem:[#allocation4 + $0x14c] sm:$0xf]  ;;  %v5092_v60 = vor.u32 %v5507_v54, %v5089_v55 }
  0x86   : > { %1037 = vmatmul.bf16.gmra.mxu3 %v6141_v21  ;;  %v5220_v2 = vor.u32 %v5539_v57, %v5217_v61 }
  0x88   : > { %1493 = vmatpush.bf16.msra.mxu2 %v5092_v60 }
  0x89   : > { %1582 = vmatpush.bf16.msra.mxu3 %v5220_v2 }
  0x8d   : > { %977 = vmatmul.bf16.gmra.mxu0 %v6160_v44 }
  0x93   : > { %1051 = vmatmul.bf16.vlgmr.msrb.gmra.mxu1 %v6153_v30  ;;  %1140 = vmatmul.bf16.vlgmr.msrb.gmra.mxu2 %v6108_v53 }
  0x96   : > { %1229 = vmatmul.bf16.vlgmr.msrb.gmra.mxu3 %v6153_v30 }
  0xa3   : > { %1056 = vmatmul.bf16.gmra.mxu1 %v6165_v48  ;;  %1145 = vmatmul.bf16.gmra.mxu2 %v6128_v12 }
  0xa6   : > { %1234 = vmatmul.bf16.gmra.mxu3 %v6165_v48 }
  0xb3   : > { %1061 = vmatmul.bf16.gmra.mxu1 %v6172_v51  ;;  %1150 = vmatmul.bf16.gmra.mxu2 %v6148_v26 }
  0xb6   : > { %1239 = vmatmul.bf16.gmra.mxu3 %v6172_v51 }
  0xc3   : > { %1066 = vmatmul.bf16.gmra.mxu1 %v6179_v3  ;;  %1155 = vmatmul.bf16.gmra.mxu2 %v6160_v44 }
  0xc6   : > { %1244 = vmatmul.bf16.gmra.mxu3 %v6179_v3 }
  0xd0   : > { %v6188_v7 = vpop.f32.mrf.mxu1 }
  0xd3   : > { %1071 = vmatmul.bf16.gmra.mxu1 %v6186_v6  ;;  %1160 = vmatmul.bf16.gmra.mxu2 %v6082_v42 }
  0xd6   : > { %1249 = vmatmul.bf16.gmra.mxu3 %v6186_v6  ;;  %v6193_v14 = vpop.f32.mrf.mxu2  ;;  %v5492_v6 = vld [vmem:[%s6066_s26 + $0xd4] sm:$0xf] }
  0xd8   : > { %v6197_v17 = vpop.f32.mrf.mxu1 }
  0xd9   : > { %v6195_v16 = vpop.f32.mrf.mxu3 }
  0xda   : > { %9579 = vst [vmem:[#allocation22_spill] sm:$0xff] %v6195_v16  ;;  %v963_v11 = vpop.f32.mrf.mxu0  ;;  %v5025_v16 = vld [vmem:[%s6066_s26 + $0xd8] sm:$0xf0] }
  0xde   : > { %v6201_v31 = vpop.f32.mrf.mxu2 }
  0xe0   : > { %v6207_v34 = vpop.f32.mrf.mxu1 }
  0xe1   : > { %v6203_v32 = vpop.f32.mrf.mxu3 }
  0xe2   : > { %9580 = vst [vmem:[#allocation23_spill] sm:$0xff] %v6203_v32  ;;  %v965_v22 = vpop.f32.mrf.mxu0 }
  0xe3   : > { %1076 = vmatmul.bf16.gmra.mxu1 %v6205_v33  ;;  %1165 = vmatmul.bf16.gmra.mxu2 %v6097_v23 }
  0xe6   : > { %1254 = vmatmul.bf16.gmra.mxu3 %v6205_v33  ;;  %v6212_v35 = vpop.f32.mrf.mxu2  ;;  %v5488_v33 = vld [vmem:[%s6066_s26 + $0xb4] sm:$0xf] }
  0xe8   : > { %v6216_v37 = vpop.f32.mrf.mxu1 }
  0xe9   : > { %v6214_v36 = vpop.f32.mrf.mxu3 }
  0xea   : > { %9582 = vst [vmem:[#allocation25_spill] sm:$0xff] %v6214_v36  ;;  %v968_v52 = vpop.f32.mrf.mxu0  ;;  %v5009_v36 = vld [vmem:[%s6066_s26 + $0xb8] sm:$0xf0] }
  0xee   : > { %v6220_v40 = vpop.f32.mrf.mxu2 }
  0xf0   : > { %v6226_v46 = vpop.f32.mrf.mxu1 }
  0xf1   : > { %v6222_v41 = vpop.f32.mrf.mxu3 }
  0xf2   : > { %9583 = vst [vmem:[#allocation26_spill] sm:$0xff] %v6222_v41  ;;  %v970_v55 = vpop.f32.mrf.mxu0  ;;  %v5529_v41 = vld [vmem:[#allocation4 + $0xf4] sm:$0xf0] }
  0xf3   : > { %1081 = vmatmul.bf16.gmra.mxu1 %v6224_v45  ;;  %1170 = vmatmul.bf16.gmra.mxu2 %v6117_v62 }
  0xf6   : > { %1259 = vmatmul.bf16.gmra.mxu3 %v6224_v45  ;;  %v6231_v56 = vpop.f32.mrf.mxu2 }
  0xf8   : > { %v6235_v59 = vpop.f32.mrf.mxu1 }
  0xf9   : > { %v6233_v58 = vpop.f32.mrf.mxu3 }
  0xfa   : > { %9585 = vst [vmem:[#allocation28_spill] sm:$0xff] %v6233_v58 }
  0xfe   : > { %v6239_v5 = vpop.f32.mrf.mxu2 }
 0x100   : > { %v6245_v10 = vpop.f32.mrf.mxu1 }
 0x101   : > { %v6241_v8 = vpop.f32.mrf.mxu3 }
 0x102   : > { %9586 = vst [vmem:[#allocation29_spill] sm:$0xff] %v6241_v8 }
 0x103   : > { %1086 = vmatmul.bf16.gmra.mxu1 %v6243_v9  ;;  %1175 = vmatmul.bf16.gmra.mxu2 %v6137_v19  ;;  %v5167_v19 = vld [vmem:[#allocation4 + $0xe8] sm:$0xf] }
 0x104   : > { %v5168_v62 = vor.u32 %v5529_v41, %v5167_v19  ;;  %v5151_v19 = vld [vmem:[#allocation4 + $0xc8] sm:$0xf] }
 0x106   : > { %1264 = vmatmul.bf16.gmra.mxu3 %v6243_v9  ;;  %v6250_v13 = vpop.f32.mrf.mxu2  ;;  %v5484_v9 = vld [vmem:[%s6066_s26 + $0x94] sm:$0xf]  ;;  %1310 = vmatpush.bf16.msrb.mxu0 %v5168_v62  ;;  %v5525_v62 = vld [vmem:[#allocation4 + $0xd4] sm:$0xf0] }
 0x107   : > { %9588 = vst [vmem:[#allocation31_spill] sm:$0xff] %v6250_v13 }
 0x108   : > { %v6254_v18 = vpop.f32.mrf.mxu1 }
 0x109   : > { %v6252_v15 = vpop.f32.mrf.mxu3 }
 0x10a   : > { %9589 = vst [vmem:[#allocation32_spill] sm:$0xff] %v6252_v15  ;;  %v4993_v15 = vld [vmem:[%s6066_s26 + $0x98] sm:$0xf0] }
 0x10b   : > { %v6277_v61 = vor.u32 %v5484_v9, %v4993_v15 }
 0x10d   : > { %9593 = vst [vmem:[#allocation36_spill] sm:$0xff] %v6277_v61 }
 0x10e   : > { %v6258_v29 = vpop.f32.mrf.mxu2 }
 0x10f   : > { %9590 = vst [vmem:[#allocation33_spill] sm:$0xff] %v6258_v29 }
 0x110   : > { %v1052_v49 = vpop.f32.mrf.mxu1 }
 0x111   : > { %v6260_v38 = vpop.f32.mrf.mxu3  ;;  %v6264_v50 = vadd.f32 %v1052_v49, %v963_v11 }
 0x112   : > { %9591 = vst [vmem:[#allocation34_spill] sm:$0xff] %v6260_v38  ;;  %v5541_v38 = vld [vmem:[#allocation4 + $0x154] sm:$0xf0] }
 0x113   : > { %1091 = vmatmul.bf16.gmra.mxu1 %v6262_v39  ;;  %1180 = vmatmul.bf16.gmra.mxu2 %v6084_v43 }
 0x116   : > { %1269 = vmatmul.bf16.gmra.mxu3 %v6262_v39  ;;  %v1141_v1 = vpop.f32.mrf.mxu2  ;;  %v5215_v39 = vld [vmem:[#allocation4 + $0x148] sm:$0xf] }
 0x117   : > { %v5216_v43 = vor.u32 %v5541_v38, %v5215_v39  ;;  %v973_v39 = vpop.f32.mrf.mxu0 }
 0x118   : > { %v1054_v25 = vpop.f32.mrf.mxu1 }
 0x119   : > { %v1230_v4 = vpop.f32.mrf.mxu3  ;;  %v6271_v27 = vadd.f32 %v1054_v25, %v965_v22  ;;  %1404 = vmatpush.bf16.msra.mxu1 %v5216_v43 }
 0x11a   : > { %v6269_v11 = vadd.f32 %v1230_v4, %v1141_v1 }
 0x11b   : > { %v1666_v49 = vadd.f32 %v6271_v27, %v6264_v50 }
 0x11e   : > { %v1143_v54 = vpop.f32.mrf.mxu2 }
 0x120   : > { %v1057_v1 = vpop.f32.mrf.mxu1 }
 0x121   : > { %v1232_v57 = vpop.f32.mrf.mxu3  ;;  %v6281_v22 = vadd.f32 %v1057_v1, %v968_v52 }
 0x122   : > { %v6279_v60 = vadd.f32 %v1232_v57, %v1143_v54  ;;  %v5486_v57 = vld [vmem:[%s6066_s26 + $0xa4] sm:$0xf] }
 0x123   : > { %v1667_v4 = vadd.f32 %v1666_v49, %v6281_v22  ;;  %1096 = vmatmul.bf16.gmra.mxu1 %v6277_v61  ;;  %1185 = vmatmul.bf16.gmra.mxu2 %v6099_v24  ;;  %v5001_v49 = vld [vmem:[%s6066_s26 + $0xa8] sm:$0xf0] }
 0x124   : > { %v1687_v2 = vadd.f32 %v6279_v60, %v6269_v11  ;;  %v6297_v45 = vor.u32 %v5486_v57, %v5001_v49 }
 0x126   : > { %1274 = vmatmul.bf16.gmra.mxu3 %v6277_v61  ;;  %v1146_v43 = vpop.f32.mrf.mxu2  ;;  %9594 = vst [vmem:[#allocation37_spill] sm:$0xff] %v6297_v45 }
 0x128   : > { %v1059_v38 = vpop.f32.mrf.mxu1 }
 0x129   : > { %v1235_v9 = vpop.f32.mrf.mxu3  ;;  %v6291_v25 = vadd.f32 %v1059_v38, %v970_v55  ;;  %v5535_v38 = vld [vmem:[#allocation4 + $0x12c] sm:$0xf] }
 0x12a   : > { %v6289_v15 = vadd.f32 %v1235_v9, %v1146_v43  ;;  %v975_v9 = vpop.f32.mrf.mxu0 }
 0x12b   : > { %v1668_v54 = vadd.f32 %v1667_v4, %v6291_v25  ;;  %v5073_v4 = vld [vmem:[#allocation4 + $0x38] sm:$0xf0] }
 0x12c   : > { %v1688_v52 = vadd.f32 %v1687_v2, %v6289_v15  ;;  %v5503_v2 = vld [vmem:[#allocation4 + $0x2c] sm:$0xf] }
 0x12d   : > { %v5076_v57 = vor.u32 %v5503_v2, %v5073_v4  ;;  %v5199_v2 = vld [vmem:[#allocation4 + $0x128] sm:$0xf] }
 0x12e   : > { %v1148_v1 = vpop.f32.mrf.mxu2 }
 0x12f   : > { %1494 = vmatpush.bf16.msra.mxu2 %v5076_v57 }
 0x130   : > { %v1062_v61 = vpop.f32.mrf.mxu1 }
 0x131   : > { %v1237_v8 = vpop.f32.mrf.mxu3  ;;  %v6301_v58 = vadd.f32 %v1062_v61, %v973_v39 }
 0x132   : > { %v6299_v24 = vadd.f32 %v1237_v8, %v1148_v1  ;;  %v5201_v8 = vld [vmem:[#allocation4 + $0x138] sm:$0xf0]  ;;  %v978_v4 = vpop.f32.mrf.mxu0 }
 0x133   : > { %v1669_v55 = vadd.f32 %v1668_v54, %v6301_v58  ;;  %1101 = vmatmul.bf16.gmra.mxu1 %v6297_v45  ;;  %1190 = vmatmul.bf16.gmra.mxu2 %v6119_v63  ;;  %v5204_v39 = vor.u32 %v5535_v38, %v5201_v8  ;;  %v5537_v38 = vld [vmem:[#allocation4 + $0x134] sm:$0xf0] }
 0x134   : > { %v1689_v43 = vadd.f32 %v1688_v52, %v6299_v24  ;;  %v5200_v8 = vor.u32 %v5537_v38, %v5199_v2 }
 0x135   : > { %1583 = vmatpush.bf16.msra.mxu3 %v5204_v39 }
 0x136   : > { %1279 = vmatmul.bf16.gmra.mxu3 %v6297_v45  ;;  %v1151_v61 = vpop.f32.mrf.mxu2  ;;  %1405 = vmatpush.bf16.msra.mxu1 %v5200_v8 }
 0x138   : > { %v1064_v54 = vpop.f32.mrf.mxu1 }
 0x139   : > { %v1240_v49 = vpop.f32.mrf.mxu3  ;;  %v6310_v1 = vadd.f32 %v1064_v54, %v975_v9 }
 0x13a   : > { %v6308_v52 = vadd.f32 %v1240_v49, %v1151_v61  ;;  %v6316_v49 = vor.u32 %v5488_v33, %v5009_v36  ;;  %v5152_v33 = vor.u32 %v5525_v62, %v5151_v19  ;;  %v980_v41 = vpop.f32.mrf.mxu0 }
 0x13b   : > { %v1670_v45 = vadd.f32 %v1669_v55, %v6310_v1 }
 0x13c   : > { %v1690_v63 = vadd.f32 %v1689_v43, %v6308_v52  ;;  %9595 = vst [vmem:[#allocation38_spill] sm:$0xff] %v6316_v49  ;;  %1311 = vmatpush.bf16.msrb.mxu0 %v5152_v33 }
 0x13e   : > { %v1153_v57 = vpop.f32.mrf.mxu2 }
 0x140   : > { %v1067_v43 = vpop.f32.mrf.mxu1 }
 0x141   : > { %v1242_v61 = vpop.f32.mrf.mxu3  ;;  %v6320_v39 = vadd.f32 %v1067_v43, %v978_v4  ;;  %v5490_v43 = vld [vmem:[%s6066_s26 + $0xc4] sm:$0xf] }
 0x142   : > { %v6318_v9 = vadd.f32 %v1242_v61, %v1153_v57  ;;  %v5135_v57 = vld [vmem:[#allocation4 + $0xa8] sm:$0xf]  ;;  %v5521_v61 = vld [vmem:[#allocation4 + $0xb4] sm:$0xf0] }
 0x143   : > { %v1671_v54 = vadd.f32 %v1670_v45, %v6320_v39  ;;  %1106 = vmatmul.bf16.gmra.mxu1 %v6316_v49  ;;  %1195 = vmatmul.bf16.gmra.mxu2 %v6139_v20  ;;  %v5017_v20 = vld [vmem:[%s6066_s26 + $0xc8] sm:$0xf0]  ;;  %v5136_v32 = vor.u32 %v5521_v61, %v5135_v57 }
 0x144   : > { %v1691_v55 = vadd.f32 %v1690_v63, %v6318_v9  ;;  %v6335_v62 = vor.u32 %v5490_v43, %v5017_v20  ;;  %v5531_v57 = vld [vmem:[#allocation4 + $0x10c] sm:$0xf] }
 0x145   : > { %1312 = vmatpush.bf16.msrb.mxu0 %v5136_v32  ;;  %v5499_v32 = vld [vmem:[#allocation4 + $0xc] sm:$0xf] }
 0x146   : > { %1284 = vmatmul.bf16.gmra.mxu3 %v6316_v49  ;;  %v1156_v36 = vpop.f32.mrf.mxu2  ;;  %9596 = vst [vmem:[#allocation39_spill] sm:$0xff] %v6335_v62 }
 0x148   : > { %v1069_v63 = vpop.f32.mrf.mxu1 }
 0x149   : > { %v1245_v2 = vpop.f32.mrf.mxu3  ;;  %v6329_v38 = vadd.f32 %v1069_v63, %v980_v41  ;;  %v5517_v63 = vld [vmem:[#allocation4 + $0x94] sm:$0xf0] }
 0x14a   : > { %v6327_v4 = vadd.f32 %v1245_v2, %v1156_v36  ;;  %v5119_v2 = vld [vmem:[#allocation4 + $0x88] sm:$0xf] }
 0x14b   : > { %v1672_v8 = vadd.f32 %v1671_v54, %v6329_v38  ;;  %v5120_v20 = vor.u32 %v5517_v63, %v5119_v2 }
 0x14c   : > { %v1692_v45 = vadd.f32 %v1691_v55, %v6327_v4 }
 0x14d   : > { %1313 = vmatpush.bf16.msrb.mxu0 %v5120_v20 }
 0x14e   : > { %v1158_v49 = vpop.f32.mrf.mxu2 }
 0x150   : > { %v1072_v36 = vpop.f32.mrf.mxu1 }
 0x151   : > { %v1247_v19 = vpop.f32.mrf.mxu3  ;;  %v6340_v41 = vadd.f32 %v1072_v36, %v6188_v7  ;;  %v5185_v7 = vld [vmem:[#allocation4 + $0x118] sm:$0xf0] }
 0x152   : > { %v6337_v33 = vadd.f32 %v1247_v19, %v1158_v49  ;;  %v5057_v49 = vld [vmem:[#allocation4 + $0x18] sm:$0xf0] }
 0x153   : > { %v1673_v54 = vadd.f32 %v1672_v8, %v6340_v41  ;;  %1111 = vmatmul.bf16.gmra.mxu1 %v6335_v62  ;;  %1200 = vmatmul.bf16.gmra.mxu2 %v6086_v47  ;;  %v5060_v61 = vor.u32 %v5499_v32, %v5057_v49  ;;  %v5103_v32 = vld [vmem:[#allocation4 + $0x68] sm:$0xf]  ;;  %v5513_v49 = vld [vmem:[#allocation4 + $0x74] sm:$0xf0] }
 0x154   : > { %v1693_v55 = vadd.f32 %v1692_v45, %v6337_v33  ;;  %v5188_v45 = vor.u32 %v5531_v57, %v5185_v7  ;;  %v5104_v20 = vor.u32 %v5513_v49, %v5103_v32  ;;  %v5533_v57 = vld [vmem:[#allocation4 + $0x114] sm:$0xf0] }
 0x155   : > { %1495 = vmatpush.bf16.msra.mxu2 %v5060_v61 }
 0x156   : > { %1289 = vmatmul.bf16.gmra.mxu3 %v6335_v62  ;;  %v1161_v43 = vpop.f32.mrf.mxu2  ;;  %v5183_v62 = vld [vmem:[#allocation4 + $0x108] sm:$0xf]  ;;  %1314 = vmatpush.bf16.msrb.mxu0 %v5104_v20 }
 0x157   : > { %1584 = vmatpush.bf16.msra.mxu3 %v5188_v45  ;;  %v5184_v7 = vor.u32 %v5533_v57, %v5183_v62  ;;  %v5087_v62 = vld [vmem:[#allocation4 + $0x48] sm:$0xf] }
 0x158   : > { %v1074_v36 = vpop.f32.mrf.mxu1 }
 0x159   : > { %v1250_v8 = vpop.f32.mrf.mxu3  ;;  %v6350_v47 = vadd.f32 %v1074_v36, %v6197_v17  ;;  %1406 = vmatpush.bf16.msra.mxu1 %v5184_v7  ;;  %v5494_v7 = vld [vmem:[%s6066_s26 + $0xe4] sm:$0xf] }
 0x15a   : > { %v6347_v19 = vadd.f32 %v1250_v8, %v1161_v43  ;;  %v6356_v8 = vor.u32 %v5492_v6, %v5025_v16  ;;  %v5509_v6 = vld [vmem:[#allocation4 + $0x54] sm:$0xf0] }
 0x15b   : > { %v1674_v63 = vadd.f32 %v1673_v54, %v6350_v47  ;;  %v5088_v16 = vor.u32 %v5509_v6, %v5087_v62 }
 0x15c   : > { %v1694_v2 = vadd.f32 %v1693_v55, %v6347_v19  ;;  %9597 = vst [vmem:[#allocation40_spill] sm:$0xff] %v6356_v8 }
 0x15d   : > { %1315 = vmatpush.bf16.msrb.mxu0 %v5088_v16 }
 0x15e   : > { %v1163_v61 = vpop.f32.mrf.mxu2 }
 0x160   : > { %v1077_v45 = vpop.f32.mrf.mxu1 }
 0x161   : > { %v1252_v43 = vpop.f32.mrf.mxu3  ;;  %v6361_v55 = vadd.f32 %v1077_v45, %v6207_v34  ;;  %v5505_v45 = vld [vmem:[#allocation4 + $0x34] sm:$0xf0] }
 0x162   : > { %v6358_v17 = vadd.f32 %v1252_v43, %v1163_v61  ;;  %v5033_v61 = vld [vmem:[%s6066_s26 + $0xe8] sm:$0xf0]  ;;  %v5071_v43 = vld [vmem:[#allocation4 + $0x28] sm:$0xf] }
 0x163   : > { %v1675_v36 = vadd.f32 %v1674_v63, %v6361_v55  ;;  %1116 = vmatmul.bf16.gmra.mxu1 %v6356_v8  ;;  %1205 = vmatmul.bf16.gmra.mxu2 %v6101_v28  ;;  %v5072_v28 = vor.u32 %v5505_v45, %v5071_v43  ;;  %v6377_v6 = vor.u32 %v5494_v7, %v5033_v61  ;;  %v5501_v61 = vld [vmem:[#allocation4 + $0x14] sm:$0xf0]  ;;  %v5496_v45 = vld [vmem:[%s6066_s26 + $0xf4] sm:$0xf] }
 0x164   : > { %v1695_v54 = vadd.f32 %v1694_v2, %v6358_v17 }
 0x165   : > { %9598 = vst [vmem:[#allocation41_spill] sm:$0xff] %v6377_v6  ;;  %1316 = vmatpush.bf16.msrb.mxu0 %v5072_v28 }
 0x166   : > { %1294 = vmatmul.bf16.gmra.mxu3 %v6356_v8  ;;  %v1166_v32 = vpop.f32.mrf.mxu2 }
 0x168   : > { %v1079_v20 = vpop.f32.mrf.mxu1 }
 0x169   : > { %v1255_v49 = vpop.f32.mrf.mxu3  ;;  %v6371_v2 = vadd.f32 %v1079_v20, %v6216_v37 }
 0x16a   : > { %v6368_v34 = vadd.f32 %v1255_v49, %v1166_v32 }
 0x16b   : > { %v1676_v57 = vadd.f32 %v1675_v36, %v6371_v2 }
 0x16c   : > { %v1696_v63 = vadd.f32 %v1695_v54, %v6368_v34 }
 0x16e   : > { %v1168_v8 = vpop.f32.mrf.mxu2 }
 0x170   : > { %v1082_v32 = vpop.f32.mrf.mxu1 }
 0x171   : > { %v1257_v62 = vpop.f32.mrf.mxu3  ;;  %v6382_v37 = vadd.f32 %v1082_v32, %v6226_v46  ;;  %v5935_v32 = vmov 128.0  }
 0x172   : > { %v6379_v16 = vadd.f32 %v1257_v62, %v1168_v8  ;;  %v5041_v62 = vld [vmem:[%s6066_s26 + $0xf8] sm:$0xf0]  ;;  %5679 = vrcp.f32 %v5935_v32  ;;  %s9166_s26 = scalar_lea.vmem %s9952_s25, %s5465_s17 }
 0x173   : > { %v1677_v36 = vadd.f32 %v1676_v57, %v6382_v37  ;;  %1121 = vmatmul.bf16.gmra.mxu1 %v6377_v6  ;;  %1210 = vmatmul.bf16.gmra.mxu2 %v6121_v0 }
 0x174   : > { %v1697_v54 = vadd.f32 %v1696_v63, %v6379_v16  ;;  %v5055_v63 = vld [vmem:[#allocation4 + $0x8] sm:$0xf] }
 0x175   : > { %v5056_v43 = vor.u32 %v5501_v61, %v5055_v63 }
 0x176   : > { %1299 = vmatmul.bf16.gmra.mxu3 %v6377_v6  ;;  %v1171_v49 = vpop.f32.mrf.mxu2 }
 0x177   : > { %1317 = vmatpush.bf16.msrb.mxu0 %v5056_v43 }
 0x178   : > { %v1084_v20 = vpop.f32.mrf.mxu1 }
 0x179   : > { %v1260_v28 = vpop.f32.mrf.mxu3  ;;  %v6392_v46 = vadd.f32 %v1084_v20, %v6235_v59 }
 0x17a   : > { %v6389_v8 = vadd.f32 %v1260_v28, %v1171_v49  ;;  %v6398_v49 = vor.u32 %v5496_v45, %v5041_v62  ;;  %1318 = vmatmul.bf16.vlgmr.msrb.gmra.mxu0 %v6108_v53 }
 0x17b   : > { %v1678_v57 = vadd.f32 %v1677_v36, %v6392_v46  ;;  %v5680_v36 = vpop.eup %5679 }
 0x17c   : > { %v1698_v7 = vadd.f32 %v1697_v54, %v6389_v8  ;;  %9599 = vst [vmem:[#allocation42_spill] sm:$0xff] %v6398_v49  ;;  %v1835_v43 = vmul.f32 128.0, %v5680_v36  ;;  %vm1839_vm0 = vweird.f32 %v5680_v36 }
 0x17e   : > { %v1173_v6 = vpop.f32.mrf.mxu2  ;;  %v1836_v32 = vsub.f32 1.0, %v1835_v43 }
 0x180   : > { %v1087_v59 = vpop.f32.mrf.mxu1 }
 0x181   : > { %v1262_v0 = vpop.f32.mrf.mxu3  ;;  %v1088_v54 = vadd.f32 %v1087_v59, %v6245_v10 }
 0x182   : > { %v6400_v28 = vadd.f32 %v1262_v0, %v1173_v6 }
 0x183   : > { %v1679_v63 = vadd.f32 %v1678_v57, %v1088_v54  ;;  %1126 = vmatmul.bf16.gmra.mxu1 %v6398_v49  ;;  %1215 = vmatmul.bf16.gmra.mxu2 %v6141_v21  ;;  %v1837_v57 = vmul.f32 %v5680_v36, %v1836_v32 }
 0x184   : > { %v1699_v20 = vadd.f32 %v1698_v7, %v6400_v28 }
 0x186   : > { %1304 = vmatmul.bf16.gmra.mxu3 %v6398_v49  ;;  %v1176_v61 = vpop.f32.mrf.mxu2 }
 0x188   : > { %v1089_v6 = vpop.f32.mrf.mxu1 }
 0x189   : > { %v1265_v45 = vpop.f32.mrf.mxu3  ;;  %v1090_v62 = vadd.f32 %v1089_v6, %v6254_v18 }
 0x18a   : > { %v6408_v0 = vadd.f32 %v1265_v45, %v1176_v61  ;;  %1323 = vmatmul.bf16.gmra.mxu0 %v6128_v12  ;;  %v1838_v61 = vadd.f32 %v5680_v36, %v1837_v57 }
 0x18b   : > { %v1680_v7 = vadd.f32 %v1679_v63, %v1090_v62 }
 0x18c   : > { %v1700_v10 = vadd.f32 %v1699_v20, %v6408_v0  ;;  %v6419_v63 = vsel %vm1839_vm0, %v5680_v36, %v1838_v61 }
 0x18d   : > { %v1681_v59 = vrot.slane %v1680_v7, 4 }
 0x18e   : > { %v1178_v23 = vpop.f32.mrf.mxu2 }
 0x18f   : > { %v1682_v29 = vadd.f32 %v1681_v59, %v1680_v7 }
 0x190   : > { %v1092_v49 = vpop.f32.mrf.mxu1 }
 0x191   : > { %v1267_v3 = vpop.f32.mrf.mxu3  ;;  %v1683_v13 = vrot.slane %v1682_v29, 2 }
 0x192   : > { %v6412_v21 = vadd.f32 %v1267_v3, %v1178_v23 }
 0x193   : > { %v1684_v42 = vadd.f32 %v1683_v13, %v1682_v29  ;;  %1407 = vmatmul.bf16.vlgmr.msra.gmra.mxu1 %v6153_v30  ;;  %1496 = vmatmul.bf16.vlgmr.msra.gmra.mxu2 %v6108_v53 }
 0x194   : > { %v1701_v45 = vadd.f32 %v1700_v10, %v6412_v21 }
 0x195   : > { %v1685_v20 = vrot.slane %v1684_v42, 1 }
 0x196   : > { %v1702_v18 = vrot.slane %v1701_v45, 4  ;;  %1585 = vmatmul.bf16.vlgmr.msra.gmra.mxu3 %v6153_v30  ;;  %v1181_v3 = vpop.f32.mrf.mxu2 }
 0x197   : > { %v1686_v43 = vadd.f32 %v1685_v20, %v1684_v42 }
 0x198   : > { %v1703_v23 = vadd.f32 %v1702_v18, %v1701_v45  ;;  %v1094_v7 = vpop.f32.mrf.mxu1 }
 0x199   : > { %v1270_v6 = vpop.f32.mrf.mxu3  ;;  %v1841_v13 = vmul.f32 %v6419_v63, %v1686_v43 }
 0x19a   : > { %v6421_v32 = vadd.f32 %v1270_v6, %v1181_v3  ;;  %v1704_v29 = vrot.slane %v1703_v23, 2  ;;  %1328 = vmatmul.bf16.gmra.mxu0 %v6148_v26 }
 0x19b   : > { %v6425_v10 = vsub.f32 %v6264_v50, %v1841_v13  ;;  %v6428_v53 = vsub.f32 %v6271_v27, %v1841_v13  ;;  %v6431_v30 = vsub.f32 %v6281_v22, %v1841_v13  ;;  %v6434_v36 = vsub.f32 %v6291_v25, %v1841_v13 }
 0x19c   : > { %v6437_v42 = vsub.f32 %v6301_v58, %v1841_v13  ;;  %v6440_v59 = vsub.f32 %v6310_v1, %v1841_v13  ;;  %v6443_v57 = vsub.f32 %v6320_v39, %v1841_v13  ;;  %v6446_v50 = vsub.f32 %v6329_v38, %v1841_v13 }
 0x19d   : > { %9600 = vst [vmem:[#allocation43_spill] sm:$0xff] %v6425_v10  ;;  %v6449_v27 = vsub.f32 %v6340_v41, %v1841_v13  ;;  %v6452_v22 = vsub.f32 %v6350_v47, %v1841_v13  ;;  %v6455_v25 = vsub.f32 %v6361_v55, %v1841_v13  ;;  %v6458_v58 = vsub.f32 %v6371_v2, %v1841_v13 }
 0x19e   : > { %9601 = vst [vmem:[#allocation44_spill] sm:$0xff] %v6428_v53  ;;  %v6461_v1 = vsub.f32 %v6382_v37, %v1841_v13  ;;  %v6464_v39 = vsub.f32 %v6392_v46, %v1841_v13  ;;  %v6466_v38 = vsub.f32 %v1088_v54, %v1841_v13  ;;  %v6468_v61 = vsub.f32 %v1090_v62, %v1841_v13  ;;  %v1183_v41 = vpop.f32.mrf.mxu2 }
 0x19f   : > { %9602 = vst [vmem:[#allocation45_spill] sm:$0xff] %v6431_v30  ;;  %v1705_v45 = vadd.f32 %v1704_v29, %v1703_v23  ;;  %v6471_v47 = vadd.f32 %v1094_v7, %v6201_v31  ;;  %v6475_v2 = vadd.f32 %v1092_v49, %v6193_v14 }
 0x1a0   : > { %9603 = vst [vmem:[#allocation46_spill] sm:$0xff] %v6434_v36  ;;  %v1097_v18 = vpop.f32.mrf.mxu1 }
 0x1a1   : > { %9604 = vst [vmem:[#allocation47_spill] sm:$0xff] %v6437_v42  ;;  %v1272_v55 = vpop.f32.mrf.mxu3  ;;  %v1706_v37 = vrot.slane %v1705_v45, 1  ;;  %v1750_v46 = vadd.f32 %v6471_v47, %v6475_v2  ;;  %v6484_v31 = vadd.f32 %v1097_v18, %v6212_v35 }
 0x1a2   : > { %9605 = vst [vmem:[#allocation48_spill] sm:$0xff] %v6440_v59  ;;  %v6479_v54 = vadd.f32 %v1272_v55, %v1183_v41 }
 0x1a3   : > { %9606 = vst [vmem:[#allocation49_spill] sm:$0xff] %v6443_v57  ;;  %1412 = vmatmul.bf16.gmra.mxu1 %v6165_v48  ;;  %1501 = vmatmul.bf16.gmra.mxu2 %v6128_v12  ;;  %v1707_v62 = vadd.f32 %v1706_v37, %v1705_v45  ;;  %v1751_v49 = vadd.f32 %v1750_v46, %v6484_v31 }
 0x1a4   : > { %9607 = vst [vmem:[#allocation50_spill] sm:$0xff] %v6446_v50  ;;  %v1771_v14 = vadd.f32 %v6479_v54, %v6421_v32 }
 0x1a5   : > { %9608 = vst [vmem:[#allocation51_spill] sm:$0xff] %v6449_v27  ;;  %v1842_v23 = vmul.f32 %v6419_v63, %v1707_v62 }
 0x1a6   : > { %9609 = vst [vmem:[#allocation52_spill] sm:$0xff] %v6452_v22  ;;  %1590 = vmatmul.bf16.gmra.mxu3 %v6165_v48  ;;  %v1186_v20 = vpop.f32.mrf.mxu2 }
 0x1a7   : > { %9610 = vst [vmem:[#allocation53_spill] sm:$0xff] %v6455_v25  ;;  %v6494_v12 = vsub.f32 %v6269_v11, %v1842_v23  ;;  %v6497_v35 = vsub.f32 %v6279_v60, %v1842_v23  ;;  %v6500_v48 = vsub.f32 %v6289_v15, %v1842_v23  ;;  %v6503_v7 = vsub.f32 %v6299_v24, %v1842_v23 }
 0x1a8   : > { %9611 = vst [vmem:[#allocation54_spill] sm:$0xff] %v6458_v58  ;;  %v1099_v6 = vpop.f32.mrf.mxu1  ;;  %v6506_v13 = vsub.f32 %v6308_v52, %v1842_v23  ;;  %v6509_v29 = vsub.f32 %v6318_v9, %v1842_v23  ;;  %v6512_v41 = vsub.f32 %v6327_v4, %v1842_v23  ;;  %v6515_v11 = vsub.f32 %v6337_v33, %v1842_v23 }
 0x1a9   : > { %9612 = vst [vmem:[#allocation55_spill] sm:$0xff] %v6461_v1  ;;  %v1275_v3 = vpop.f32.mrf.mxu3  ;;  %v6518_v60 = vsub.f32 %v6347_v19, %v1842_v23  ;;  %v6521_v15 = vsub.f32 %v6358_v17, %v1842_v23  ;;  %v6524_v24 = vsub.f32 %v6368_v34, %v1842_v23  ;;  %v6527_v52 = vsub.f32 %v6379_v16, %v1842_v23 }
 0x1aa   : > { %9613 = vst [vmem:[#allocation56_spill] sm:$0xff] %v6464_v39  ;;  %v6491_v43 = vadd.f32 %v1275_v3, %v1186_v20  ;;  %v6530_v9 = vsub.f32 %v6389_v8, %v1842_v23  ;;  %v6533_v4 = vsub.f32 %v6400_v28, %v1842_v23  ;;  %v6536_v33 = vsub.f32 %v6408_v0, %v1842_v23  ;;  %v9632_v3 = vld [vmem:[#allocation8_spill] sm:$0xff] }
 0x1ab   : > { %9614 = vst [vmem:[#allocation57_spill] sm:$0xff] %v6466_v38  ;;  %v6539_v19 = vsub.f32 %v6412_v21, %v1842_v23  ;;  %1333 = vmatmul.bf16.gmra.mxu0 %v6160_v44  ;;  %v6544_v16 = vadd.f32 %v1099_v6, %v6220_v40  ;;  %v9633_v6 = vld [vmem:[#allocation31_spill] sm:$0xff]  ;;  %v9642_v39 = vld [vmem:[#allocation24_spill] sm:$0xff] }
 0x1ac   : > { %9615 = vst [vmem:[#allocation58_spill] sm:$0xff] %v6468_v61  ;;  %v1772_v34 = vadd.f32 %v1771_v14, %v6491_v43 }
 0x1ad   : > { %9616 = vst [vmem:[#allocation59_spill] sm:$0xff] %v6494_v12  ;;  %v1752_v21 = vadd.f32 %v1751_v49, %v6544_v16 }
 0x1ae   : > { %9617 = vst [vmem:[#allocation60_spill] sm:$0xff] %v6497_v35  ;;  %v1188_v17 = vpop.f32.mrf.mxu2 }
 0x1af   : > { %9618 = vst [vmem:[#allocation61_spill] sm:$0xff] %v6500_v48 }
 0x1b0   : > { %9619 = vst [vmem:[#allocation62_spill] sm:$0xff] %v6503_v7  ;;  %v1102_v55 = vpop.f32.mrf.mxu1 }
 0x1b1   : > { %9620 = vst [vmem:[#allocation63_spill] sm:$0xff] %v6506_v13  ;;  %v1277_v45 = vpop.f32.mrf.mxu3  ;;  %v6549_v28 = vadd.f32 %v1102_v55, %v6231_v56 }
 0x1b2   : > { %9621 = vst [vmem:[#allocation64_spill] sm:$0xff] %v6509_v29  ;;  %v6546_v8 = vadd.f32 %v1277_v45, %v1188_v17 }
 0x1b3   : > { %9622 = vst [vmem:[#allocation65_spill] sm:$0xff] %v6512_v41  ;;  %1417 = vmatmul.bf16.gmra.mxu1 %v6172_v51  ;;  %1506 = vmatmul.bf16.gmra.mxu2 %v6148_v26  ;;  %v1753_v18 = vadd.f32 %v1752_v21, %v6549_v28 }
 0x1b4   : > { %9623 = vst [vmem:[#allocation66_spill] sm:$0xff] %v6515_v11  ;;  %v1773_v0 = vadd.f32 %v1772_v34, %v6546_v8 }
 0x1b5   : > { %9624 = vst [vmem:[#allocation67_spill] sm:$0xff] %v6518_v60 }
 0x1b6   : > { %9625 = vst [vmem:[#allocation68_spill] sm:$0xff] %v6521_v15  ;;  %1595 = vmatmul.bf16.gmra.mxu3 %v6172_v51  ;;  %v1191_v37 = vpop.f32.mrf.mxu2  ;;  %v9650_v15 = vld [vmem:[#allocation30_spill] sm:$0xff] }
 0x1b7   : > { %9626 = vst [vmem:[#allocation69_spill] sm:$0xff] %v6524_v24  ;;  %v9648_v24 = vld [vmem:[#allocation9_spill] sm:$0xff] }
 0x1b8   : > { %9627 = vst [vmem:[#allocation70_spill] sm:$0xff] %v6527_v52  ;;  %v1104_v62 = vpop.f32.mrf.mxu1 }
 0x1b9   : > { %9628 = vst [vmem:[#allocation71_spill] sm:$0xff] %v6530_v9  ;;  %v1280_v40 = vpop.f32.mrf.mxu3  ;;  %v6560_v56 = vadd.f32 %v1104_v62, %v6239_v5  ;;  %v9634_v5 = vld [vmem:[#allocation20_spill] sm:$0xff] }
 0x1ba   : > { %9629 = vst [vmem:[#allocation72_spill] sm:$0xff] %v6533_v4  ;;  %v6557_v46 = vadd.f32 %v1280_v40, %v1191_v37  ;;  %v9635_v37 = vld [vmem:[#allocation33_spill] sm:$0xff] }
 0x1bb   : > { %9630 = vst [vmem:[#allocation73_spill] sm:$0xff] %v6536_v33  ;;  %v1754_v26 = vadd.f32 %v1753_v18, %v6560_v56  ;;  %1338 = vmatmul.bf16.gmra.mxu0 %v9632_v3 }
 0x1bc   : > { %9631 = vst [vmem:[#allocation74_spill] sm:$0xff] %v6539_v19  ;;  %v1774_v14 = vadd.f32 %v1773_v0, %v6557_v46 }
 0x1be   : > { %v1193_v20 = vpop.f32.mrf.mxu2 }
 0x1c0   : > { %v1107_v51 = vpop.f32.mrf.mxu1 }
 0x1c1   : > { %v1282_v49 = vpop.f32.mrf.mxu3  ;;  %v6568_v17 = vadd.f32 %v1107_v51, %v9633_v6  ;;  %v9637_v6 = vld [vmem:[#allocation22_spill] sm:$0xff] }
 0x1c2   : > { %v6564_v23 = vadd.f32 %v1282_v49, %v1193_v20 }
 0x1c3   : > { %v1755_v55 = vadd.f32 %v1754_v26, %v6568_v17  ;;  %1422 = vmatmul.bf16.gmra.mxu1 %v9634_v5  ;;  %1511 = vmatmul.bf16.gmra.mxu2 %v6160_v44  ;;  %v9636_v44 = vld [vmem:[#allocation11_spill] sm:$0xff] }
 0x1c4   : > { %v1775_v45 = vadd.f32 %v1774_v14, %v6564_v23 }
 0x1c6   : > { %1600 = vmatmul.bf16.gmra.mxu3 %v9634_v5  ;;  %v1196_v34 = vpop.f32.mrf.mxu2 }
 0x1c8   : > { %v1109_v18 = vpop.f32.mrf.mxu1 }
 0x1c9   : > { %v1285_v21 = vpop.f32.mrf.mxu3  ;;  %v6578_v40 = vadd.f32 %v1109_v18, %v9635_v37  ;;  %v9638_v18 = vld [vmem:[#allocation21_spill] sm:$0xff] }
 0x1ca   : > { %v6575_v0 = vadd.f32 %v1285_v21, %v1196_v34 }
 0x1cb   : > { %v1756_v14 = vadd.f32 %v1755_v55, %v6578_v40  ;;  %1343 = vmatmul.bf16.gmra.mxu0 %v9636_v44 }
 0x1cc   : > { %v1776_v62 = vadd.f32 %v1775_v45, %v6575_v0 }
 0x1ce   : > { %v1198_v20 = vpop.f32.mrf.mxu2 }
 0x1d0   : > { %v1112_v51 = vpop.f32.mrf.mxu1 }
 0x1d1   : > { %v1287_v26 = vpop.f32.mrf.mxu3  ;;  %v6586_v5 = vadd.f32 %v1112_v51, %v9637_v6  ;;  %v5569_v6 = vld [vmem:[%s9370_s4 + $0x38] sm:$0xff] }
 0x1d2   : > { %v6582_v49 = vadd.f32 %v1287_v26, %v1198_v20  ;;  %v9639_v26 = vld [vmem:[#allocation23_spill] sm:$0xff]  ;;  %3449 = vmatpush.bf16.msra.mxu0 %v5569_v6 }
 0x1d3   : > { %v1757_v21 = vadd.f32 %v1756_v14, %v6586_v5  ;;  %1427 = vmatmul.bf16.gmra.mxu1 %v9638_v18  ;;  %1516 = vmatmul.bf16.gmra.mxu2 %v9632_v3  ;;  %v5585_v14 = vld [vmem:[%s9370_s4 + $0xb8] sm:$0xff] }
 0x1d4   : > { %v1777_v34 = vadd.f32 %v1776_v62, %v6582_v49  ;;  %v5593_v3 = vld [vmem:[%s9370_s4 + $0xf8] sm:$0xff]  ;;  %3627 = vmatpush.bf16.msrb.mxu2 %v5585_v14 }
 0x1d5   : > { %3716 = vmatpush.bf16.msrb.mxu3 %v5593_v3 }
 0x1d6   : > { %1605 = vmatmul.bf16.gmra.mxu3 %v9638_v18  ;;  %v1201_v45 = vpop.f32.mrf.mxu2  ;;  %v5577_v18 = vld [vmem:[%s9370_s4 + $0x78] sm:$0xff] }
 0x1d7   : > { %3538 = vmatpush.bf16.msrb.mxu1 %v5577_v18 }
 0x1d8   : > { %v1114_v20 = vpop.f32.mrf.mxu1 }
 0x1d9   : > { %v1290_v55 = vpop.f32.mrf.mxu3  ;;  %v6596_v61 = vadd.f32 %v1114_v20, %v9639_v26  ;;  %v9640_v20 = vld [vmem:[#allocation14_spill] sm:$0xff]  ;;  %v9641_v26 = vld [vmem:[#allocation25_spill] sm:$0xff] }
 0x1da   : > { %v6593_v37 = vadd.f32 %v1290_v55, %v1201_v45 }
 0x1db   : > { %v1758_v62 = vadd.f32 %v1757_v21, %v6596_v61  ;;  %1348 = vmatmul.bf16.gmra.mxu0 %v9640_v20 }
 0x1dc   : > { %v1778_v51 = vadd.f32 %v1777_v34, %v6593_v37 }
 0x1de   : > { %v1203_v34 = vpop.f32.mrf.mxu2 }
 0x1e0   : > { %v1117_v55 = vpop.f32.mrf.mxu1 }
 0x1e1   : > { %v1292_v21 = vpop.f32.mrf.mxu3  ;;  %v6616_v19 = vadd.f32 %v1117_v55, %v9641_v26 }
 0x1e2   : > { %v6612_v45 = vadd.f32 %v1292_v21, %v1203_v34  ;;  %v9643_v34 = vld [vmem:[#allocation26_spill] sm:$0xff] }
 0x1e3   : > { %v1759_v33 = vadd.f32 %v1758_v62, %v6616_v19  ;;  %1432 = vmatmul.bf16.gmra.mxu1 %v9642_v39  ;;  %1521 = vmatmul.bf16.gmra.mxu2 %v9636_v44  ;;  %v9644_v44 = vld [vmem:[#allocation17_spill] sm:$0xff] }
 0x1e4   : > { %v1779_v38 = vadd.f32 %v1778_v51, %v6612_v45 }
 0x1e6   : > { %1610 = vmatmul.bf16.gmra.mxu3 %v9642_v39  ;;  %v1206_v14 = vpop.f32.mrf.mxu2  ;;  %v9645_v39 = vld [vmem:[#allocation28_spill] sm:$0xff] }
 0x1e8   : > { %v1119_v18 = vpop.f32.mrf.mxu1 }
 0x1e9   : > { %v1295_v3 = vpop.f32.mrf.mxu3  ;;  %v6626_v21 = vadd.f32 %v1119_v18, %v9643_v34  ;;  %v9646_v18 = vld [vmem:[#allocation27_spill] sm:$0xff] }
 0x1ea   : > { %v6623_v6 = vadd.f32 %v1295_v3, %v1206_v14 }
 0x1eb   : > { %v1760_v51 = vadd.f32 %v1759_v33, %v6626_v21  ;;  %1353 = vmatmul.bf16.gmra.mxu0 %v9644_v44 }
 0x1ec   : > { %v1780_v55 = vadd.f32 %v1779_v38, %v6623_v6 }
 0x1ee   : > { %v1208_v26 = vpop.f32.mrf.mxu2 }
 0x1f0   : > { %v1122_v1 = vpop.f32.mrf.mxu1 }
 0x1f1   : > { %v1297_v62 = vpop.f32.mrf.mxu3  ;;  %v6634_v9 = vadd.f32 %v1122_v1, %v9645_v39 }
 0x1f2   : > { %v6630_v4 = vadd.f32 %v1297_v62, %v1208_v26  ;;  %v9647_v62 = vld [vmem:[#allocation29_spill] sm:$0xff] }
 0x1f3   : > { %v1761_v3 = vadd.f32 %v1760_v51, %v6634_v9  ;;  %1437 = vmatmul.bf16.gmra.mxu1 %v9646_v18  ;;  %1526 = vmatmul.bf16.gmra.mxu2 %v9640_v20 }
 0x1f4   : > { %v1781_v14 = vadd.f32 %v1780_v55, %v6630_v4 }
 0x1f6   : > { %1615 = vmatmul.bf16.gmra.mxu3 %v9646_v18  ;;  %v1211_v38 = vpop.f32.mrf.mxu2  ;;  %v9649_v18 = vld [vmem:[#allocation32_spill] sm:$0xff] }
 0x1f7   : > { %v1319_v39 = vpop.f32.mrf.mxu0 }
 0x1f8   : > { %v1124_v26 = vpop.f32.mrf.mxu1 }
 0x1f9   : > { %v1300_v33 = vpop.f32.mrf.mxu3  ;;  %v6644_v58 = vadd.f32 %v1124_v26, %v9647_v62 }
 0x1fa   : > { %v6641_v34 = vadd.f32 %v1300_v33, %v1211_v38 }
 0x1fb   : > { %v1762_v55 = vadd.f32 %v1761_v3, %v6644_v58  ;;  %1358 = vmatmul.bf16.gmra.mxu0 %v9648_v24 }
 0x1fc   : > { %v1782_v1 = vadd.f32 %v1781_v14, %v6641_v34 }
 0x1fe   : > { %v1213_v51 = vpop.f32.mrf.mxu2 }
 0x1ff   : > { %v1321_v14 = vpop.f32.mrf.mxu0 }
 0x200   : > { %v1127_v20 = vpop.f32.mrf.mxu1 }
 0x201   : > { %v1302_v52 = vpop.f32.mrf.mxu3  ;;  %v1128_v22 = vadd.f32 %v1127_v20, %v9649_v18 }
 0x202   : > { %v6648_v25 = vadd.f32 %v1302_v52, %v1213_v51  ;;  %v9651_v51 = vld [vmem:[#allocation34_spill] sm:$0xff] }
 0x203   : > { %v1763_v33 = vadd.f32 %v1762_v55, %v1128_v22  ;;  %1442 = vmatmul.bf16.gmra.mxu1 %v9650_v15  ;;  %1531 = vmatmul.bf16.gmra.mxu2 %v9644_v44 }
 0x204   : > { %v1783_v38 = vadd.f32 %v1782_v1, %v6648_v25 }
 0x206   : > { %1620 = vmatmul.bf16.gmra.mxu3 %v9650_v15  ;;  %v1216_v3 = vpop.f32.mrf.mxu2  ;;  %v9652_v15 = vld [vmem:[#allocation12_spill] sm:$0xff] }
 0x207   : > { %v1324_v1 = vpop.f32.mrf.mxu0 }
 0x208   : > { %v1129_v52 = vpop.f32.mrf.mxu1 }
 0x209   : > { %v1305_v26 = vpop.f32.mrf.mxu3  ;;  %v1130_v27 = vadd.f32 %v1129_v52, %v9651_v51  ;;  %v9653_v52 = vld [vmem:[#allocation35_spill] sm:$0xff] }
 0x20a   : > { %v6656_v62 = vadd.f32 %v1305_v26, %v1216_v3 }
 0x20b   : > { %v1764_v20 = vadd.f32 %v1763_v33, %v1130_v27  ;;  %1363 = vmatmul.bf16.gmra.mxu0 %v9652_v15 }
 0x20c   : > { %v1784_v60 = vadd.f32 %v1783_v38, %v6656_v62 }
 0x20d   : > { %v1765_v18 = vrot.slane %v1764_v20, 4 }
 0x20e   : > { %v1218_v55 = vpop.f32.mrf.mxu2 }
 0x20f   : > { %v1766_v50 = vadd.f32 %v1765_v18, %v1764_v20  ;;  %v6669_v51 = vpop.f32.mrf.mxu0 }
 0x210   : > { %v1408_v44 = vpop.f32.mrf.mxu1 }
 0x211   : > { %v1307_v11 = vpop.f32.mrf.mxu3  ;;  %v1767_v41 = vrot.slane %v1766_v50, 2  ;;  %v6663_v59 = vadd.f32 %v1408_v44, %v1319_v39 }
 0x212   : > { %v6660_v57 = vadd.f32 %v1307_v11, %v1218_v55 }
 0x213   : > { %v1768_v26 = vadd.f32 %v1767_v41, %v1766_v50  ;;  %1447 = vmatmul.bf16.gmra.mxu1 %v9653_v52  ;;  %1536 = vmatmul.bf16.gmra.mxu2 %v9648_v24 }
 0x214   : > { %v1785_v3 = vadd.f32 %v1784_v60, %v6660_v57 }
 0x215   : > { %v1769_v33 = vrot.slane %v1768_v26, 1 }
 0x216   : > { %v1786_v38 = vrot.slane %v1785_v3, 4  ;;  %1625 = vmatmul.bf16.gmra.mxu3 %v9653_v52  ;;  %v1497_v20 = vpop.f32.mrf.mxu2 }
 0x217   : > { %v1770_v18 = vadd.f32 %v1769_v33, %v1768_v26 }
 0x218   : > { %v1787_v11 = vadd.f32 %v1786_v38, %v1785_v3  ;;  %v1410_v39 = vpop.f32.mrf.mxu1 }
 0x219   : > { %v1586_v55 = vpop.f32.mrf.mxu3  ;;  %v1845_v60 = vmul.f32 %v6419_v63, %v1770_v18  ;;  %v6674_v50 = vadd.f32 %v1410_v39, %v1321_v14 }
 0x21a   : > { %v6671_v29 = vadd.f32 %v1586_v55, %v1497_v20  ;;  %v1788_v41 = vrot.slane %v1787_v11, 2 }
 0x21b   : > { %v6677_v24 = vsub.f32 %v6475_v2, %v1845_v60  ;;  %v6680_v44 = vsub.f32 %v6471_v47, %v1845_v60  ;;  %v6683_v52 = vsub.f32 %v6484_v31, %v1845_v60  ;;  %v6686_v3 = vsub.f32 %v6544_v16, %v1845_v60 }
 0x21c   : > { %9654 = vst [vmem:[#allocation8_spill] sm:$0xff] %v6671_v29  ;;  %v6689_v26 = vsub.f32 %v6549_v28, %v1845_v60  ;;  %v6692_v38 = vsub.f32 %v6560_v56, %v1845_v60  ;;  %v6695_v14 = vsub.f32 %v6568_v17, %v1845_v60  ;;  %v6698_v2 = vsub.f32 %v6578_v40, %v1845_v60  ;;  %v1329_v56 = vpop.f32.mrf.mxu0 }
 0x21d   : > { %9655 = vst [vmem:[#allocation31_spill] sm:$0xff] %v6677_v24  ;;  %v6701_v47 = vsub.f32 %v6586_v5, %v1845_v60  ;;  %v6704_v31 = vsub.f32 %v6596_v61, %v1845_v60  ;;  %v6707_v16 = vsub.f32 %v6616_v19, %v1845_v60  ;;  %v6710_v28 = vsub.f32 %v6626_v21, %v1845_v60  ;;  %v9671_v19 = vld [vmem:[#allocation15_spill] sm:$0xff] }
 0x21e   : > { %9656 = vst [vmem:[#allocation20_spill] sm:$0xff] %v6680_v44  ;;  %v6713_v33 = vsub.f32 %v6634_v9, %v1845_v60  ;;  %v6716_v17 = vsub.f32 %v6644_v58, %v1845_v60  ;;  %v6718_v40 = vsub.f32 %v1128_v22, %v1845_v60  ;;  %v6720_v5 = vsub.f32 %v1130_v27, %v1845_v60  ;;  %v1499_v20 = vpop.f32.mrf.mxu2  ;;  %v9673_v9 = vld [vmem:[#allocation36_spill] sm:$0xff] }
 0x21f   : > { %9657 = vst [vmem:[#allocation33_spill] sm:$0xff] %v6683_v52  ;;  %v1789_v61 = vadd.f32 %v1788_v41, %v1787_v11  ;;  %1368 = vmatmul.bf16.gmra.mxu0 %v9671_v19  ;;  %v1708_v21 = vadd.f32 %v6674_v50, %v6663_v59 }
 0x220   : > { %9658 = vst [vmem:[#allocation11_spill] sm:$0xff] %v6686_v3  ;;  %v1413_v55 = vpop.f32.mrf.mxu1 }
 0x221   : > { %9659 = vst [vmem:[#allocation22_spill] sm:$0xff] %v6689_v26  ;;  %v1588_v18 = vpop.f32.mrf.mxu3  ;;  %v1790_v39 = vrot.slane %v1789_v61, 1  ;;  %v6729_v22 = vadd.f32 %v1413_v55, %v1324_v1 }
 0x222   : > { %9660 = vst [vmem:[#allocation21_spill] sm:$0xff] %v6692_v38 }
 0x223   : > { %9661 = vst [vmem:[#allocation23_spill] sm:$0xff] %v6695_v14  ;;  %1452 = vmatmul.bf16.gmra.mxu1 %v9673_v9  ;;  %1541 = vmatmul.bf16.gmra.mxu2 %v9652_v15  ;;  %v1791_v27 = vadd.f32 %v1790_v39, %v1789_v61  ;;  %v1709_v60 = vadd.f32 %v1708_v21, %v6729_v22 }
 0x224   : > { %9662 = vst [vmem:[#allocation14_spill] sm:$0xff] %v6698_v2  ;;  %v6734_v11 = vpop.f32.mrf.mxu0  ;;  %v5582_v2 = vld [vmem:[%s9370_s4 + $0xa0] sm:$0xff] }
 0x225   : > { %9663 = vst [vmem:[#allocation25_spill] sm:$0xff] %v6701_v47 }
 0x226   : > { %9664 = vst [vmem:[#allocation24_spill] sm:$0xff] %v6704_v31  ;;  %1630 = vmatmul.bf16.gmra.mxu3 %v9673_v9  ;;  %v1502_v41 = vpop.f32.mrf.mxu2  ;;  %v5576_v31 = vld [vmem:[%s9370_s4 + $0x70] sm:$0xff] }
 0x227   : > { %9665 = vst [vmem:[#allocation26_spill] sm:$0xff] %v6707_v16  ;;  %v5592_v16 = vld [vmem:[%s9370_s4 + $0xf0] sm:$0xff]  ;;  %3539 = vmatpush.bf16.msrb.mxu1 %v5576_v31  ;;  %v5590_v31 = vld [vmem:[%s9370_s4 + $0xe0] sm:$0xff] }
 0x228   : > { %9666 = vst [vmem:[#allocation17_spill] sm:$0xff] %v6710_v28  ;;  %v6725_v28 = vadd.f32 %v1588_v18, %v1499_v20  ;;  %v1846_v20 = vmul.f32 %v6419_v63, %v1791_v27  ;;  %3717 = vmatpush.bf16.msrb.mxu3 %v5592_v16  ;;  %v5575_v16 = vld [vmem:[%s9370_s4 + $0x68] sm:$0xff] }
 0x229   : > { %9667 = vst [vmem:[#allocation28_spill] sm:$0xff] %v6713_v33  ;;  %v1591_v18 = vpop.f32.mrf.mxu3 }
 0x22a   : > { %9668 = vst [vmem:[#allocation27_spill] sm:$0xff] %v6716_v17  ;;  %v1729_v58 = vadd.f32 %v6725_v28, %v6671_v29  ;;  %v6741_v1 = vsub.f32 %v6421_v32, %v1846_v20  ;;  %v6744_v15 = vsub.f32 %v6479_v54, %v1846_v20  ;;  %v6747_v61 = vsub.f32 %v6491_v43, %v1846_v20 }
 0x22b   : > { %9669 = vst [vmem:[#allocation29_spill] sm:$0xff] %v6718_v40  ;;  %v1415_v40 = vpop.f32.mrf.mxu1  ;;  %v6750_v55 = vsub.f32 %v6546_v8, %v1846_v20  ;;  %v6753_v39 = vsub.f32 %v6557_v46, %v1846_v20  ;;  %v6756_v21 = vsub.f32 %v6564_v23, %v1846_v20  ;;  %v6759_v9 = vsub.f32 %v6575_v0, %v1846_v20 }
 0x22c   : > { %9670 = vst [vmem:[#allocation9_spill] sm:$0xff] %v6720_v5  ;;  %v6738_v5 = vadd.f32 %v1591_v18, %v1502_v41  ;;  %v6762_v32 = vsub.f32 %v6582_v49, %v1846_v20  ;;  %v6765_v54 = vsub.f32 %v6593_v37, %v1846_v20  ;;  %v6768_v43 = vsub.f32 %v6612_v45, %v1846_v20  ;;  %v6788_v45 = vpop.f32.mrf.mxu0  ;;  %v9691_v18 = vld [vmem:[#allocation18_spill] sm:$0xff] }
 0x22d   : > { %9672 = vst [vmem:[#allocation32_spill] sm:$0xff] %v6725_v28  ;;  %v6771_v8 = vsub.f32 %v6623_v6, %v1846_v20  ;;  %v6774_v46 = vsub.f32 %v6630_v4, %v1846_v20  ;;  %v6777_v23 = vsub.f32 %v6641_v34, %v1846_v20  ;;  %v6780_v0 = vsub.f32 %v6648_v25, %v1846_v20  ;;  %v9700_v28 = vld [vmem:[#allocation40_spill] sm:$0xff] }
 0x22e   : > { %9674 = vst [vmem:[#allocation30_spill] sm:$0xff] %v6738_v5  ;;  %v6783_v49 = vsub.f32 %v6656_v62, %v1846_v20  ;;  %v6786_v37 = vsub.f32 %v6660_v57, %v1846_v20  ;;  %v1504_v27 = vpop.f32.mrf.mxu2  ;;  %v1730_v4 = vadd.f32 %v1729_v58, %v6738_v5  ;;  %v6793_v34 = vadd.f32 %v1415_v40, %v6669_v51  ;;  %v9693_v62 = vld [vmem:[#allocation37_spill] sm:$0xff]  ;;  %v9699_v5 = vld [vmem:[#allocation16_spill] sm:$0xff] }
 0x22f   : > { %9675 = vst [vmem:[#allocation34_spill] sm:$0xff] %v6741_v1  ;;  %1373 = vmatmul.bf16.gmra.mxu0 %v9691_v18  ;;  %3540 = vmatpush.bf16.msrb.mxu1 %v5575_v16  ;;  %v5581_v16 = vld [vmem:[%s9370_s4 + $0x98] sm:$0xff]  ;;  %v1986_v29 = vmul.f32 %v6500_v48, %v6500_v48 }
 0x230   : > { %9676 = vst [vmem:[#allocation12_spill] sm:$0xff] %v6744_v15  ;;  %v1710_v57 = vadd.f32 %v1709_v60, %v6793_v34 }
 0x231   : > { %9677 = vst [vmem:[#allocation35_spill] sm:$0xff] %v6747_v61  ;;  %v1593_v6 = vpop.f32.mrf.mxu3 }
 0x232   : > { %9678 = vst [vmem:[#allocation15_spill] sm:$0xff] %v6750_v55  ;;  %v6795_v25 = vadd.f32 %v1593_v6, %v1504_v27 }
 0x233   : > { %9679 = vst [vmem:[#allocation36_spill] sm:$0xff] %v6753_v39  ;;  %v1418_v41 = vpop.f32.mrf.mxu1  ;;  %1457 = vmatmul.bf16.gmra.mxu1 %v9693_v62  ;;  %1546 = vmatmul.bf16.gmra.mxu2 %v9671_v19 }
 0x234   : > { %9680 = vst [vmem:[#allocation75_spill] sm:$0xff] %v6756_v21  ;;  %v1731_v20 = vadd.f32 %v1730_v4, %v6795_v25  ;;  %v5589_v21 = vld [vmem:[%s9370_s4 + $0xd8] sm:$0xff] }
 0x235   : > { %9681 = vst [vmem:[#allocation76_spill] sm:$0xff] %v6759_v9 }
 0x236   : > { %9682 = vst [vmem:[#allocation77_spill] sm:$0xff] %v6762_v32  ;;  %1635 = vmatmul.bf16.gmra.mxu3 %v9693_v62  ;;  %v1507_v51 = vpop.f32.mrf.mxu2  ;;  %v9695_v62 = vld [vmem:[#allocation10_spill] sm:$0xff]  ;;  %v5591_v32 = vld [vmem:[%s9370_s4 + $0xe8] sm:$0xff] }
 0x237   : > { %9683 = vst [vmem:[#allocation78_spill] sm:$0xff] %v6765_v54  ;;  %3718 = vmatpush.bf16.msrb.mxu3 %v5591_v32  ;;  %v1978_v32 = vmul.f32 %v6494_v12, %v6494_v12 }
 0x238   : > { %9684 = vst [vmem:[#allocation79_spill] sm:$0xff] %v6768_v43  ;;  %v5568_v43 = vld [vmem:[%s9370_s4 + $0x30] sm:$0xff] }
 0x239   : > { %9685 = vst [vmem:[#allocation80_spill] sm:$0xff] %v6771_v8  ;;  %v1596_v40 = vpop.f32.mrf.mxu3  ;;  %v9697_v8 = vld [vmem:[#allocation13_spill] sm:$0xff]  ;;  %3450 = vmatpush.bf16.msra.mxu0 %v5568_v43  ;;  %v5566_v43 = vld [vmem:[%s9370_s4 + $0x20] sm:$0xff] }
 0x23a   : > { %9686 = vst [vmem:[#allocation81_spill] sm:$0xff] %v6774_v46  ;;  %v6809_v27 = vadd.f32 %v1596_v40, %v1507_v51 }
 0x23b   : > { %9687 = vst [vmem:[#allocation82_spill] sm:$0xff] %v6777_v23  ;;  %3719 = vmatpush.bf16.msrb.mxu3 %v5590_v31  ;;  %v1977_v31 = vmul.f32 %v6425_v10, %v6425_v10 }
 0x23c   : > { %9688 = vst [vmem:[#allocation83_spill] sm:$0xff] %v6780_v0  ;;  %v6797_v0 = vadd.f32 %v1418_v41, %v1329_v56  ;;  %v6811_v56 = vpop.f32.mrf.mxu1  ;;  %v6814_v6 = vadd.f32 %v1731_v20, %v6809_v27 }
 0x23d   : > { %9689 = vst [vmem:[#allocation84_spill] sm:$0xff] %v6783_v49 }
 0x23e   : > { %9690 = vst [vmem:[#allocation85_spill] sm:$0xff] %v6786_v37  ;;  %v6804_v37 = vpop.f32.mrf.mxu0  ;;  %v6807_v58 = vadd.f32 %v1710_v57, %v6797_v0  ;;  %v6818_v60 = vpop.f32.mrf.mxu2  ;;  %v9696_v57 = vld [vmem:[#allocation38_spill] sm:$0xff] }
 0x23f   : > { %9692 = vst [vmem:[#allocation18_spill] sm:$0xff] %v6795_v25  ;;  %1378 = vmatmul.bf16.gmra.mxu0 %v9695_v62  ;;  %v1982_v25 = vmul.f32 %v6497_v35, %v6497_v35  ;;  %v1981_v35 = vmul.f32 %v6428_v53, %v6428_v53  ;;  %3720 = vmatpush.bf16.msrb.mxu3 %v5589_v21 }
 0x240   : > { %9694 = vst [vmem:[#allocation37_spill] sm:$0xff] %v6809_v27  ;;  %v5574_v27 = vld [vmem:[%s9370_s4 + $0x60] sm:$0xff]  ;;  %v1985_v21 = vmul.f32 %v6431_v30, %v6431_v30 }
 0x241   : > { %v6820_v41 = vpop.f32.mrf.mxu3  ;;  %3541 = vmatpush.bf16.msrb.mxu1 %v5574_v27  ;;  %v5573_v27 = vld [vmem:[%s9370_s4 + $0x58] sm:$0xff]  ;;  %v2105_v10 = vadd.f32 %v1981_v35, %v1977_v31  ;;  %v1989_v35 = vmul.f32 %v6434_v36, %v6434_v36 }
 0x243   : > { %1462 = vmatmul.bf16.gmra.mxu1 %v9696_v57  ;;  %1551 = vmatmul.bf16.gmra.mxu2 %v9691_v18  ;;  %v9698_v18 = vld [vmem:[#allocation39_spill] sm:$0xff] }
 0x244   : > { %v6822_v4 = vpop.f32.mrf.mxu1 }
 0x245   : > { %3542 = vmatpush.bf16.msrb.mxu1 %v5573_v27 }
 0x246   : > { %v6816_v19 = vpop.f32.mrf.mxu0  ;;  %1640 = vmatmul.bf16.gmra.mxu3 %v9696_v57  ;;  %v6830_v20 = vpop.f32.mrf.mxu2  ;;  %v5584_v57 = vld [vmem:[%s9370_s4 + $0xb0] sm:$0xff] }
 0x247   : > { %3628 = vmatpush.bf16.msrb.mxu2 %v5584_v57 }
 0x249   : > { %v6832_v40 = vpop.f32.mrf.mxu3 }
 0x24c   : > { %v6834_v49 = vpop.f32.mrf.mxu1 }
 0x24e   : > { %v6828_v51 = vpop.f32.mrf.mxu0  ;;  %v6838_v23 = vpop.f32.mrf.mxu2 }
 0x24f   : > { %1383 = vmatmul.bf16.gmra.mxu0 %v9697_v8 }
 0x251   : > { %v6840_v33 = vpop.f32.mrf.mxu3 }
 0x253   : > { %1467 = vmatmul.bf16.gmra.mxu1 %v9698_v18  ;;  %1556 = vmatmul.bf16.gmra.mxu2 %v9695_v62  ;;  %v5583_v62 = vld [vmem:[%s9370_s4 + $0xa8] sm:$0xff] }
 0x254   : > { %v6842_v46 = vpop.f32.mrf.mxu1  ;;  %3629 = vmatpush.bf16.msrb.mxu2 %v5583_v62 }
 0x256   : > { %v6836_v17 = vpop.f32.mrf.mxu0  ;;  %1645 = vmatmul.bf16.gmra.mxu3 %v9698_v18  ;;  %v6868_v47 = vpop.f32.mrf.mxu2  ;;  %v5567_v18 = vld [vmem:[%s9370_s4 + $0x28] sm:$0xff] }
 0x257   : > { %3451 = vmatpush.bf16.msra.mxu0 %v5567_v18 }
 0x258   : > { %3630 = vmatpush.bf16.msrb.mxu2 %v5582_v2  ;;  %v5565_v2 = vld [vmem:[%s9370_s4 + $0x18] sm:$0xff] }
 0x259   : > { %v6876_v57 = vpop.f32.mrf.mxu3 }
 0x25b   : > { %3452 = vmatpush.bf16.msra.mxu0 %v5566_v43  ;;  %v2126_v43 = vadd.f32 %v1982_v25, %v1978_v32 }
 0x25c   : > { %v6878_v9 = vpop.f32.mrf.mxu1  ;;  %3631 = vmatpush.bf16.msrb.mxu2 %v5581_v16  ;;  %v2106_v16 = vadd.f32 %v2105_v10, %v1985_v21  ;;  %v9702_v21 = vld [vmem:[#allocation19_spill] sm:$0xff] }
 0x25d   : > { %v2127_v53 = vadd.f32 %v2126_v43, %v1986_v29  ;;  %v1993_v43 = vmul.f32 %v6437_v42, %v6437_v42 }
 0x25e   : > { %v6860_v54 = vpop.f32.mrf.mxu0  ;;  %v6898_v18 = vpop.f32.mrf.mxu2  ;;  %v2107_v29 = vadd.f32 %v2106_v16, %v1989_v35  ;;  %v9704_v35 = vld [vmem:[#allocation41_spill] sm:$0xff] }
 0x25f   : > { %1388 = vmatmul.bf16.gmra.mxu0 %v9699_v5 }
 0x260   : > { %3453 = vmatpush.bf16.msra.mxu0 %v5565_v2 }
 0x261   : > { %v6906_v14 = vpop.f32.mrf.mxu3 }
 0x263   : > { %1472 = vmatmul.bf16.gmra.mxu1 %v9700_v28  ;;  %1561 = vmatmul.bf16.gmra.mxu2 %v9697_v8  ;;  %v1990_v8 = vmul.f32 %v6503_v7, %v6503_v7  ;;  %v9701_v7 = vld [vmem:[#allocation64_spill] sm:$0xff] }
 0x264   : > { %v6908_v12 = vpop.f32.mrf.mxu1  ;;  %v1998_v10 = vmul.f32 %v9701_v7, %v9701_v7 }
 0x265   : > { %v2128_v48 = vadd.f32 %v2127_v53, %v1990_v8  ;;  %v2108_v8 = vadd.f32 %v2107_v29, %v1993_v43  ;;  %v6964_v29 = vadd.f32 %v6822_v4, %v6788_v45 }
 0x266   : > { %v6892_v62 = vpop.f32.mrf.mxu0  ;;  %1650 = vmatmul.bf16.gmra.mxu3 %v9700_v28  ;;  %v6928_v38 = vpop.f32.mrf.mxu2  ;;  %v1994_v28 = vmul.f32 %v6506_v13, %v6506_v13  ;;  %v9703_v13 = vld [vmem:[#allocation48_spill] sm:$0xff] }
 0x267   : > { %v1997_v16 = vmul.f32 %v9703_v13, %v9703_v13 }
 0x268   : > { %v2129_v31 = vadd.f32 %v2128_v48, %v1994_v28  ;;  %v6955_v48 = vadd.f32 %v6811_v56, %v6734_v11  ;;  %v9705_v28 = vld [vmem:[#allocation65_spill] sm:$0xff] }
 0x269   : > { %v6932_v25 = vpop.f32.mrf.mxu3  ;;  %v2002_v42 = vmul.f32 %v9705_v28, %v9705_v28  ;;  %v2109_v7 = vadd.f32 %v2108_v8, %v1997_v16  ;;  %v9706_v11 = vld [vmem:[#allocation49_spill] sm:$0xff]  ;;  %v6974_v28 = vadd.f32 %v6834_v49, %v6804_v37  ;;  %v9707_v8 = vld [vmem:[#allocation66_spill] sm:$0xff] }
 0x26a   : > { %v2130_v36 = vadd.f32 %v2129_v31, %v1998_v10  ;;  %v2001_v56 = vmul.f32 %v9706_v11, %v9706_v11  ;;  %v2006_v16 = vmul.f32 %v9707_v8, %v9707_v8  ;;  %v9708_v11 = vld [vmem:[#allocation50_spill] sm:$0xff]  ;;  %v6992_v8 = vadd.f32 %v6878_v9, %v6828_v51 }
 0x26b   : > { %v2005_v49 = vmul.f32 %v9708_v11, %v9708_v11  ;;  %v7011_v51 = vadd.f32 %v6840_v33, %v6838_v23 }
 0x26c   : > { %v1435_v32 = vpop.f32.mrf.mxu1  ;;  %v2131_v43 = vadd.f32 %v2130_v36, %v2002_v42  ;;  %v2110_v4 = vadd.f32 %v2109_v7, %v2001_v56  ;;  %v6981_v36 = vadd.f32 %v6842_v46, %v6816_v19  ;;  %v9709_v7 = vld [vmem:[#allocation67_spill] sm:$0xff]  ;;  %v6998_v46 = vadd.f32 %v6832_v40, %v6830_v20 }
 0x26d   : > { %v2010_v56 = vmul.f32 %v9709_v7, %v9709_v7  ;;  %v9710_v20 = vld [vmem:[#allocation51_spill] sm:$0xff] }
 0x26e   : > { %v6926_v39 = vpop.f32.mrf.mxu0  ;;  %v6942_v27 = vpop.f32.mrf.mxu2  ;;  %v2132_v42 = vadd.f32 %v2131_v43, %v2006_v16  ;;  %v2111_v19 = vadd.f32 %v2110_v4, %v2005_v49  ;;  %v2009_v40 = vmul.f32 %v9710_v20, %v9710_v20  ;;  %v7017_v4 = vadd.f32 %v1435_v32, %v6860_v54 }
 0x26f   : > { %1393 = vmatmul.bf16.gmra.mxu0 %v9702_v21  ;;  %v7033_v32 = vadd.f32 %v6906_v14, %v6898_v18  ;;  %v7048_v14 = vadd.f32 %v6932_v25, %v6928_v38  ;;  %v9715_v38 = vld [vmem:[#allocation53_spill] sm:$0xff] }
 0x270   : > { %v2112_v23 = vadd.f32 %v2111_v19, %v2009_v40  ;;  %v9713_v19 = vld [vmem:[#allocation42_spill] sm:$0xff]  ;;  %v2017_v25 = vmul.f32 %v9715_v38, %v9715_v38 }
 0x271   : > { %v6946_v30 = vpop.f32.mrf.mxu3 }
 0x273   : > { %1477 = vmatmul.bf16.gmra.mxu1 %v9704_v35  ;;  %1566 = vmatmul.bf16.gmra.mxu2 %v9699_v5  ;;  %v1712_v5 = vadd.f32 %v6807_v58, %v6955_v48  ;;  %v6985_v58 = vadd.f32 %v6820_v41, %v6818_v60  ;;  %v7003_v41 = vadd.f32 %v6908_v12, %v6836_v17  ;;  %v9711_v17 = vld [vmem:[#allocation68_spill] sm:$0xff] }
 0x274   : > { %v1438_v53 = vpop.f32.mrf.mxu1 }
 0x275   : > { %v1713_v13 = vadd.f32 %v1712_v5, %v6964_v29  ;;  %v1733_v9 = vadd.f32 %v6814_v6, %v6985_v58  ;;  %v7024_v6 = vadd.f32 %v6876_v57, %v6868_v47 }
 0x276   : > { %v6940_v2 = vpop.f32.mrf.mxu0  ;;  %1655 = vmatmul.bf16.gmra.mxu3 %v9704_v35  ;;  %v1527_v10 = vpop.f32.mrf.mxu2 }
 0x277   : > { %v1714_v37 = vadd.f32 %v1713_v13, %v6974_v28  ;;  %v2133_v13 = vadd.f32 %v2132_v42, %v2010_v56  ;;  %v2014_v42 = vmul.f32 %v9711_v17, %v9711_v17  ;;  %v1734_v49 = vadd.f32 %v1733_v9, %v6998_v46  ;;  %v9712_v17 = vld [vmem:[#allocation52_spill] sm:$0xff] }
 0x278   : > { %v7028_v56 = vadd.f32 %v1438_v53, %v6892_v62  ;;  %v2013_v9 = vmul.f32 %v9712_v17, %v9712_v17  ;;  %v9714_v62 = vld [vmem:[#allocation69_spill] sm:$0xff] }
 0x279   : > { %v1616_v35 = vpop.f32.mrf.mxu3  ;;  %v1715_v60 = vadd.f32 %v1714_v37, %v6981_v36  ;;  %v1735_v54 = vadd.f32 %v1734_v49, %v7011_v51  ;;  %v2018_v53 = vmul.f32 %v9714_v62, %v9714_v62  ;;  %v9724_v17 = vld [vmem:[#allocation57_spill] sm:$0xff] }
 0x27a   : > { %v2113_v18 = vadd.f32 %v2112_v23, %v2013_v9  ;;  %v7068_v9 = vadd.f32 %v1616_v35, %v1527_v10 }
 0x27b   : > { %v1716_v16 = vadd.f32 %v1715_v60, %v6992_v8  ;;  %v2134_v60 = vadd.f32 %v2133_v13, %v2014_v42  ;;  %v1736_v13 = vadd.f32 %v1735_v54, %v7024_v6  ;;  %v7060_v42 = vadd.f32 %v6946_v30, %v6942_v27  ;;  %v9716_v54 = vld [vmem:[#allocation70_spill] sm:$0xff] }
 0x27c   : > { %v1440_v45 = vpop.f32.mrf.mxu1 }
 0x27d   : > { %v1717_v37 = vadd.f32 %v1716_v16, %v7003_v41  ;;  %v7039_v57 = vadd.f32 %v1440_v45, %v6926_v39  ;;  %v1737_v16 = vadd.f32 %v1736_v13, %v7033_v32 }
 0x27e   : > { %v6966_v31 = vpop.f32.mrf.mxu0  ;;  %v1529_v5 = vpop.f32.mrf.mxu2 }
 0x27f   : > { %v1718_v47 = vadd.f32 %v1717_v37, %v7017_v4 }
 0x281   : > { %v1618_v12 = vpop.f32.mrf.mxu3  ;;  %v1719_v40 = vadd.f32 %v1718_v47, %v7028_v56  ;;  %v2114_v47 = vadd.f32 %v2113_v18, %v2017_v25 }
 0x282   : > { %v7075_v13 = vadd.f32 %v1618_v12, %v1529_v5 }
 0x283   : > { %1482 = vmatmul.bf16.gmra.mxu1 %v9713_v19  ;;  %1571 = vmatmul.bf16.gmra.mxu2 %v9702_v21  ;;  %v2135_v21 = vadd.f32 %v2134_v60, %v2018_v53  ;;  %v1720_v23 = vadd.f32 %v1719_v40, %v7039_v57  ;;  %v9717_v40 = vld [vmem:[#allocation54_spill] sm:$0xff] }
 0x284   : > { %v1443_v33 = vpop.f32.mrf.mxu1  ;;  %v2021_v62 = vmul.f32 %v9717_v40, %v9717_v40  ;;  %v9720_v40 = vld [vmem:[#allocation72_spill] sm:$0xff] }
 0x285   : > { %v7053_v39 = vadd.f32 %v1443_v33, %v6940_v2  ;;  %v2022_v2 = vmul.f32 %v9716_v54, %v9716_v54  ;;  %v1738_v33 = vadd.f32 %v1737_v16, %v7048_v14  ;;  %v9718_v16 = vld [vmem:[#allocation71_spill] sm:$0xff] }
 0x286   : > { %v7005_v43 = vpop.f32.mrf.mxu0  ;;  %1660 = vmatmul.bf16.gmra.mxu3 %v9713_v19  ;;  %v1532_v49 = vpop.f32.mrf.mxu2  ;;  %v2026_v10 = vmul.f32 %v9718_v16, %v9718_v16  ;;  %v2115_v25 = vadd.f32 %v2114_v47, %v2021_v62  ;;  %v2030_v16 = vmul.f32 %v9720_v40, %v9720_v40  ;;  %v9722_v40 = vld [vmem:[#allocation56_spill] sm:$0xff] }
 0x287   : > { %v1721_v19 = vadd.f32 %v1720_v23, %v7053_v39  ;;  %v2136_v27 = vadd.f32 %v2135_v21, %v2022_v2  ;;  %v1739_v53 = vadd.f32 %v1738_v33, %v7060_v42  ;;  %v9719_v2 = vld [vmem:[#allocation55_spill] sm:$0xff] }
 0x288   : > { %v2025_v33 = vmul.f32 %v9719_v2, %v9719_v2 }
 0x289   : > { %v1621_v37 = vpop.f32.mrf.mxu3  ;;  %v1740_v35 = vadd.f32 %v1739_v53, %v7068_v9  ;;  %v2137_v21 = vadd.f32 %v2136_v27, %v2026_v10 }
 0x28a   : > { %v7083_v18 = vadd.f32 %v1621_v37, %v1532_v49  ;;  %v2116_v37 = vadd.f32 %v2115_v25, %v2025_v33 }
 0x28b   : > { %v1741_v5 = vadd.f32 %v1740_v35, %v7075_v13  ;;  %v2138_v10 = vadd.f32 %v2137_v21, %v2030_v16  ;;  %v2041_v35 = vmul.f32 %v6677_v24, %v6677_v24 }
 0x28c   : > { %v1445_v60 = vpop.f32.mrf.mxu1 }
 0x28d   : > { %v7072_v30 = vadd.f32 %v1445_v60, %v6966_v31  ;;  %v1742_v53 = vadd.f32 %v1741_v5, %v7083_v18  ;;  %v2029_v5 = vmul.f32 %v9722_v40, %v9722_v40 }
 0x28e   : > { %v7055_v45 = vpop.f32.mrf.mxu0  ;;  %v1534_v12 = vpop.f32.mrf.mxu2 }
 0x28f   : > { %v1722_v54 = vadd.f32 %v1721_v19, %v7072_v30  ;;  %v2117_v2 = vadd.f32 %v2116_v37, %v2029_v5  ;;  %v2042_v37 = vmul.f32 %v6741_v1, %v6741_v1  ;;  %v2054_v1 = vmul.f32 %v6750_v55, %v6750_v55  ;;  %v9740_v55 = vld [vmem:[#allocation75_spill] sm:$0xff] }
 0x291   : > { %v1723_v31 = vrot.slane %v1722_v54, 4  ;;  %v1623_v19 = vpop.f32.mrf.mxu3 }
 0x292   : > { %v7093_v49 = vadd.f32 %v1623_v19, %v1534_v12  ;;  %v9723_v19 = vld [vmem:[#allocation73_spill] sm:$0xff] }
 0x293   : > { %v1724_v60 = vadd.f32 %v1723_v31, %v1722_v54  ;;  %v2045_v54 = vmul.f32 %v6680_v44, %v6680_v44  ;;  %v2034_v25 = vmul.f32 %v9723_v19, %v9723_v19  ;;  %v2033_v44 = vmul.f32 %v9724_v17, %v9724_v17 }
 0x294   : > { %v1448_v62 = vpop.f32.mrf.mxu1  ;;  %v1743_v31 = vadd.f32 %v1742_v53, %v7093_v49  ;;  %v9725_v53 = vld [vmem:[#allocation74_spill] sm:$0xff] }
 0x295   : > { %v1725_v47 = vrot.slane %v1724_v60, 2  ;;  %v7096_v27 = vadd.f32 %v1448_v62, %v7005_v43  ;;  %v2139_v16 = vadd.f32 %v2138_v10, %v2034_v25  ;;  %v2189_v21 = vadd.f32 %v2045_v54, %v2041_v35  ;;  %v9727_v25 = vld [vmem:[#allocation58_spill] sm:$0xff] }
 0x296   : > { %v7085_v23 = vpop.f32.mrf.mxu0  ;;  %v1744_v33 = vrot.slane %v1743_v31, 4  ;;  %v1537_v38 = vpop.f32.mrf.mxu2  ;;  %v2038_v7 = vmul.f32 %v9725_v53, %v9725_v53  ;;  %v2046_v10 = vmul.f32 %v6744_v15, %v6744_v15 }
 0x297   : > { %9721 = vst [vmem:[#allocation10_spill] sm:$0xff] %v7096_v27  ;;  %v1726_v12 = vadd.f32 %v1725_v47, %v1724_v60  ;;  %v2049_v47 = vmul.f32 %v6683_v52, %v6683_v52 }
 0x298   : > { %v1745_v24 = vadd.f32 %v1744_v33, %v1743_v31  ;;  %v2118_v31 = vadd.f32 %v2117_v2, %v2033_v44  ;;  %v2140_v33 = vadd.f32 %v2139_v16, %v2038_v7  ;;  %v2053_v7 = vmul.f32 %v6686_v3, %v6686_v3 }
 0x299   : > { %v1727_v43 = vrot.slane %v1726_v12, 1  ;;  %v1626_v60 = vpop.f32.mrf.mxu3 }
 0x29a   : > { %v7119_v35 = vadd.f32 %v1626_v60, %v1537_v38  ;;  %v1746_v53 = vrot.slane %v1745_v24, 2 }
 0x29b   : > { %v1728_v40 = vadd.f32 %v1727_v43, %v1726_v12  ;;  %v2037_v12 = vmul.f32 %v9727_v25, %v9727_v25  ;;  %v2190_v43 = vadd.f32 %v2189_v21, %v2049_v47  ;;  %v9729_v25 = vld [vmem:[#allocation21_spill] sm:$0xff] }
 0x29c   : > { %9726 = vst [vmem:[#allocation38_spill] sm:$0xff] %v7119_v35  ;;  %v1450_v54 = vpop.f32.mrf.mxu1  ;;  %v2061_v19 = vmul.f32 %v9729_v25, %v9729_v25 }
 0x29d   : > { %v7122_v5 = vmul.f32 %v6419_v63, %v1728_v40  ;;  %v2210_v40 = vadd.f32 %v2046_v10, %v2042_v37  ;;  %v2119_v2 = vadd.f32 %v2118_v31, %v2037_v12  ;;  %v2191_v21 = vadd.f32 %v2190_v43, %v2053_v7 }
 0x29e   : > { %v7107_v62 = vpop.f32.mrf.mxu0  ;;  %v1539_v60 = vpop.f32.mrf.mxu2  ;;  %v1747_v37 = vadd.f32 %v1746_v53, %v1745_v24  ;;  %v7159_v12 = vadd.f32 %v1450_v54, %v7055_v45 }
 0x29f   : > { %v7128_v52 = vsub.f32 %v6663_v59, %v7122_v5  ;;  %v7132_v15 = vsub.f32 %v6674_v50, %v7122_v5  ;;  %v7136_v44 = vsub.f32 %v6729_v22, %v7122_v5  ;;  %v7140_v38 = vsub.f32 %v6793_v34, %v7122_v5 }
 0x2a0   : > { %v7146_v59 = vsub.f32 %v6797_v0, %v7122_v5  ;;  %v2141_v50 = vrot.slane %v2140_v33, 4  ;;  %v2050_v22 = vmul.f32 %v6747_v61, %v6747_v61  ;;  %v2057_v0 = vmul.f32 %v6689_v26, %v6689_v26  ;;  %9728 = vst [vmem:[#allocation13_spill] sm:$0xff] %v7159_v12 }
 0x2a1   : > { %v1979_v34 = vmul.f32 %v7128_v52, %v7128_v52  ;;  %v1983_v47 = vmul.f32 %v7132_v15, %v7132_v15  ;;  %v1628_v10 = vpop.f32.mrf.mxu3  ;;  %v2120_v7 = vrot.slane %v2119_v2, 4  ;;  %v1987_v24 = vmul.f32 %v7136_v44, %v7136_v44 }
 0x2a2   : > { %v2211_v31 = vadd.f32 %v2210_v40, %v2050_v22  ;;  %v2142_v3 = vadd.f32 %v2141_v50, %v2140_v33  ;;  %v2192_v61 = vadd.f32 %v2191_v21, %v2057_v0  ;;  %v1748_v17 = vrot.slane %v1747_v37, 1  ;;  %v9732_v0 = vld [vmem:[#allocation36_spill] sm:$0xff] }
 0x2a3   : > { %v2147_v53 = vadd.f32 %v1983_v47, %v1979_v34  ;;  %v7169_v45 = vsub.f32 %v6955_v48, %v7122_v5  ;;  %v1792_v54 = vadd.f32 %v7159_v12, %v7096_v27  ;;  %v7176_v40 = vadd.f32 %v2120_v7, %v2119_v2  ;;  %v9746_v27 = vld [vmem:[#allocation14_spill] sm:$0xff] }
 0x2a4   : > { %v1453_v43 = vpop.f32.mrf.mxu1  ;;  %v2212_v26 = vadd.f32 %v2211_v31, %v2054_v1  ;;  %v1991_v50 = vmul.f32 %v7140_v38, %v7140_v38  ;;  %v1749_v22 = vadd.f32 %v1748_v17, %v1747_v37  ;;  %v2143_v1 = vrot.slane %v2142_v3, 2 }
 0x2a5   : > { %9730 = vst [vmem:[#allocation39_spill] sm:$0xff] %v7169_v45  ;;  %v7174_v33 = vadd.f32 %v1453_v43, %v7085_v23  ;;  %v2148_v21 = vadd.f32 %v2147_v53, %v1987_v24  ;;  %v2193_v47 = vadd.f32 %v2192_v61, %v2061_v19  ;;  %v2058_v48 = vmul.f32 %v9732_v0, %v9732_v0 }
 0x2a6   : > { %v7148_v16 = vpop.f32.mrf.mxu0  ;;  %v1542_v25 = vpop.f32.mrf.mxu2  ;;  %v7187_v23 = vsub.f32 %v6964_v29, %v7122_v5  ;;  %v1995_v2 = vmul.f32 %v7146_v59, %v7146_v59  ;;  %v7192_v17 = vmul.f32 %v6419_v63, %v1749_v22  ;;  %v7196_v61 = vsub.f32 %v6974_v28, %v7122_v5  ;;  %v9739_v28 = vld [vmem:[#allocation23_spill] sm:$0xff] }
 0x2a7   : > { %9731 = vst [vmem:[#allocation16_spill] sm:$0xff] %v7174_v33  ;;  %v1793_v31 = vadd.f32 %v1792_v54, %v7174_v33  ;;  %v2149_v43 = vadd.f32 %v2148_v21, %v1991_v50  ;;  %v2213_v7 = vadd.f32 %v2212_v26, %v2058_v48  ;;  %v1999_v19 = vmul.f32 %v7169_v45, %v7169_v45  ;;  %v9736_v54 = vld [vmem:[#allocation8_spill] sm:$0xff]  ;;  %v9738_v26 = vld [vmem:[#allocation30_spill] sm:$0xff] }
 0x2a8   : > { %9733 = vst [vmem:[#allocation40_spill] sm:$0xff] %v7187_v23  ;;  %v7204_v0 = vsub.f32 %v9736_v54, %v7192_v17  ;;  %v9737_v50 = vld [vmem:[#allocation32_spill] sm:$0xff]  ;;  %v7212_v22 = vsub.f32 %v9738_v26, %v7192_v17  ;;  %v2065_v48 = vmul.f32 %v9739_v28, %v9739_v28  ;;  %v2003_v26 = vmul.f32 %v7187_v23, %v7187_v23  ;;  %v9750_v28 = vld [vmem:[#allocation77_spill] sm:$0xff] }
 0x2a9   : > { %v1631_v37 = vpop.f32.mrf.mxu3  ;;  %9734 = vst [vmem:[#allocation19_spill] sm:$0xff] %v7196_v61  ;;  %v2150_v53 = vadd.f32 %v2149_v43, %v1995_v2  ;;  %v7208_v21 = vsub.f32 %v9737_v50, %v7192_v17  ;;  %v9741_v2 = vld [vmem:[#allocation18_spill] sm:$0xff]  ;;  %v7228_v50 = vsub.f32 %v6981_v36, %v7122_v5  ;;  %v7233_v33 = vadd.f32 %v1628_v10, %v1539_v60 }
 0x2aa   : > { %v7200_v24 = vadd.f32 %v1631_v37, %v1542_v25  ;;  %v2062_v25 = vmul.f32 %v9740_v55, %v9740_v55  ;;  %v7220_v43 = vsub.f32 %v9741_v2, %v7192_v17  ;;  %v9742_v37 = vld [vmem:[#allocation37_spill] sm:$0xff]  ;;  %v2194_v11 = vadd.f32 %v2193_v47, %v2065_v48 }
 0x2ab   : > { %v7224_v54 = vsub.f32 %v9742_v37, %v7192_v17  ;;  %9743 = vst [vmem:[#allocation42_spill] sm:$0xff] %v7228_v50  ;;  %v2151_v20 = vadd.f32 %v2150_v53, %v1999_v19  ;;  %v7235_v2 = vadd.f32 %v2143_v1, %v2142_v3  ;;  %v7239_v37 = vsub.f32 %v6992_v8, %v7122_v5  ;;  %v9747_v19 = vld [vmem:[#allocation76_spill] sm:$0xff]  ;;  %v9748_v8 = vld [vmem:[#allocation25_spill] sm:$0xff] }
 0x2ac   : > { %9735 = vst [vmem:[#allocation41_spill] sm:$0xff] %v7200_v24  ;;  %v1455_v29 = vpop.f32.mrf.mxu1  ;;  %v2214_v55 = vadd.f32 %v2213_v7, %v2062_v25  ;;  %v2007_v36 = vmul.f32 %v7196_v61, %v7196_v61  ;;  %v2069_v23 = vmul.f32 %v9746_v27, %v9746_v27  ;;  %v2066_v53 = vmul.f32 %v9747_v19, %v9747_v19 }
 0x2ad   : > { %9744 = vst [vmem:[#allocation8_spill] sm:$0xff] %v7233_v33  ;;  %v2152_v12 = vadd.f32 %v2151_v20, %v2003_v26  ;;  %v1980_v60 = vmul.f32 %v7204_v0, %v7204_v0  ;;  %v1984_v3 = vmul.f32 %v7208_v21, %v7208_v21  ;;  %v2073_v47 = vmul.f32 %v9748_v8, %v9748_v8 }
 0x2ae   : > { %v7180_v34 = vpop.f32.mrf.mxu0  ;;  %9745 = vst [vmem:[#allocation32_spill] sm:$0xff] %v7239_v37  ;;  %v1544_v10 = vpop.f32.mrf.mxu2  ;;  %v7257_v20 = vsub.f32 %v7003_v41, %v7122_v5  ;;  %v2011_v7 = vmul.f32 %v7228_v50, %v7228_v50  ;;  %v2195_v26 = vadd.f32 %v2194_v11, %v2069_v23  ;;  %v2070_v27 = vmul.f32 %v9750_v28, %v9750_v28 }
 0x2af   : > { %v2153_v48 = vadd.f32 %v2152_v12, %v2007_v36  ;;  %v2215_v19 = vadd.f32 %v2214_v55, %v2066_v53  ;;  %v1813_v61 = vadd.f32 %v7233_v33, %v7119_v35  ;;  %v7267_v8 = vsub.f32 %v7017_v4, %v7122_v5 }
 0x2b0   : > { %9749 = vst [vmem:[#allocation30_spill] sm:$0xff] %v7257_v20  ;;  %v7271_v41 = vsub.f32 %v7028_v56, %v7122_v5  ;;  %v2015_v12 = vmul.f32 %v7239_v37, %v7239_v37  ;;  %v1988_v23 = vmul.f32 %v7212_v22, %v7212_v22  ;;  %v2168_v55 = vadd.f32 %v1984_v3, %v1980_v60 }
 0x2b1   : > { %v1633_v25 = vpop.f32.mrf.mxu3  ;;  %9751 = vst [vmem:[#allocation18_spill] sm:$0xff] %v7267_v8  ;;  %v2154_v11 = vadd.f32 %v2153_v48, %v2011_v7  ;;  %v1814_v36 = vadd.f32 %v1813_v61, %v7200_v24  ;;  %v7279_v53 = vadd.f32 %v1455_v29, %v7107_v62  ;;  %v2019_v4 = vmul.f32 %v7257_v20, %v7257_v20 }
 0x2b2   : > { %9752 = vst [vmem:[#allocation37_spill] sm:$0xff] %v7271_v41  ;;  %v7285_v56 = vsub.f32 %v6985_v58, %v7192_v17  ;;  %v1992_v7 = vmul.f32 %v7220_v43, %v7220_v43  ;;  %v2169_v60 = vadd.f32 %v2168_v55, %v1988_v23  ;;  %v7293_v3 = vadd.f32 %v1633_v25, %v1544_v10 }
 0x2b3   : > { %9753 = vst [vmem:[#allocation86_spill] sm:$0xff] %v7279_v53  ;;  %v2155_v28 = vadd.f32 %v2154_v11, %v2015_v12  ;;  %v1794_v61 = vadd.f32 %v1793_v31, %v7279_v53  ;;  %v2216_v62 = vadd.f32 %v2215_v19, %v2070_v27  ;;  %v7297_v29 = vsub.f32 %v7039_v57, %v7122_v5 }
 0x2b4   : > { %v1458_v45 = vpop.f32.mrf.mxu1  ;;  %9755 = vst [vmem:[#allocation88_spill] sm:$0xff] %v7293_v3  ;;  %v2023_v58 = vmul.f32 %v7267_v8, %v7267_v8  ;;  %v2170_v12 = vadd.f32 %v2169_v60, %v1992_v7  ;;  %v7312_v57 = vsub.f32 %v7053_v39, %v7122_v5  ;;  %v2027_v19 = vmul.f32 %v7271_v41, %v7271_v41  ;;  %v9761_v7 = vld [vmem:[#allocation78_spill] sm:$0xff]  ;;  %v9774_v8 = vld [vmem:[#allocation17_spill] sm:$0xff] }
 0x2b5   : > { %v7288_v37 = vadd.f32 %v1458_v45, %v7148_v16  ;;  %9756 = vst [vmem:[#allocation89_spill] sm:$0xff] %v7297_v29  ;;  %v2156_v48 = vadd.f32 %v2155_v28, %v2019_v4  ;;  %v7303_v16 = vsub.f32 %v6998_v46, %v7192_v17  ;;  %v1996_v45 = vmul.f32 %v7224_v54, %v7224_v54 }
 0x2b6   : > { %v7251_v1 = vpop.f32.mrf.mxu0  ;;  %v1547_v27 = vpop.f32.mrf.mxu2  ;;  %9758 = vst [vmem:[#allocation91_spill] sm:$0xff] %v7312_v57  ;;  %v7318_v46 = vsub.f32 %v7011_v51, %v7192_v17  ;;  %v2000_v25 = vmul.f32 %v7285_v56, %v7285_v56  ;;  %v1815_v23 = vadd.f32 %v1814_v36, %v7293_v3  ;;  %v2074_v60 = vmul.f32 %v9761_v7, %v9761_v7  ;;  %v9766_v7 = vld [vmem:[#allocation24_spill] sm:$0xff] }
 0x2b7   : > { %9754 = vst [vmem:[#allocation87_spill] sm:$0xff] %v7288_v37  ;;  %v7308_v31 = vadd.f32 %v1794_v61, %v7288_v37  ;;  %v2157_v28 = vadd.f32 %v2156_v48, %v2023_v58  ;;  %v2171_v11 = vadd.f32 %v2170_v12, %v1996_v45  ;;  %v7333_v51 = vsub.f32 %v7072_v30, %v7122_v5 }
 0x2b8   : > { %9757 = vst [vmem:[#allocation90_spill] sm:$0xff] %v7303_v16  ;;  %v2031_v61 = vmul.f32 %v7297_v29, %v7297_v29  ;;  %v7339_v36 = vsub.f32 %v7024_v6, %v7192_v17  ;;  %v2004_v48 = vmul.f32 %v7303_v16, %v7303_v16  ;;  %v2196_v5 = vadd.f32 %v2195_v26, %v2073_v47  ;;  %v9767_v26 = vld [vmem:[#allocation79_spill] sm:$0xff] }
 0x2b9   : > { %9759 = vst [vmem:[#allocation92_spill] sm:$0xff] %v7318_v46  ;;  %v1636_v10 = vpop.f32.mrf.mxu3  ;;  %v2158_v58 = vadd.f32 %v2157_v28, %v2027_v19  ;;  %v2172_v45 = vadd.f32 %v2171_v11, %v2000_v25  ;;  %v2217_v28 = vadd.f32 %v2216_v62, %v2074_v60  ;;  %v7353_v6 = vsub.f32 %v7033_v32, %v7192_v17 }
 0x2ba   : > { %v7323_v55 = vadd.f32 %v1636_v10, %v1547_v27  ;;  %9762 = vst [vmem:[#allocation94_spill] sm:$0xff] %v7333_v51  ;;  %v9764_v27 = vrot.slane %v7176_v40, 2  ;;  %v2035_v10 = vmul.f32 %v7312_v57, %v7312_v57  ;;  %v2008_v25 = vmul.f32 %v7318_v46, %v7318_v46  ;;  %v5579_v46 = vld [vmem:[%s9370_s4 + $0x88] sm:$0xff] }
 0x2bb   : > { %9763 = vst [vmem:[#allocation95_spill] sm:$0xff] %v7339_v36  ;;  %v2159_v19 = vadd.f32 %v2158_v58, %v2031_v61  ;;  %v2173_v11 = vadd.f32 %v2172_v45, %v2004_v48  ;;  %v2077_v29 = vmul.f32 %v9766_v7, %v9766_v7  ;;  %v2078_v62 = vmul.f32 %v9767_v26, %v9767_v26 }
 0x2bc   : > { %9760 = vst [vmem:[#allocation93_spill] sm:$0xff] %v7323_v55  ;;  %v7325_v4 = vpop.f32.mrf.mxu1  ;;  %v7344_v12 = vadd.f32 %v1815_v23, %v7323_v55  ;;  %v2123_v30 = vadd.f32 %v9764_v27, %v7176_v40  ;;  %v2145_v23 = vrot.slane %v7235_v2, 1  ;;  %v2039_v40 = vmul.f32 %v7333_v51, %v7333_v51 }
 0x2bd   : > { %9765 = vst [vmem:[#allocation96_spill] sm:$0xff] %v7353_v6  ;;  %v2160_v47 = vadd.f32 %v2159_v19, %v2035_v10  ;;  %v7366_v32 = vsub.f32 %v7048_v14, %v7192_v17  ;;  %v2012_v60 = vmul.f32 %v7339_v36, %v7339_v36  ;;  %v2174_v61 = vadd.f32 %v2173_v11, %v2008_v25  ;;  %v9770_v11 = vld [vmem:[#allocation26_spill] sm:$0xff] }
 0x2be   : > { %v7327_v39 = vpop.f32.mrf.mxu0  ;;  %v7370_v58 = vpop.f32.mrf.mxu2  ;;  %v2197_v48 = vadd.f32 %v2196_v5, %v2077_v29  ;;  %v2218_v7 = vadd.f32 %v2217_v28, %v2078_v62  ;;  %v7376_v10 = vsub.f32 %v7060_v42, %v7192_v17  ;;  %v2016_v19 = vmul.f32 %v7353_v6, %v7353_v6 }
 0x2bf   : > { %9768 = vst [vmem:[#allocation97_spill] sm:$0xff] %v7366_v32  ;;  %v2161_v45 = vadd.f32 %v2160_v47, %v2039_v40  ;;  %v2175_v14 = vadd.f32 %v2174_v61, %v2012_v60  ;;  %v2124_v51 = vrot.slane %v2123_v30, 1  ;;  %v2146_v25 = vadd.f32 %v2145_v23, %v7235_v2  ;;  %v9771_v40 = vld [vmem:[#allocation80_spill] sm:$0xff] }
 0x2c0   : > { %9769 = vst [vmem:[#allocation98_spill] sm:$0xff] %v7376_v10  ;;  %v2081_v29 = vmul.f32 %v9770_v11, %v9770_v11  ;;  %v2082_v28 = vmul.f32 %v9771_v40, %v9771_v40  ;;  %v7389_v42 = vsub.f32 %v7068_v9, %v7192_v17  ;;  %v2020_v47 = vmul.f32 %v7366_v32, %v7366_v32 }
 0x2c1   : > { %v7372_v27 = vpop.f32.mrf.mxu3  ;;  %v2162_v5 = vrot.slane %v2161_v45, 4  ;;  %v2176_v62 = vadd.f32 %v2175_v14, %v2016_v19  ;;  %v7397_v23 = vsub.f32 %v7075_v13, %v7192_v17  ;;  %v2024_v40 = vmul.f32 %v7376_v10, %v7376_v10  ;;  %v9775_v14 = vld [vmem:[#allocation81_spill] sm:$0xff] }
 0x2c2   : > { %9772 = vst [vmem:[#allocation99_spill] sm:$0xff] %v7389_v42  ;;  %v2198_v61 = vadd.f32 %v2197_v48, %v2081_v29  ;;  %v2219_v2 = vadd.f32 %v2218_v7, %v2082_v28  ;;  %v2125_v41 = vadd.f32 %v2124_v51, %v2123_v30  ;;  %v2274_v9 = vmul.f32 %v2146_v25, %v6419_v63 }
 0x2c3   : > { %v2163_v57 = vadd.f32 %v2162_v5, %v2161_v45  ;;  %9773 = vst [vmem:[#allocation100_spill] sm:$0xff] %v7397_v23  ;;  %v2177_v11 = vadd.f32 %v2176_v62, %v2020_v47  ;;  %v2085_v32 = vmul.f32 %v9774_v8, %v9774_v8  ;;  %v2086_v48 = vmul.f32 %v9775_v14, %v9775_v14 }
 0x2c4   : > { %v7380_v26 = vpop.f32.mrf.mxu1  ;;  %v7408_v7 = vsub.f32 %v7083_v18, %v7192_v17  ;;  %v2028_v13 = vmul.f32 %v7389_v42, %v7389_v42  ;;  %v7418_v28 = vsub.f32 %v7093_v49, %v7192_v17  ;;  %v2032_v47 = vmul.f32 %v7397_v23, %v7397_v23 }
 0x2c5   : > { %v2164_v19 = vrot.slane %v2163_v57, 2  ;;  %v2178_v45 = vadd.f32 %v2177_v11, %v2024_v40  ;;  %v2199_v51 = vadd.f32 %v2198_v61, %v2085_v32  ;;  %v2220_v5 = vadd.f32 %v2219_v2, %v2086_v48  ;;  %v9778_v40 = vld [vmem:[#allocation28_spill] sm:$0xff]  ;;  %v9779_v61 = vld [vmem:[#allocation82_spill] sm:$0xff] }
 0x2c6   : > { %v7393_v60 = vpop.f32.mrf.mxu0  ;;  %9776 = vst [vmem:[#allocation101_spill] sm:$0xff] %v7408_v7  ;;  %v7412_v29 = vpop.f32.mrf.mxu2  ;;  %v2273_v14 = vmul.f32 %v2125_v41, %v6419_v63  ;;  %v7425_v11 = vadd.f32 1e-05, %v2274_v9  ;;  %v2090_v2 = vmul.f32 %v9779_v61, %v9779_v61  ;;  %v2036_v49 = vmul.f32 %v7408_v7, %v7408_v7  ;;  %v9781_v7 = vld [vmem:[#allocation83_spill] sm:$0xff] }
 0x2c7   : > { %v2165_v30 = vadd.f32 %v2164_v19, %v2163_v57  ;;  %9777 = vst [vmem:[#allocation102_spill] sm:$0xff] %v7418_v28  ;;  %v2179_v18 = vadd.f32 %v2178_v45, %v2028_v13  ;;  %v2089_v57 = vmul.f32 %v9778_v40, %v9778_v40  ;;  %v2040_v45 = vmul.f32 %v7418_v28, %v7418_v28  ;;  %v9780_v40 = vld [vmem:[#allocation27_spill] sm:$0xff]  ;;  %v9785_v28 = vld [vmem:[#allocation85_spill] sm:$0xff] }
 0x2c8   : > { %v2221_v13 = vadd.f32 %v2220_v5, %v2090_v2  ;;  %v7437_v8 = vadd.f32 1e-05, %v2273_v14  ;;  %5681 = vrsqrt.f32 %v7425_v11  ;;  %v2093_v61 = vmul.f32 %v9780_v40, %v9780_v40 }
 0x2c9   : > { %v7414_v25 = vpop.f32.mrf.mxu3  ;;  %v2166_v32 = vrot.slane %v2165_v30, 1  ;;  %v2180_v17 = vadd.f32 %v2179_v18, %v2032_v47  ;;  %v2200_v19 = vadd.f32 %v2199_v51, %v2089_v57  ;;  %v2094_v51 = vmul.f32 %v9781_v7, %v9781_v7 }
 0x2ca   : > { %5683 = vrsqrt.f32 %v7437_v8  ;;  %vm2306_vm2 = vweird.f32 %v7425_v11  ;;  %vm2296_vm3 = vweird.f32 %v7437_v8 }
 0x2cb   : > { %v2167_v48 = vadd.f32 %v2166_v32, %v2165_v30  ;;  %v2181_v41 = vadd.f32 %v2180_v17, %v2036_v49  ;;  %v2201_v47 = vadd.f32 %v2200_v19, %v2093_v61  ;;  %v2222_v14 = vadd.f32 %v2221_v13, %v2094_v51  ;;  %v9782_v49 = vld [vmem:[#allocation29_spill] sm:$0xff] }
 0x2cc   : > { %v7422_v62 = vpop.f32.mrf.mxu1  ;;  %v2097_v17 = vmul.f32 %v9782_v49, %v9782_v49  ;;  %v9784_v13 = vld [vmem:[#allocation9_spill] sm:$0xff]  ;;  %v2102_v49 = vmul.f32 %v9785_v28, %v9785_v28 }
 0x2cd   : > { %v2275_v23 = vmul.f32 %v2167_v48, %v6419_v63  ;;  %v2182_v30 = vadd.f32 %v2181_v41, %v2040_v45  ;;  %v9783_v48 = vld [vmem:[#allocation84_spill] sm:$0xff]  ;;  %v2101_v51 = vmul.f32 %v9784_v13, %v9784_v13 }
 0x2ce   : > { %v7435_v9 = vpop.f32.mrf.mxu0  ;;  %v7445_v5 = vpop.f32.mrf.mxu2  ;;  %v2098_v7 = vmul.f32 %v9783_v48, %v9783_v48 }
 0x2cf   : > { %v7447_v18 = vadd.f32 1e-05, %v2275_v23  ;;  %v2183_v32 = vrot.slane %v2182_v30, 4  ;;  %v7459_v61 = vpop.eup %5681  ;;  %v2202_v23 = vadd.f32 %v2201_v47, %v2097_v17 }
 0x2d0   : > { %v2223_v19 = vadd.f32 %v2222_v14, %v2098_v7  ;;  %v2301_v40 = vmul.f32 %v7459_v61, %v7425_v11  ;;  %vm2307_vm1 = vweird.f32 %v7459_v61 }
 0x2d1   : > { %v7449_v57 = vpop.f32.mrf.mxu3  ;;  %5685 = vrsqrt.f32 %v7447_v18  ;;  %v2184_v45 = vadd.f32 %v2183_v32, %v2182_v30  ;;  %v7471_v30 = vpop.eup %5683  ;;  %v2203_v32 = vadd.f32 %v2202_v23, %v2101_v51  ;;  %v5580_v23 = vld [vmem:[%s9370_s4 + $0x90] sm:$0xff]  ;;  %vm7552_vm5 = vmor %vm2306_vm2, %vm2307_vm1  ;;  %vm2316_vm8 = vweird.f32 %v7447_v18 }
 0x2d2   : > { %v2224_v14 = vadd.f32 %v2223_v19, %v2102_v49  ;;  %v2291_v20 = vmul.f32 %v7471_v30, %v7437_v8  ;;  %v5588_v49 = vld [vmem:[%s9370_s4 + $0xd0] sm:$0xff]  ;;  %3632 = vmatpush.bf16.msrb.mxu2 %v5580_v23  ;;  %v5563_v23 = vld [vmem:[%s9370_s4 + $0x8] sm:$0xff]  ;;  %vm2297_vm4 = vweird.f32 %v7471_v30 }
 0x2d3   : > { %v2185_v41 = vrot.slane %v2184_v45, 2  ;;  %v2204_v28 = vrot.slane %v2203_v32, 4  ;;  %v5564_v19 = vld [vmem:[%s9370_s4 + $0x10] sm:$0xff]  ;;  %3721 = vmatpush.bf16.msrb.mxu3 %v5588_v49  ;;  %vm2298_vm14 = vmor %vm2296_vm3, %vm2297_vm4 }
 0x2d4   : > { %v7451_v2 = vpop.f32.mrf.mxu1  ;;  %v2225_v51 = vrot.slane %v2224_v14, 4  ;;  %3454 = vmatpush.bf16.msra.mxu0 %v5564_v19  ;;  %v5571_v19 = vld [vmem:[%s9370_s4 + $0x48] sm:$0xff] }
 0x2d5   : > { %v2186_v42 = vadd.f32 %v2185_v41, %v2184_v45  ;;  %v2302_v45 = vmul.f32 %v7459_v61, %v2301_v40 }
 0x2d6   : > { %v7467_v10 = vpop.f32.mrf.mxu2  ;;  %v7469_v48 = vpop.f32.mrf.mxu0  ;;  %3633 = vmatpush.bf16.msrb.mxu2 %v5579_v46  ;;  %v5570_v46 = vld [vmem:[%s9370_s4 + $0x40] sm:$0xff] }
 0x2d7   : > { %v7475_v7 = vpop.eup %5685  ;;  %v2187_v17 = vrot.slane %v2186_v42, 1  ;;  %v2303_v36 = vmul.f32 0.5, %v2302_v45 }
 0x2d8   : > { %v2311_v6 = vmul.f32 %v7475_v7, %v7447_v18  ;;  %3455 = vmatpush.bf16.msra.mxu0 %v5563_v23  ;;  %vm2317_vm7 = vweird.f32 %v7475_v7 }
 0x2d9   : > { %v7473_v47 = vpop.f32.mrf.mxu3  ;;  %v2188_v41 = vadd.f32 %v2187_v17, %v2186_v42  ;;  %v5572_v42 = vld [vmem:[%s9370_s4 + $0x50] sm:$0xff]  ;;  %v2292_v17 = vmul.f32 %v7471_v30, %v2291_v20  ;;  %v2205_v20 = vadd.f32 %v2204_v28, %v2203_v32  ;;  %v5578_v28 = vld [vmem:[%s9370_s4 + $0x80] sm:$0xff]  ;;  %v2304_v3 = vsub.f32 1.5, %v2303_v36  ;;  %vm7583_vm10 = vmor %vm2316_vm8, %vm2317_vm7 }
 0x2da   : > { %3543 = vmatpush.bf16.msrb.mxu1 %v5572_v42  ;;  %v2312_v45 = vmul.f32 %v7475_v7, %v2311_v6  ;;  %v2226_v42 = vadd.f32 %v2225_v51, %v2224_v14  ;;  %v5586_v6 = vld [vmem:[%s9370_s4 + $0xc0] sm:$0xff]  ;;  %3634 = vmatpush.bf16.msrb.mxu2 %v5578_v28  ;;  %v7542_v28 = vadd.f32 %v7325_v4, %v7180_v34 }
 0x2db   : > { %v2276_v40 = vmul.f32 %v2188_v41, %v6419_v63  ;;  %v5587_v41 = vld [vmem:[%s9370_s4 + $0xc8] sm:$0xff]  ;;  %v2293_v32 = vmul.f32 0.5, %v2292_v17  ;;  %v5562_v14 = vld [vmem:[%s9370_s4] sm:$0xff]  ;;  %v2206_v51 = vrot.slane %v2205_v20, 2  ;;  %v2305_v17 = vmul.f32 %v7459_v61, %v2304_v3 }
 0x2dc   : > { %v7477_v13 = vpop.f32.mrf.mxu1  ;;  %3722 = vmatpush.bf16.msrb.mxu3 %v5587_v41  ;;  %v2313_v41 = vmul.f32 0.5, %v2312_v45  ;;  %v2227_v24 = vrot.slane %v2226_v42, 2  ;;  %3456 = vmatpush.bf16.msra.mxu0 %v5562_v14  ;;  %v7546_v3 = vadd.f32 %v7372_v27, %v7370_v58  ;;  %v7562_v58 = vadd.f32 %v7380_v26, %v7251_v1 }
 0x2dd   : > { %v7498_v50 = vadd.f32 1e-05, %v2276_v40  ;;  %v2294_v35 = vsub.f32 1.5, %v2293_v32  ;;  %v2207_v23 = vadd.f32 %v2206_v51, %v2205_v20  ;;  %v2309_v4 = vsel %vm7552_vm5, %v7459_v61, %v2305_v17 }
 0x2de   : > { %v7509_v49 = vpop.f32.mrf.mxu2  ;;  %v7520_v55 = vpop.f32.mrf.mxu0  ;;  %3544 = vmatpush.bf16.msrb.mxu1 %v5571_v19  ;;  %v2314_v19 = vsub.f32 1.5, %v2313_v41  ;;  %v2228_v45 = vadd.f32 %v2227_v24, %v2226_v42  ;;  %v7566_v27 = vadd.f32 %v7414_v25, %v7412_v29  ;;  %v1796_v14 = vadd.f32 %v7308_v31, %v7542_v28 }
 0x2df   : > { %5687 = vrsqrt.f32 %v7498_v50  ;;  %v2295_v34 = vmul.f32 %v7471_v30, %v2294_v35  ;;  %v2208_v42 = vrot.slane %v2207_v23, 1  ;;  %v1817_v61 = vadd.f32 %v7344_v12, %v7546_v3 }
 0x2e0   : > { %3723 = vmatpush.bf16.msrb.mxu3 %v5586_v6  ;;  %v2315_v32 = vmul.f32 %v7475_v7, %v2314_v19  ;;  %v2229_v35 = vrot.slane %v2228_v45, 1  ;;  %v7576_v1 = vadd.f32 %v7422_v62, %v7327_v39  ;;  %v7581_v29 = vadd.f32 %v7449_v57, %v7445_v5 }
 0x2e1   : > { %v7515_v40 = vpop.f32.mrf.mxu3  ;;  %v2378_v25 = vrot.slane %v2309_v4, 7  ;;  %v1797_v31 = vadd.f32 %v1796_v14, %v7562_v58  ;;  %v1818_v12 = vadd.f32 %v1817_v61, %v7566_v27  ;;  %v7591_v39 = vadd.f32 %v7451_v2, %v7393_v60 }
 0x2e2   : > { %3545 = vmatpush.bf16.msrb.mxu1 %v5570_v46  ;;  %v2319_v18 = vsel %vm7583_vm10, %v7475_v7, %v2315_v32  ;;  %vm2326_vm11 = vweird.f32 %v7498_v50  ;;  %v7599_v57 = vadd.f32 %v7473_v47, %v7467_v10  ;;  %v2209_v41 = vadd.f32 %v2208_v42, %v2207_v23 }
 0x2e3   : > { %v2230_v17 = vadd.f32 %v2229_v35, %v2228_v45  ;;  %v1798_v60 = vadd.f32 %v1797_v31, %v7576_v1  ;;  %v7605_v2 = vadd.f32 %v7477_v13, %v7435_v9  ;;  %v7610_v10 = vadd.f32 %v7515_v40, %v7509_v49  ;;  %v2543_v49 = vld [vmem:[%s9369_s3] sm:$0xf] }
 0x2e4   : > { %v7518_v16 = vpop.f32.mrf.mxu1  ;;  %v2379_v47 = vrot.slane %v2319_v18, 6  ;;  %v2299_v13 = vsel %vm2298_vm14, %v7471_v30, %v2295_v34 }
 0x2e5   : > { %v5688_v33 = vpop.eup %5687  ;;  %v1799_v9 = vadd.f32 %v1798_v60, %v7591_v39  ;;  %v7627_v8 = vadd.f32 %v7518_v16, %v7469_v48  ;;  %v2385_v20 = vsel %vm2384_vm6, %v2299_v13, %v2378_v25  ;;  %v7643_v16 = vmul.f32 %v2209_v41, %v6419_v63 }
 0x2e6   : > { %v7536_v36 = vpop.f32.mrf.mxu2  ;;  %v2321_v37 = vmul.f32 %v5688_v33, %v7498_v50  ;;  %v1389_v11 = vpop.f32.mrf.mxu0  ;;  %vm2327_vm9 = vweird.f32 %v5688_v33  ;;  %v1819_v50 = vadd.f32 %v1818_v12, %v7581_v29 }
 0x2e7   : > { %vm2328_vm12 = vmor %vm2326_vm11, %vm2327_vm9 }
 0x2e8   : > { %v2322_v24 = vmul.f32 %v5688_v33, %v2321_v37  ;;  %v1820_v40 = vadd.f32 %v1819_v50, %v7599_v57  ;;  %v9793_v50 = vld [vmem:[#allocation44_spill] sm:$0xff] }
 0x2e9   : > { %v1651_v53 = vpop.f32.mrf.mxu3 }
 0x2ea   : > { %v2323_v37 = vmul.f32 0.5, %v2322_v24  ;;  %v7630_v45 = vadd.f32 %v1651_v53, %v7536_v36  ;;  %v1800_v24 = vadd.f32 %v1799_v9, %v7605_v2  ;;  %v1821_v42 = vadd.f32 %v1820_v40, %v7610_v10  ;;  %v9794_v9 = vld [vmem:[#allocation60_spill] sm:$0xff] }
 0x2eb   : > { %v7646_v53 = vmul.f32 %v2230_v17, %v6419_v63  ;;  %v7648_v36 = vperm.slane %v2543_v49, 3  ;;  %v9791_v17 = vld [vmem:[#allocation43_spill] sm:$0xff]  ;;  %v7683_v40 = vperm.slane %v2543_v49, 2 }
 0x2ec   : > { %v1475_v6 = vpop.f32.mrf.mxu1  ;;  %v2324_v26 = vsub.f32 1.5, %v2323_v37  ;;  %v1801_v14 = vadd.f32 %v1800_v24, %v7627_v8  ;;  %v1822_v61 = vadd.f32 %v1821_v42, %v7630_v45 }
 0x2ed   : > { %v7638_v32 = vadd.f32 %v1475_v6, %v7520_v55  ;;  %v7654_v6 = vperm.slane %v2543_v49, 0 }
 0x2ee   : > { %v1564_v62 = vpop.f32.mrf.mxu2  ;;  %v2325_v5 = vmul.f32 %v5688_v33, %v2324_v26  ;;  %v1391_v34 = vpop.f32.mrf.mxu0 }
 0x2f0   : > { %v2329_v7 = vsel %vm2328_vm12, %v5688_v33, %v2325_v5  ;;  %v2281_v33 = vld [vmem:[%s9368_s2] sm:$0xf]  ;;  %v1802_v5 = vadd.f32 %v1801_v14, %v7638_v32 }
 0x2f1   : > { %v1653_v51 = vpop.f32.mrf.mxu3  ;;  %v2380_v23 = vrot.slane %v2329_v7, 5 }
 0x2f2   : > { %v7640_v37 = vadd.f32 %v1653_v51, %v1564_v62  ;;  %v7662_v62 = vperm.slane %v2543_v49, 1 }
 0x2f3   : > { %v2387_v30 = vsel %vm2386_vm13, %v2379_v47, %v2380_v23 }
 0x2f4   : > { %v1478_v19 = vpop.f32.mrf.mxu1  ;;  %v2389_v4 = vsel %vm2388_vm15, %v2385_v20, %v2387_v30  ;;  %v1823_v51 = vadd.f32 %v1822_v61, %v7640_v37 }
 0x2f5   : > { %v2395_v48 = vmul.f32 %v2389_v4, %v2281_v33  ;;  %v7652_v26 = vadd.f32 %v1478_v19, %v1389_v11  ;;  %v9792_v19 = vld [vmem:[#allocation59_spill] sm:$0xff] }
 0x2f6   : > { %v1567_v35 = vpop.f32.mrf.mxu2 }
 0x2f7   : > { %v7656_v25 = vperm.slane %v2395_v48, 0  ;;  %v7658_v46 = vperm.slane %v2395_v48, 1  ;;  %v7660_v31 = vperm.slane %v2395_v48, 2  ;;  %v7664_v18 = vperm.slane %v2395_v48, 3 }
 0x2f8   : > { %v1803_v23 = vadd.f32 %v1802_v5, %v7652_v26 }
 0x2f9   : > { %v1656_v55 = vpop.f32.mrf.mxu3  ;;  %v2415_v60 = vmul.f32 %v7656_v25, %v9791_v17  ;;  %v2416_v7 = vmul.f32 %v7658_v46, %v9792_v19  ;;  %v2419_v47 = vmul.f32 %v7656_v25, %v9793_v50  ;;  %v2420_v13 = vmul.f32 %v7658_v46, %v9794_v9  ;;  %v9795_v50 = vld [vmem:[#allocation45_spill] sm:$0xff] }
 0x2fa   : > { %v7668_v11 = vadd.f32 %v1656_v55, %v1567_v35  ;;  %v2417_v33 = vmul.f32 %v7660_v31, %v7128_v52  ;;  %v2418_v42 = vmul.f32 %v7664_v18, %v7204_v0  ;;  %v2421_v48 = vmul.f32 %v7660_v31, %v7132_v15  ;;  %v1394_v55 = vpop.f32.mrf.mxu0 }
 0x2fb   : > { %v2553_v30 = vadd.f32 %v7654_v6, %v2415_v60  ;;  %v2554_v24 = vadd.f32 %v7662_v62, %v2416_v7  ;;  %v2558_v4 = vadd.f32 %v7662_v62, %v2420_v13  ;;  %v2422_v52 = vmul.f32 %v7664_v18, %v7208_v21 }
 0x2fc   : > { %v1480_v12 = vpop.f32.mrf.mxu1  ;;  %9790 = vst [vmem:[#allocation103_spill] sm:$0xff] %v7668_v11  ;;  %v1824_v20 = vadd.f32 %v1823_v51, %v7668_v11  ;;  %v2555_v51 = vadd.f32 %v7683_v40, %v2417_v33  ;;  %v2556_v17 = vadd.f32 %v7648_v36, %v2418_v42  ;;  %v2559_v0 = vadd.f32 %v7683_v40, %v2421_v48  ;;  %v9797_v11 = vld [vmem:[#allocation46_spill] sm:$0xff] }
 0x2fd   : > { %v7670_v41 = vadd.f32 %v1480_v12, %v1391_v34  ;;  %v2557_v34 = vadd.f32 %v7654_v6, %v2419_v47  ;;  %v2681_v35 = vmax.f32 %v2553_v30, 0.0  ;;  %v2682_v14 = vmax.f32 %v2554_v24, 0.0 }
 0x2fe   : > { %v1569_v12 = vpop.f32.mrf.mxu2  ;;  %v2686_v5 = vmax.f32 %v2558_v4, 0.0  ;;  %v2560_v15 = vadd.f32 %v7648_v36, %v2422_v52  ;;  %v2423_v47 = vmul.f32 %v7656_v25, %v9795_v50  ;;  %v2683_v9 = vmax.f32 %v2555_v51, 0.0 }
 0x2ff   : > { %v1804_v49 = vadd.f32 %v1803_v23, %v7670_v41  ;;  %v2685_v61 = vmax.f32 %v2557_v34, 0.0  ;;  %v2809_v19 = vpack.c.bf16 %v2682_v14, %v2681_v35  ;;  %v2684_v13 = vmax.f32 %v2556_v17, 0.0 }
 0x300   : > { %v2687_v30 = vmax.f32 %v2559_v0, 0.0  ;;  %v2688_v34 = vmax.f32 %v2560_v15, 0.0 }
 0x301   : > { %v1658_v60 = vpop.f32.mrf.mxu3  ;;  %v2811_v23 = vpack.c.bf16 %v2686_v5, %v2685_v61  ;;  %v3001_v24 = vunpack.c.l.b16 %v2809_v19  ;;  %v3002_v33 = vunpack.c.h.b16 %v2809_v19  ;;  %v2810_v35 = vpack.c.bf16 %v2684_v13, %v2683_v9  ;;  %v9798_v5 = vld [vmem:[#allocation62_spill] sm:$0xff] }
 0x302   : > { %v7701_v7 = vadd.f32 %v1658_v60, %v1569_v12  ;;  %v2812_v52 = vpack.c.bf16 %v2688_v34, %v2687_v30  ;;  %v9796_v12 = vld [vmem:[#allocation61_spill] sm:$0xff]  ;;  %v2427_v61 = vmul.f32 %v7656_v25, %v9797_v11  ;;  %v2428_v51 = vmul.f32 %v7658_v46, %v9798_v5  ;;  %v1396_v34 = vpop.f32.mrf.mxu0 }
 0x303   : > { %v3005_v42 = vunpack.c.l.b16 %v2811_v23  ;;  %v3006_v48 = vunpack.c.h.b16 %v2811_v23  ;;  %v2424_v60 = vmul.f32 %v7658_v46, %v9796_v12  ;;  %v3003_v19 = vunpack.c.l.b16 %v2810_v35 }
 0x304   : > { %v1483_v21 = vpop.f32.mrf.mxu1  ;;  %v1825_v4 = vadd.f32 %v1824_v20, %v7701_v7  ;;  %v3004_v15 = vunpack.c.h.b16 %v2810_v35  ;;  %v3007_v20 = vunpack.c.l.b16 %v2812_v52  ;;  %v3008_v50 = vunpack.c.h.b16 %v2812_v52 }
 0x305   : > { %v7706_v14 = vadd.f32 %v1483_v21, %v1394_v55  ;;  %v3129_v17 = vpack.c.b16 %v3005_v42, %v3001_v24  ;;  %v3130_v0 = vpack.c.b16 %v3006_v48, %v3002_v33  ;;  %v2561_v21 = vadd.f32 %v7654_v6, %v2423_v47 }
 0x306   : > { %v1572_v55 = vpop.f32.mrf.mxu2  ;;  %v2562_v13 = vadd.f32 %v7662_v62, %v2424_v60  ;;  %v2565_v11 = vadd.f32 %v7654_v6, %v2427_v61  ;;  %v2566_v30 = vadd.f32 %v7662_v62, %v2428_v51  ;;  %v3131_v24 = vpack.c.b16 %v3007_v20, %v3003_v19 }
 0x307   : > { %v1805_v23 = vadd.f32 %v1804_v49, %v7706_v14  ;;  %3457 = vmatmul.bf16.vlgmr.msra.gmra.mxu0 %v3129_v17  ;;  %3546 = vmatmul.bf16.vlgmr.msrb.gmra.mxu1 %v3130_v0  ;;  %v3132_v33 = vpack.c.b16 %v3008_v50, %v3004_v15  ;;  %v2689_v35 = vmax.f32 %v2561_v21, 0.0  ;;  %v7724_v5 = vadd.f32 1e-05, %v7643_v16  ;;  %v9799_v50 = vld [vmem:[#allocation47_spill] sm:$0xff] }
 0x308   : > { %v2690_v52 = vmax.f32 %v2562_v13, 0.0  ;;  %v2693_v47 = vmax.f32 %v2565_v11, 0.0  ;;  %v2694_v12 = vmax.f32 %v2566_v30, 0.0  ;;  %3635 = vmatmul.bf16.vlgmr.msrb.gmra.mxu2 %v3131_v24  ;;  %v2425_v61 = vmul.f32 %v7660_v31, %v7136_v44 }
 0x309   : > { %v1661_v9 = vpop.f32.mrf.mxu3  ;;  %3724 = vmatmul.bf16.vlgmr.msrb.gmra.mxu3 %v3132_v33  ;;  %v2426_v51 = vmul.f32 %v7664_v18, %v7212_v22  ;;  %v2429_v15 = vmul.f32 %v7660_v31, %v7140_v38  ;;  %v2430_v16 = vmul.f32 %v7664_v18, %v7220_v43  ;;  %v2431_v44 = vmul.f32 %v7656_v25, %v9799_v50 }
 0x30a   : > { %v7719_v42 = vadd.f32 %v1661_v9, %v1572_v55  ;;  %v2813_v0 = vpack.c.bf16 %v2690_v52, %v2689_v35  ;;  %v2815_v19 = vpack.c.bf16 %v2694_v12, %v2693_v47  ;;  %v2563_v20 = vadd.f32 %v7683_v40, %v2425_v61 }
 0x30b   : > { %v2567_v13 = vadd.f32 %v7683_v40, %v2429_v15  ;;  %v2568_v11 = vadd.f32 %v7648_v36, %v2430_v16  ;;  %v9802_v16 = vld [vmem:[#allocation64_spill] sm:$0xff]  ;;  %v2569_v50 = vadd.f32 %v7654_v6, %v2431_v44  ;;  %5689 = vrsqrt.f32 %v7724_v5 }
 0x30c   : > { %v1485_v48 = vpop.f32.mrf.mxu1  ;;  %v1826_v60 = vadd.f32 %v1825_v4, %v7719_v42  ;;  %v2564_v4 = vadd.f32 %v7648_v36, %v2426_v51  ;;  %v3009_v21 = vunpack.c.l.b16 %v2813_v0  ;;  %v3013_v22 = vunpack.c.l.b16 %v2815_v19 }
 0x30d   : > { %v7721_v49 = vadd.f32 %v1485_v48, %v1396_v34  ;;  %v3010_v9 = vunpack.c.h.b16 %v2813_v0  ;;  %v2691_v38 = vmax.f32 %v2563_v20, 0.0  ;;  %v9800_v48 = vld [vmem:[#allocation63_spill] sm:$0xff]  ;;  %v2695_v47 = vmax.f32 %v2567_v13, 0.0 }
 0x30e   : > { %v1574_v30 = vpop.f32.mrf.mxu2  ;;  %v3133_v43 = vpack.c.b16 %v3013_v22, %v3009_v21  ;;  %v2692_v33 = vmax.f32 %v2564_v4, 0.0  ;;  %v2432_v35 = vmul.f32 %v7658_v46, %v9800_v48  ;;  %v2696_v12 = vmax.f32 %v2568_v11, 0.0 }
 0x30f   : > { %v1806_v17 = vadd.f32 %v1805_v23, %v7721_v49  ;;  %v3014_v23 = vunpack.c.h.b16 %v2815_v19  ;;  %v9801_v19 = vld [vmem:[#allocation48_spill] sm:$0xff]  ;;  %v2436_v20 = vmul.f32 %v7658_v46, %v9802_v16  ;;  %v2434_v16 = vmul.f32 %v7664_v18, %v7224_v54  ;;  %v9805_v54 = vld [vmem:[#allocation13_spill] sm:$0xff] }
 0x310   : > { %v2814_v0 = vpack.c.bf16 %v2692_v33, %v2691_v38  ;;  %v2435_v15 = vmul.f32 %v7656_v25, %v9801_v19  ;;  %vm2336_vm3 = vweird.f32 %v7724_v5 }
 0x311   : > { %v1807_v55 = vrot.slane %v1806_v17, 4  ;;  %v1663_v34 = vpop.f32.mrf.mxu3  ;;  %v3134_v52 = vpack.c.b16 %v3014_v23, %v3010_v9 }
 0x312   : > { %v7744_v61 = vadd.f32 %v1663_v34, %v1574_v30  ;;  %v3011_v22 = vunpack.c.l.b16 %v2814_v0  ;;  %v3012_v9 = vunpack.c.h.b16 %v2814_v0  ;;  %v2573_v23 = vadd.f32 %v7654_v6, %v2435_v15 }
 0x313   : > { %v1808_v24 = vadd.f32 %v1807_v55, %v1806_v17  ;;  %v2816_v17 = vpack.c.bf16 %v2696_v12, %v2695_v47  ;;  %v2570_v55 = vadd.f32 %v7662_v62, %v2432_v35  ;;  %v2574_v30 = vadd.f32 %v7662_v62, %v2436_v20  ;;  %v9803_v20 = vld [vmem:[#allocation39_spill] sm:$0xff] }
 0x314   : > { %v1827_v4 = vadd.f32 %v1826_v60, %v7744_v61  ;;  %v2697_v34 = vmax.f32 %v2569_v50, 0.0  ;;  %v2701_v47 = vmax.f32 %v2573_v23, 0.0 }
 0x315   : > { %v1809_v51 = vrot.slane %v1808_v24, 2  ;;  %v3015_v13 = vunpack.c.l.b16 %v2816_v17  ;;  %v3016_v11 = vunpack.c.h.b16 %v2816_v17  ;;  %v2698_v48 = vmax.f32 %v2570_v55, 0.0 }
 0x316   : > { %v1828_v38 = vrot.slane %v1827_v4, 4  ;;  %v2702_v44 = vmax.f32 %v2574_v30, 0.0  ;;  %v2437_v17 = vmul.f32 %v7660_v31, %v9803_v20  ;;  %v9808_v30 = vld [vmem:[#allocation86_spill] sm:$0xff] }
 0x317   : > { %v1810_v21 = vadd.f32 %v1809_v51, %v1808_v24  ;;  %v3135_v12 = vpack.c.b16 %v3015_v13, %v3011_v22  ;;  %v3136_v60 = vpack.c.b16 %v3016_v11, %v3012_v9  ;;  %3462 = vmatmul.bf16.gmra.mxu0 %v3133_v43  ;;  %3551 = vmatmul.bf16.gmra.mxu1 %v3134_v52  ;;  %v9804_v9 = vld [vmem:[#allocation10_spill] sm:$0xff]  ;;  %v9806_v11 = vld [vmem:[#allocation16_spill] sm:$0xff] }
 0x318   : > { %v1829_v19 = vadd.f32 %v1828_v38, %v1827_v4  ;;  %v2817_v35 = vpack.c.bf16 %v2698_v48, %v2697_v34  ;;  %v2433_v51 = vmul.f32 %v7660_v31, %v7146_v59  ;;  %v2819_v15 = vpack.c.bf16 %v2702_v44, %v2701_v47 }
 0x319   : > { %v1811_v33 = vrot.slane %v1810_v21, 1  ;;  %v2438_v43 = vmul.f32 %v7664_v18, %v7285_v56  ;;  %3640 = vmatmul.bf16.gmra.mxu2 %v3135_v12  ;;  %3729 = vmatmul.bf16.gmra.mxu3 %v3136_v60  ;;  %v9810_v56 = vld [vmem:[#allocation87_spill] sm:$0xff]  ;;  %v7790_v60 = vpop.eup %5689 }
 0x31a   : > { %v1830_v0 = vrot.slane %v1829_v19, 2  ;;  %v3017_v50 = vunpack.c.l.b16 %v2817_v35  ;;  %v3018_v55 = vunpack.c.h.b16 %v2817_v35  ;;  %v3022_v59 = vunpack.c.h.b16 %v2819_v15 }
 0x31b   : > { %v1812_v24 = vadd.f32 %v1811_v33, %v1810_v21  ;;  %v3021_v21 = vunpack.c.l.b16 %v2819_v15  ;;  %v2571_v22 = vadd.f32 %v7683_v40, %v2433_v51  ;;  %vm2337_vm2 = vweird.f32 %v7790_v60 }
 0x31c   : > { %v1831_v52 = vadd.f32 %v1830_v0, %v1829_v19  ;;  %vm2338_vm12 = vmor %vm2336_vm3, %vm2337_vm2  ;;  %vm4790_vm3 = vcmask 31744  }
 0x31d   : > { %v1847_v4 = vmul.f32 %v6419_v63, %v1812_v24 }
 0x31f   : > { %v7767_v23 = vsub.f32 %v9804_v9, %v1847_v4  ;;  %v7770_v13 = vsub.f32 %v9805_v54, %v1847_v4  ;;  %v7773_v38 = vsub.f32 %v9806_v11, %v1847_v4  ;;  %v7776_v33 = vsub.f32 %v9808_v30, %v1847_v4 }
 0x320   : > { %v7779_v34 = vsub.f32 %v9810_v56, %v1847_v4  ;;  %v7782_v48 = vsub.f32 %v7542_v28, %v1847_v4  ;;  %v7785_v47 = vsub.f32 %v7562_v58, %v1847_v4  ;;  %v7788_v12 = vsub.f32 %v7576_v1, %v1847_v4 }
 0x321   : > { %9807 = vst [vmem:[#allocation43_spill] sm:$0xff] %v7773_v38  ;;  %v7793_v19 = vsub.f32 %v7591_v39, %v1847_v4  ;;  %v7796_v44 = vsub.f32 %v7605_v2, %v1847_v4  ;;  %v7799_v24 = vsub.f32 %v7627_v8, %v1847_v4  ;;  %v7802_v28 = vsub.f32 %v7638_v32, %v1847_v4 }
 0x322   : > { %9809 = vst [vmem:[#allocation59_spill] sm:$0xff] %v7776_v33  ;;  %v7805_v58 = vsub.f32 %v7652_v26, %v1847_v4  ;;  %v7808_v1 = vsub.f32 %v7670_v41, %v1847_v4  ;;  %v7811_v35 = vsub.f32 %v7706_v14, %v1847_v4  ;;  %v7814_v39 = vsub.f32 %v7721_v49, %v1847_v4 }
 0x323   : > { %9811 = vst [vmem:[#allocation44_spill] sm:$0xff] %v7779_v34  ;;  %v2043_v2 = vmul.f32 %v7767_v23, %v7767_v23  ;;  %v2047_v8 = vmul.f32 %v7770_v13, %v7770_v13  ;;  %v2051_v32 = vmul.f32 %v7773_v38, %v7773_v38  ;;  %v2055_v26 = vmul.f32 %v7776_v33, %v7776_v33  ;;  %v9824_v33 = vld [vmem:[#allocation65_spill] sm:$0xff] }
 0x324   : > { %9812 = vst [vmem:[#allocation60_spill] sm:$0xff] %v7782_v48  ;;  %v2059_v41 = vmul.f32 %v7779_v34, %v7779_v34  ;;  %v2063_v14 = vmul.f32 %v7782_v48, %v7782_v48  ;;  %v2067_v49 = vmul.f32 %v7785_v47, %v7785_v47  ;;  %v2071_v51 = vmul.f32 %v7788_v12, %v7788_v12  ;;  %v9823_v34 = vld [vmem:[#allocation49_spill] sm:$0xff] }
 0x325   : > { %9813 = vst [vmem:[#allocation45_spill] sm:$0xff] %v7785_v47  ;;  %v7834_v0 = vmul.f32 %v7793_v19, %v7793_v19  ;;  %v7838_v15 = vmul.f32 %v7796_v44, %v7796_v44  ;;  %v7842_v20 = vmul.f32 %v7799_v24, %v7799_v24  ;;  %v7846_v4 = vmul.f32 %v7802_v28, %v7802_v28 }
 0x326   : > { %9814 = vst [vmem:[#allocation61_spill] sm:$0xff] %v7788_v12  ;;  %v7850_v9 = vmul.f32 %v7805_v58, %v7805_v58  ;;  %v7854_v54 = vmul.f32 %v7808_v1, %v7808_v1  ;;  %v7858_v11 = vmul.f32 %v7811_v35, %v7811_v35  ;;  %v7862_v30 = vmul.f32 %v7814_v39, %v7814_v39 }
 0x327   : > { %9815 = vst [vmem:[#allocation46_spill] sm:$0xff] %v7793_v19  ;;  %v2231_v56 = vadd.f32 %v2047_v8, %v2043_v2  ;;  %v2572_v19 = vadd.f32 %v7648_v36, %v2434_v16  ;;  %v2576_v12 = vadd.f32 %v7648_v36, %v2438_v43  ;;  %v7874_v16 = vadd.f32 1e-05, %v7646_v53  ;;  %v9828_v53 = vld [vmem:[#allocation8_spill] sm:$0xff] }
 0x328   : > { %9816 = vst [vmem:[#allocation62_spill] sm:$0xff] %v7796_v44  ;;  %v3138_v44 = vpack.c.b16 %v3022_v59, %v3018_v55 }
 0x329   : > { %9817 = vst [vmem:[#allocation47_spill] sm:$0xff] %v7799_v24  ;;  %v1832_v24 = vrot.slane %v1831_v52, 1  ;;  %v2232_v47 = vadd.f32 %v2231_v56, %v2051_v32  ;;  %v2700_v38 = vmax.f32 %v2572_v19, 0.0  ;;  %v2704_v8 = vmax.f32 %v2576_v12, 0.0  ;;  %v9827_v19 = vld [vmem:[#allocation38_spill] sm:$0xff]  ;;  %v9831_v32 = vld [vmem:[#allocation93_spill] sm:$0xff] }
 0x32a   : > { %9818 = vst [vmem:[#allocation63_spill] sm:$0xff] %v7802_v28  ;;  %v3137_v28 = vpack.c.b16 %v3021_v21, %v3017_v50  ;;  %v9825_v50 = vld [vmem:[#allocation50_spill] sm:$0xff]  ;;  %3556 = vmatmul.bf16.gmra.mxu1 %v3138_v44  ;;  %v9830_v44 = vld [vmem:[#allocation88_spill] sm:$0xff]  ;;  %5691 = vrsqrt.f32 %v7874_v16  ;;  %vm2346_vm0 = vweird.f32 %v7874_v16 }
 0x32b   : > { %9819 = vst [vmem:[#allocation48_spill] sm:$0xff] %v7805_v58  ;;  %v2575_v58 = vadd.f32 %v7683_v40, %v2437_v17  ;;  %v1833_v48 = vadd.f32 %v1832_v24, %v1831_v52  ;;  %v2443_v55 = vmul.f32 %v7656_v25, %v9825_v50  ;;  %v2233_v17 = vadd.f32 %v2232_v47, %v2055_v26  ;;  %v9826_v52 = vld [vmem:[#allocation66_spill] sm:$0xff]  ;;  %v9829_v47 = vld [vmem:[#allocation41_spill] sm:$0xff] }
 0x32c   : > { %9820 = vst [vmem:[#allocation64_spill] sm:$0xff] %v7808_v1  ;;  %v2699_v1 = vmax.f32 %v2571_v22, 0.0  ;;  %3467 = vmatmul.bf16.gmra.mxu0 %v3137_v28  ;;  %v2444_v21 = vmul.f32 %v7658_v46, %v9826_v52 }
 0x32d   : > { %9821 = vst [vmem:[#allocation39_spill] sm:$0xff] %v7811_v35  ;;  %v2439_v35 = vmul.f32 %v7656_v25, %v9823_v34  ;;  %v2703_v2 = vmax.f32 %v2575_v58, 0.0  ;;  %v1848_v43 = vmul.f32 %v6419_v63, %v1833_v48  ;;  %v2234_v12 = vadd.f32 %v2233_v17, %v2059_v41 }
 0x32e   : > { %9822 = vst [vmem:[#allocation10_spill] sm:$0xff] %v7814_v39  ;;  %v2440_v39 = vmul.f32 %v7658_v46, %v9824_v33  ;;  %v2818_v59 = vpack.c.bf16 %v2700_v38, %v2699_v1 }
 0x32f   : > { %v2820_v22 = vpack.c.bf16 %v2704_v8, %v2703_v2  ;;  %v2577_v33 = vadd.f32 %v7654_v6, %v2439_v35  ;;  %v7882_v24 = vsub.f32 %v9827_v19, %v1848_v43  ;;  %v7885_v58 = vsub.f32 %v9828_v53, %v1848_v43 }
 0x330   : > { %v2578_v34 = vadd.f32 %v7662_v62, %v2440_v39  ;;  %v7888_v48 = vsub.f32 %v9829_v47, %v1848_v43  ;;  %v7891_v28 = vsub.f32 %v9830_v44, %v1848_v43  ;;  %v7894_v38 = vsub.f32 %v9831_v32, %v1848_v43 }
 0x331   : > { %v7897_v1 = vsub.f32 %v7546_v3, %v1848_v43  ;;  %v7900_v35 = vsub.f32 %v7566_v27, %v1848_v43  ;;  %v2235_v39 = vadd.f32 %v2234_v12, %v2063_v14  ;;  %v7903_v26 = vsub.f32 %v7581_v29, %v1848_v43  ;;  %v9840_v3 = vld [vmem:[#allocation103_spill] sm:$0xff] }
 0x332   : > { %9832 = vst [vmem:[#allocation13_spill] sm:$0xff] %v7894_v38  ;;  %v7906_v41 = vsub.f32 %v7599_v57, %v1848_v43  ;;  %v7909_v56 = vsub.f32 %v7610_v10, %v1848_v43  ;;  %v7912_v2 = vsub.f32 %v7630_v45, %v1848_v43  ;;  %v7915_v8 = vsub.f32 %v7640_v37, %v1848_v43 }
 0x333   : > { %9833 = vst [vmem:[#allocation16_spill] sm:$0xff] %v7897_v1  ;;  %v7918_v50 = vsub.f32 %v9840_v3, %v1848_v43  ;;  %v7921_v27 = vsub.f32 %v7701_v7, %v1848_v43  ;;  %v2236_v29 = vadd.f32 %v2235_v39, %v2067_v49  ;;  %v7924_v14 = vsub.f32 %v7719_v42, %v1848_v43 }
 0x334   : > { %9834 = vst [vmem:[#allocation86_spill] sm:$0xff] %v7900_v35  ;;  %v7927_v57 = vsub.f32 %v7744_v61, %v1848_v43  ;;  %v2044_v10 = vmul.f32 %v7882_v24, %v7882_v24  ;;  %v2048_v45 = vmul.f32 %v7885_v58, %v7885_v58  ;;  %v2052_v37 = vmul.f32 %v7888_v48, %v7888_v48 }
 0x335   : > { %9835 = vst [vmem:[#allocation87_spill] sm:$0xff] %v7903_v26  ;;  %v2056_v7 = vmul.f32 %v7891_v28, %v7891_v28  ;;  %v2060_v49 = vmul.f32 %v7894_v38, %v7894_v38  ;;  %v2237_v42 = vadd.f32 %v2236_v29, %v2071_v51  ;;  %v2064_v61 = vmul.f32 %v7897_v1, %v7897_v1 }
 0x336   : > { %9836 = vst [vmem:[#allocation49_spill] sm:$0xff] %v7906_v41  ;;  %v2068_v17 = vmul.f32 %v7900_v35, %v7900_v35  ;;  %v2072_v43 = vmul.f32 %v7903_v26, %v7903_v26  ;;  %v7947_v52 = vmul.f32 %v7906_v41, %v7906_v41  ;;  %v7951_v12 = vmul.f32 %v7909_v56, %v7909_v56 }
 0x337   : > { %9837 = vst [vmem:[#allocation65_spill] sm:$0xff] %v7909_v56  ;;  %v7955_v51 = vmul.f32 %v7912_v2, %v7912_v2  ;;  %v7959_v19 = vmul.f32 %v7915_v8, %v7915_v8  ;;  %v2238_v53 = vadd.f32 %v2237_v42, %v7834_v0  ;;  %v7964_v47 = vmul.f32 %v7918_v50, %v7918_v50 }
 0x338   : > { %9838 = vst [vmem:[#allocation50_spill] sm:$0xff] %v7912_v2  ;;  %v7968_v44 = vmul.f32 %v7921_v27, %v7921_v27  ;;  %v7972_v32 = vmul.f32 %v7924_v14, %v7924_v14  ;;  %v7976_v39 = vmul.f32 %v7927_v57, %v7927_v57  ;;  %v2252_v3 = vadd.f32 %v2048_v45, %v2044_v10  ;;  %v9845_v45 = vld [vmem:[#allocation40_spill] sm:$0xff] }
 0x339   : > { %9839 = vst [vmem:[#allocation66_spill] sm:$0xff] %v7915_v8  ;;  %v3019_v29 = vunpack.c.l.b16 %v2818_v59  ;;  %v3023_v8 = vunpack.c.l.b16 %v2820_v22  ;;  %v2239_v0 = vadd.f32 %v2238_v53, %v7838_v15  ;;  %v3020_v42 = vunpack.c.h.b16 %v2818_v59  ;;  %v9846_v59 = vld [vmem:[#allocation90_spill] sm:$0xff] }
 0x33a   : > { %9841 = vst [vmem:[#allocation38_spill] sm:$0xff] %v7918_v50  ;;  %v3024_v50 = vunpack.c.h.b16 %v2820_v22  ;;  %v2581_v2 = vadd.f32 %v7654_v6, %v2443_v55  ;;  %v2253_v56 = vadd.f32 %v2252_v3, %v2052_v37  ;;  %v2582_v41 = vadd.f32 %v7662_v62, %v2444_v21  ;;  %v9847_v21 = vld [vmem:[#allocation19_spill] sm:$0xff] }
 0x33b   : > { %9842 = vst [vmem:[#allocation8_spill] sm:$0xff] %v7921_v27  ;;  %v3139_v27 = vpack.c.b16 %v3023_v8, %v3019_v29  ;;  %v2705_v26 = vmax.f32 %v2577_v33, 0.0  ;;  %v2706_v1 = vmax.f32 %v2578_v34, 0.0  ;;  %v2441_v15 = vmul.f32 %v7660_v31, %v9845_v45  ;;  %v9849_v45 = vld [vmem:[#allocation51_spill] sm:$0xff] }
 0x33c   : > { %9843 = vst [vmem:[#allocation41_spill] sm:$0xff] %v7924_v14  ;;  %v2240_v14 = vadd.f32 %v2239_v0, %v7842_v20  ;;  %v3140_v35 = vpack.c.b16 %v3024_v50, %v3020_v42  ;;  %v2254_v38 = vadd.f32 %v2253_v56, %v2056_v7  ;;  %v2710_v10 = vmax.f32 %v2582_v41, 0.0  ;;  %v9848_v20 = vld [vmem:[#allocation92_spill] sm:$0xff] }
 0x33d   : > { %9844 = vst [vmem:[#allocation88_spill] sm:$0xff] %v7927_v57  ;;  %v2709_v57 = vmax.f32 %v2581_v2, 0.0  ;;  %3645 = vmatmul.bf16.gmra.mxu2 %v3139_v27  ;;  %v2442_v22 = vmul.f32 %v7664_v18, %v9846_v59  ;;  %v2821_v8 = vpack.c.bf16 %v2706_v1, %v2705_v26  ;;  %v2445_v33 = vmul.f32 %v7660_v31, %v9847_v21 }
 0x33e   : > { %v2241_v55 = vadd.f32 %v2240_v14, %v7846_v4  ;;  %3734 = vmatmul.bf16.gmra.mxu3 %v3140_v35  ;;  %v2446_v34 = vmul.f32 %v7664_v18, %v9848_v20  ;;  %v2255_v2 = vadd.f32 %v2254_v38, %v2060_v49  ;;  %v2579_v41 = vadd.f32 %v7683_v40, %v2441_v15 }
 0x33f   : > { %v2823_v56 = vpack.c.bf16 %v2710_v10, %v2709_v57  ;;  %v2580_v50 = vadd.f32 %v7648_v36, %v2442_v22  ;;  %v3025_v37 = vunpack.c.l.b16 %v2821_v8  ;;  %v3026_v7 = vunpack.c.h.b16 %v2821_v8 }
 0x340   : > { %v2242_v27 = vadd.f32 %v2241_v55, %v7850_v9  ;;  %v2583_v4 = vadd.f32 %v7683_v40, %v2445_v33  ;;  %v2256_v35 = vadd.f32 %v2255_v2, %v2064_v61  ;;  %v2584_v14 = vadd.f32 %v7648_v36, %v2446_v34  ;;  %v9850_v61 = vld [vmem:[#allocation67_spill] sm:$0xff]  ;;  %v9851_v55 = vld [vmem:[#allocation52_spill] sm:$0xff] }
 0x341   : > { %v3029_v1 = vunpack.c.l.b16 %v2823_v56  ;;  %v3030_v26 = vunpack.c.h.b16 %v2823_v56  ;;  %v2707_v3 = vmax.f32 %v2579_v41, 0.0  ;;  %v2708_v38 = vmax.f32 %v2580_v50, 0.0  ;;  %v9852_v33 = vld [vmem:[#allocation68_spill] sm:$0xff] }
 0x342   : > { %v2243_v53 = vadd.f32 %v2242_v27, %v7854_v54  ;;  %v2711_v57 = vmax.f32 %v2583_v4, 0.0  ;;  %v2257_v49 = vadd.f32 %v2256_v35, %v2068_v17  ;;  %v2712_v42 = vmax.f32 %v2584_v14, 0.0 }
 0x343   : > { %v3141_v29 = vpack.c.b16 %v3029_v1, %v3025_v37  ;;  %v3142_v0 = vpack.c.b16 %v3030_v26, %v3026_v7  ;;  %v2822_v10 = vpack.c.bf16 %v2708_v38, %v2707_v3  ;;  %v2447_v15 = vmul.f32 %v7656_v25, %v9849_v45  ;;  %v9853_v38 = vld [vmem:[#allocation42_spill] sm:$0xff]  ;;  %v9856_v45 = vld [vmem:[#allocation96_spill] sm:$0xff] }
 0x344   : > { %v2244_v9 = vadd.f32 %v2243_v53, %v7858_v11  ;;  %v2448_v59 = vmul.f32 %v7658_v46, %v9850_v61  ;;  %v2258_v22 = vadd.f32 %v2257_v49, %v2072_v43  ;;  %v2824_v54 = vpack.c.bf16 %v2712_v42, %v2711_v57  ;;  %v8014_v53 = vpop.eup %5691  ;;  %v9854_v49 = vld [vmem:[#allocation95_spill] sm:$0xff] }
 0x345   : > { %3472 = vmatmul.bf16.gmra.mxu0 %v3141_v29  ;;  %3561 = vmatmul.bf16.gmra.mxu1 %v3142_v0  ;;  %v2451_v17 = vmul.f32 %v7656_v25, %v9851_v55  ;;  %v3027_v21 = vunpack.c.l.b16 %v2822_v10  ;;  %v3028_v11 = vunpack.c.h.b16 %v2822_v10  ;;  %v2452_v20 = vmul.f32 %v7658_v46, %v9852_v33  ;;  %v9855_v0 = vld [vmem:[#allocation32_spill] sm:$0xff] }
 0x346   : > { %v2245_v8 = vadd.f32 %v2244_v9, %v7862_v30  ;;  %v2259_v34 = vadd.f32 %v2258_v22, %v7947_v52  ;;  %v3031_v2 = vunpack.c.l.b16 %v2824_v54  ;;  %v3032_v56 = vunpack.c.h.b16 %v2824_v54 }
 0x347   : > { %v2585_v41 = vadd.f32 %v7654_v6, %v2447_v15  ;;  %v2586_v50 = vadd.f32 %v7662_v62, %v2448_v59  ;;  %v2589_v27 = vadd.f32 %v7654_v6, %v2451_v17  ;;  %v2590_v37 = vadd.f32 %v7662_v62, %v2452_v20 }
 0x348   : > { %v2246_v43 = vrot.slane %v2245_v8, 4  ;;  %v2260_v30 = vadd.f32 %v2259_v34, %v7951_v12  ;;  %v3143_v7 = vpack.c.b16 %v3031_v2, %v3027_v21  ;;  %v3144_v4 = vpack.c.b16 %v3032_v56, %v3028_v11 }
 0x349   : > { %v2713_v35 = vmax.f32 %v2585_v41, 0.0  ;;  %v2714_v26 = vmax.f32 %v2586_v50, 0.0  ;;  %v2717_v14 = vmax.f32 %v2589_v27, 0.0  ;;  %v2718_v52 = vmax.f32 %v2590_v37, 0.0  ;;  %v9857_v27 = vld [vmem:[#allocation53_spill] sm:$0xff] }
 0x34a   : > { %v2247_v1 = vadd.f32 %v2246_v43, %v2245_v8  ;;  %v2261_v3 = vadd.f32 %v2260_v30, %v7955_v51  ;;  %v2449_v57 = vmul.f32 %v7660_v31, %v9853_v38  ;;  %v2450_v29 = vmul.f32 %v7664_v18, %v9854_v49 }
 0x34b   : > { %v2453_v12 = vmul.f32 %v7660_v31, %v9855_v0  ;;  %v2825_v9 = vpack.c.bf16 %v2714_v26, %v2713_v35  ;;  %v2827_v10 = vpack.c.bf16 %v2718_v52, %v2717_v14  ;;  %v2454_v15 = vmul.f32 %v7664_v18, %v9856_v45  ;;  %v9859_v35 = vld [vmem:[#allocation54_spill] sm:$0xff] }
 0x34c   : > { %v2248_v42 = vrot.slane %v2247_v1, 2  ;;  %v2262_v61 = vadd.f32 %v2261_v3, %v7959_v19  ;;  %v2587_v51 = vadd.f32 %v7683_v40, %v2449_v57  ;;  %v2588_v59 = vadd.f32 %v7648_v36, %v2450_v29  ;;  %v9860_v52 = vld [vmem:[#allocation70_spill] sm:$0xff] }
 0x34d   : > { %3650 = vmatmul.bf16.gmra.mxu2 %v3143_v7  ;;  %v2591_v22 = vadd.f32 %v7683_v40, %v2453_v12  ;;  %v3033_v55 = vunpack.c.l.b16 %v2825_v9  ;;  %v3037_v17 = vunpack.c.l.b16 %v2827_v10  ;;  %v3034_v8 = vunpack.c.h.b16 %v2825_v9 }
 0x34e   : > { %v2249_v54 = vadd.f32 %v2248_v42, %v2247_v1  ;;  %3739 = vmatmul.bf16.gmra.mxu3 %v3144_v4  ;;  %v2263_v21 = vadd.f32 %v2262_v61, %v7964_v47  ;;  %v3038_v11 = vunpack.c.h.b16 %v2827_v10  ;;  %v2592_v33 = vadd.f32 %v7648_v36, %v2454_v15  ;;  %v9858_v4 = vld [vmem:[#allocation69_spill] sm:$0xff] }
 0x34f   : > { %v2715_v20 = vmax.f32 %v2587_v51, 0.0  ;;  %v3145_v19 = vpack.c.b16 %v3037_v17, %v3033_v55  ;;  %v2716_v2 = vmax.f32 %v2588_v59, 0.0  ;;  %v2719_v56 = vmax.f32 %v2591_v22, 0.0  ;;  %v9861_v22 = vld [vmem:[#allocation30_spill] sm:$0xff]  ;;  %v9862_v55 = vld [vmem:[#allocation97_spill] sm:$0xff] }
 0x350   : > { %v2250_v34 = vrot.slane %v2249_v54, 1  ;;  %v2264_v41 = vadd.f32 %v2263_v21, %v7968_v44  ;;  %v3146_v43 = vpack.c.b16 %v3038_v11, %v3034_v8  ;;  %v2720_v50 = vmax.f32 %v2592_v33, 0.0  ;;  %v9863_v8 = vld [vmem:[#allocation18_spill] sm:$0xff] }
 0x351   : > { %v2455_v37 = vmul.f32 %v7656_v25, %v9857_v27  ;;  %v2826_v7 = vpack.c.bf16 %v2716_v2, %v2715_v20  ;;  %v2456_v47 = vmul.f32 %v7658_v46, %v9858_v4  ;;  %v2459_v1 = vmul.f32 %v7656_v25, %v9859_v35  ;;  %v9865_v35 = vld [vmem:[#allocation55_spill] sm:$0xff] }
 0x352   : > { %v2251_v30 = vadd.f32 %v2250_v34, %v2249_v54  ;;  %v2265_v26 = vadd.f32 %v2264_v41, %v7972_v32  ;;  %v2828_v14 = vpack.c.bf16 %v2720_v50, %v2719_v56  ;;  %v2460_v3 = vmul.f32 %v7658_v46, %v9860_v52  ;;  %v9864_v34 = vld [vmem:[#allocation98_spill] sm:$0xff] }
 0x353   : > { %v2593_v44 = vadd.f32 %v7654_v6, %v2455_v37  ;;  %v2594_v57 = vadd.f32 %v7662_v62, %v2456_v47  ;;  %v3035_v29 = vunpack.c.l.b16 %v2826_v7  ;;  %v2597_v12 = vadd.f32 %v7654_v6, %v2459_v1 }
 0x354   : > { %v2279_v38 = vmul.f32 %v2251_v30, %v6419_v63  ;;  %v2266_v49 = vadd.f32 %v2265_v26, %v7976_v39  ;;  %v3039_v0 = vunpack.c.l.b16 %v2828_v14  ;;  %v2598_v32 = vadd.f32 %v7662_v62, %v2460_v3 }
 0x355   : > { %3477 = vmatmul.bf16.gmra.mxu0 %v3145_v19  ;;  %3566 = vmatmul.bf16.gmra.mxu1 %v3146_v43  ;;  %v2721_v9 = vmax.f32 %v2593_v44, 0.0  ;;  %v2722_v10 = vmax.f32 %v2594_v57, 0.0  ;;  %v2725_v15 = vmax.f32 %v2597_v12, 0.0  ;;  %v3036_v61 = vunpack.c.h.b16 %v2826_v7  ;;  %v9866_v44 = vld [vmem:[#allocation71_spill] sm:$0xff] }
 0x356   : > { %v8046_v42 = vadd.f32 1e-05, %v2279_v38  ;;  %v2267_v45 = vrot.slane %v2266_v49, 4  ;;  %v3040_v51 = vunpack.c.h.b16 %v2828_v14  ;;  %v2726_v59 = vmax.f32 %v2598_v32, 0.0 }
 0x357   : > { %v2457_v54 = vmul.f32 %v7660_v31, %v9861_v22  ;;  %v2458_v17 = vmul.f32 %v7664_v18, %v9862_v55  ;;  %v2461_v21 = vmul.f32 %v7660_v31, %v9863_v8  ;;  %v3147_v11 = vpack.c.b16 %v3039_v0, %v3035_v29 }
 0x358   : > { %5693 = vrsqrt.f32 %v8046_v42  ;;  %v2268_v39 = vadd.f32 %v2267_v45, %v2266_v49  ;;  %v2829_v33 = vpack.c.bf16 %v2722_v10, %v2721_v9  ;;  %v2831_v20 = vpack.c.bf16 %v2726_v59, %v2725_v15  ;;  %v9867_v9 = vld [vmem:[#allocation56_spill] sm:$0xff] }
 0x359   : > { %v2462_v19 = vmul.f32 %v7664_v18, %v9864_v34  ;;  %v2595_v56 = vadd.f32 %v7683_v40, %v2457_v54  ;;  %v2596_v41 = vadd.f32 %v7648_v36, %v2458_v17  ;;  %v2599_v43 = vadd.f32 %v7683_v40, %v2461_v21  ;;  %v9868_v45 = vld [vmem:[#allocation72_spill] sm:$0xff] }
 0x35a   : > { %v2269_v2 = vrot.slane %v2268_v39, 2  ;;  %v2331_v50 = vmul.f32 %v7790_v60, %v7724_v5  ;;  %v2341_v27 = vmul.f32 %v8014_v53, %v7874_v16  ;;  %v3148_v37 = vpack.c.b16 %v3040_v51, %v3036_v61 }
 0x35b   : > { %v2600_v30 = vadd.f32 %v7648_v36, %v2462_v19  ;;  %v2723_v4 = vmax.f32 %v2595_v56, 0.0  ;;  %v2724_v47 = vmax.f32 %v2596_v41, 0.0  ;;  %v2463_v1 = vmul.f32 %v7656_v25, %v9865_v35  ;;  %v5597_v41 = vld [vmem:[%s9373_s7 + $0x18] sm:$0xff] }
 0x35c   : > { %v2270_v7 = vadd.f32 %v2269_v2, %v2268_v39  ;;  %v3041_v14 = vunpack.c.l.b16 %v2829_v33  ;;  %v2727_v52 = vmax.f32 %v2599_v43, 0.0  ;;  %v2464_v38 = vmul.f32 %v7658_v46, %v9866_v44  ;;  %4349 = vmatpush.bf16.msrb.mxu0 %v5597_v41 }
 0x35d   : > { %3655 = vmatmul.bf16.gmra.mxu2 %v3147_v11  ;;  %v2728_v3 = vmax.f32 %v2600_v30, 0.0  ;;  %v3045_v49 = vunpack.c.l.b16 %v2831_v20  ;;  %v3042_v29 = vunpack.c.h.b16 %v2829_v33  ;;  %v3046_v0 = vunpack.c.h.b16 %v2831_v20  ;;  %v9869_v30 = vld [vmem:[#allocation37_spill] sm:$0xff] }
 0x35e   : > { %v8068_v26 = vpop.eup %5693  ;;  %3744 = vmatmul.bf16.gmra.mxu3 %v3148_v37  ;;  %v2271_v57 = vrot.slane %v2270_v7, 1  ;;  %v2342_v12 = vmul.f32 %v8014_v53, %v2341_v27  ;;  %v2467_v10 = vmul.f32 %v7656_v25, %v9867_v9  ;;  %v2468_v15 = vmul.f32 %v7658_v46, %v9868_v45  ;;  %v9873_v45 = vld [vmem:[#allocation57_spill] sm:$0xff] }
 0x35f   : > { %v2351_v32 = vmul.f32 %v8068_v26, %v8046_v42  ;;  %v2830_v51 = vpack.c.bf16 %v2724_v47, %v2723_v4  ;;  %v2601_v59 = vadd.f32 %v7654_v6, %v2463_v1  ;;  %v2832_v39 = vpack.c.bf16 %v2728_v3, %v2727_v52  ;;  %v9871_v47 = vld [vmem:[#allocation89_spill] sm:$0xff]  ;;  %v9872_v1 = vld [vmem:[#allocation100_spill] sm:$0xff] }
 0x360   : > { %v2272_v61 = vadd.f32 %v2271_v57, %v2270_v7  ;;  %v2602_v22 = vadd.f32 %v7662_v62, %v2464_v38  ;;  %v2605_v54 = vadd.f32 %v7654_v6, %v2467_v10  ;;  %v3149_v17 = vpack.c.b16 %v3045_v49, %v3041_v14  ;;  %v9870_v7 = vld [vmem:[#allocation99_spill] sm:$0xff] }
 0x361   : > { %v3150_v8 = vpack.c.b16 %v3046_v0, %v3042_v29  ;;  %v2606_v21 = vadd.f32 %v7662_v62, %v2468_v15  ;;  %v2332_v11 = vmul.f32 %v7790_v60, %v2331_v50  ;;  %v2343_v33 = vmul.f32 0.5, %v2342_v12 }
 0x362   : > { %v2280_v55 = vmul.f32 %v2272_v61, %v6419_v63  ;;  %v2352_v20 = vmul.f32 %v8068_v26, %v2351_v32  ;;  %v3043_v19 = vunpack.c.l.b16 %v2830_v51  ;;  %v2729_v2 = vmax.f32 %v2601_v59, 0.0  ;;  %v9874_v59 = vld [vmem:[#allocation73_spill] sm:$0xff] }
 0x363   : > { %v2730_v56 = vmax.f32 %v2602_v22, 0.0  ;;  %v3047_v43 = vunpack.c.l.b16 %v2832_v39  ;;  %v2733_v27 = vmax.f32 %v2605_v54, 0.0  ;;  %v2734_v37 = vmax.f32 %v2606_v21, 0.0  ;;  %v9875_v22 = vld [vmem:[#allocation58_spill] sm:$0xff] }
 0x364   : > { %v8086_v34 = vadd.f32 1e-05, %v2280_v55  ;;  %v2465_v50 = vmul.f32 %v7660_v31, %v9869_v30  ;;  %v2466_v4 = vmul.f32 %v7664_v18, %v9870_v7  ;;  %v2469_v35 = vmul.f32 %v7660_v31, %v9871_v47 }
 0x365   : > { %3482 = vmatmul.bf16.gmra.mxu0 %v3149_v17  ;;  %3571 = vmatmul.bf16.gmra.mxu1 %v3150_v8  ;;  %v2470_v14 = vmul.f32 %v7664_v18, %v9872_v1  ;;  %v2344_v52 = vsub.f32 1.5, %v2343_v33  ;;  %v3044_v3 = vunpack.c.h.b16 %v2830_v51  ;;  %v3048_v44 = vunpack.c.h.b16 %v2832_v39 }
 0x366   : > { %5695 = vrsqrt.f32 %v8086_v34  ;;  %v2333_v38 = vmul.f32 0.5, %v2332_v11  ;;  %v2353_v57 = vmul.f32 0.5, %v2352_v20  ;;  %v2833_v49 = vpack.c.bf16 %v2730_v56, %v2729_v2  ;;  %v9876_v11 = vld [vmem:[#allocation74_spill] sm:$0xff] }
 0x367   : > { %vm2347_vm1 = vweird.f32 %v8014_v53  ;;  %v3151_v29 = vpack.c.b16 %v3047_v43, %v3043_v19  ;;  %v2835_v0 = vpack.c.bf16 %v2734_v37, %v2733_v27  ;;  %v2603_v12 = vadd.f32 %v7683_v40, %v2465_v50 }
 0x368   : > { %v2604_v32 = vadd.f32 %v7648_v36, %v2466_v4  ;;  %v2607_v9 = vadd.f32 %v7683_v40, %v2469_v35  ;;  %v2608_v10 = vadd.f32 %v7648_v36, %v2470_v14  ;;  %v2471_v15 = vmul.f32 %v7656_v25, %v9873_v45  ;;  %vm8123_vm4 = vmor %vm2346_vm0, %vm2347_vm1 }
 0x369   : > { %v2345_v61 = vmul.f32 %v8014_v53, %v2344_v52  ;;  %v3152_v51 = vpack.c.b16 %v3048_v44, %v3044_v3  ;;  %v2472_v39 = vmul.f32 %v7658_v46, %v9874_v59  ;;  %v2475_v54 = vmul.f32 %v7656_v25, %v9875_v22 }
 0x36a   : > { %v2354_v17 = vsub.f32 1.5, %v2353_v57  ;;  %v3049_v8 = vunpack.c.l.b16 %v2833_v49  ;;  %v3050_v21 = vunpack.c.h.b16 %v2833_v49  ;;  %v2476_v33 = vmul.f32 %v7658_v46, %v9876_v11 }
 0x36b   : > { %v3053_v19 = vunpack.c.l.b16 %v2835_v0  ;;  %v3054_v2 = vunpack.c.h.b16 %v2835_v0  ;;  %v2731_v56 = vmax.f32 %v2603_v12, 0.0  ;;  %v2732_v41 = vmax.f32 %v2604_v32, 0.0  ;;  %v9881_v12 = vld [vmem:[#allocation102_spill] sm:$0xff] }
 0x36c   : > { %v5696_v55 = vpop.eup %5695  ;;  %v2735_v25 = vmax.f32 %v2607_v9, 0.0  ;;  %v2736_v43 = vmax.f32 %v2608_v10, 0.0  ;;  %v2609_v27 = vadd.f32 %v7654_v6, %v2471_v15  ;;  %v2610_v30 = vadd.f32 %v7662_v62, %v2472_v39  ;;  %v9882_v10 = vld [vmem:[#allocation91_spill] sm:$0xff]  ;;  %v9883_v15 = vld [vmem:[#allocation101_spill] sm:$0xff] }
 0x36d   : > { %3660 = vmatmul.bf16.gmra.mxu2 %v3151_v29  ;;  %v2361_v20 = vmul.f32 %v5696_v55, %v8086_v34  ;;  %v2613_v50 = vadd.f32 %v7654_v6, %v2475_v54  ;;  %v2614_v7 = vadd.f32 %v7662_v62, %v2476_v33  ;;  %v2334_v4 = vsub.f32 1.5, %v2333_v38 }
 0x36e   : > { %3749 = vmatmul.bf16.gmra.mxu3 %v3152_v51  ;;  %v2349_v47 = vsel %vm8123_vm4, %v8014_v53, %v2345_v61  ;;  %v2355_v35 = vmul.f32 %v8068_v26, %v2354_v17  ;;  %vm2357_vm5 = vweird.f32 %v8068_v26  ;;  %vm2356_vm7 = vweird.f32 %v8046_v42  ;;  %v9884_v51 = vld [vmem:[#allocation94_spill] sm:$0xff] }
 0x36f   : > { %v2362_v46 = vmul.f32 %v5696_v55, %v2361_v20  ;;  %v3153_v1 = vpack.c.b16 %v3053_v19, %v3049_v8  ;;  %v3154_v14 = vpack.c.b16 %v3054_v2, %v3050_v21  ;;  %vm2367_vm8 = vweird.f32 %v5696_v55  ;;  %vm8136_vm9 = vmor %vm2356_vm7, %vm2357_vm5 }
 0x370   : > { %v2834_v52 = vpack.c.bf16 %v2732_v41, %v2731_v56  ;;  %v2836_v3 = vpack.c.bf16 %v2736_v43, %v2735_v25  ;;  %v2737_v44 = vmax.f32 %v2609_v27, 0.0  ;;  %v2738_v49 = vmax.f32 %v2610_v30, 0.0  ;;  %v5829_v27 = vld [vmem:[%s9368_s2] sm:$0xf] }
 0x371   : > { %v2363_v16 = vmul.f32 0.5, %v2362_v46  ;;  %v2741_v53 = vmax.f32 %v2613_v50, 0.0  ;;  %v2742_v29 = vmax.f32 %v2614_v7, 0.0  ;;  %v2335_v0 = vmul.f32 %v7790_v60, %v2334_v4 }
 0x372   : > { %v2478_v42 = vmul.f32 %v7664_v18, %v9881_v12  ;;  %v2359_v32 = vsel %vm8136_vm9, %v8068_v26, %v2355_v35  ;;  %vm2366_vm10 = vweird.f32 %v8086_v34  ;;  %v2473_v45 = vmul.f32 %v7660_v31, %v9882_v10 }
 0x373   : > { %v2364_v38 = vsub.f32 1.5, %v2363_v16  ;;  %v2474_v61 = vmul.f32 %v7664_v18, %v9883_v15  ;;  %v2477_v59 = vmul.f32 %v7660_v31, %v9884_v51  ;;  %v2381_v39 = vrot.slane %v2349_v47, 7  ;;  %vm2368_vm11 = vmor %vm2366_vm10, %vm2367_vm8 }
 0x374   : > { %v3051_v22 = vunpack.c.l.b16 %v2834_v52  ;;  %v3055_v54 = vunpack.c.l.b16 %v2836_v3  ;;  %v3052_v26 = vunpack.c.h.b16 %v2834_v52  ;;  %v3056_v17 = vunpack.c.h.b16 %v2836_v3 }
 0x375   : > { %3487 = vmatmul.bf16.gmra.mxu0 %v3153_v1  ;;  %3576 = vmatmul.bf16.gmra.mxu1 %v3154_v14  ;;  %v2365_v9 = vmul.f32 %v5696_v55, %v2364_v38  ;;  %v2837_v8 = vpack.c.bf16 %v2738_v49, %v2737_v44  ;;  %v2839_v21 = vpack.c.bf16 %v2742_v29, %v2741_v53  ;;  %v2382_v11 = vrot.slane %v2359_v32, 6  ;;  %v9885_v44 = vld [vmem:[#allocation31_spill] sm:$0xff]  ;;  %v9886_v38 = vld [vmem:[#allocation34_spill] sm:$0xff]  ;;  %v9887_v53 = vld [vmem:[#allocation20_spill] sm:$0xff] }
 0x376   : > { %v2339_v18 = vsel %vm2338_vm12, %v7790_v60, %v2335_v0  ;;  %v2616_v31 = vadd.f32 %v7648_v36, %v2478_v42  ;;  %v2611_v20 = vadd.f32 %v7683_v40, %v2473_v45  ;;  %v2612_v19 = vadd.f32 %v7648_v36, %v2474_v61  ;;  %v9888_v42 = vld [vmem:[#allocation12_spill] sm:$0xff] }
 0x377   : > { %v2369_v34 = vsel %vm2368_vm11, %v5696_v55, %v2365_v9  ;;  %v2615_v2 = vadd.f32 %v7683_v40, %v2477_v59  ;;  %v2390_v56 = vsel %vm2384_vm6, %v2339_v18, %v2381_v39  ;;  %v3155_v55 = vpack.c.b16 %v3055_v54, %v3051_v22 }
 0x378   : > { %v2383_v33 = vrot.slane %v2369_v34, 5  ;;  %v3156_v25 = vpack.c.b16 %v3056_v17, %v3052_v26  ;;  %v3057_v43 = vunpack.c.l.b16 %v2837_v8  ;;  %v3061_v60 = vunpack.c.l.b16 %v2839_v21 }
 0x379   : > { %v3058_v46 = vunpack.c.h.b16 %v2837_v8  ;;  %v3062_v30 = vunpack.c.h.b16 %v2839_v21  ;;  %v2744_v50 = vmax.f32 %v2616_v31, 0.0  ;;  %v2739_v7 = vmax.f32 %v2611_v20, 0.0 }
 0x37a   : > { %v2391_v5 = vsel %vm2386_vm13, %v2382_v11, %v2383_v33  ;;  %v2740_v4 = vmax.f32 %v2612_v19, 0.0  ;;  %v2743_v47 = vmax.f32 %v2615_v2, 0.0  ;;  %v3157_v52 = vpack.c.b16 %v3061_v60, %v3057_v43 }
 0x37b   : > { %v2392_v41 = vsel %vm2388_vm15, %v2390_v56, %v2391_v5  ;;  %v3158_v3 = vpack.c.b16 %v3062_v30, %v3058_v46  ;;  %vm3805_vm6 = vcmask 523264  }
 0x37c   : > { %v2396_v37 = vmul.f32 %v5829_v27, %v2392_v41  ;;  %v2838_v0 = vpack.c.bf16 %v2740_v4, %v2739_v7  ;;  %v2840_v12 = vpack.c.bf16 %v2744_v50, %v2743_v47  ;;  %v9890_v27 = vld [vmem:[#allocation35_spill] sm:$0xff] }
 0x37d   : > { %3665 = vmatmul.bf16.gmra.mxu2 %v3155_v55  ;;  %v9889_v55 = vld [vmem:[#allocation33_spill] sm:$0xff]  ;;  %v9891_v4 = vld [vmem:[#allocation11_spill] sm:$0xff] }
 0x37e   : > { %3754 = vmatmul.bf16.gmra.mxu3 %v3156_v25  ;;  %v8169_v35 = vperm.slane %v2396_v37, 0  ;;  %v8171_v16 = vperm.slane %v2396_v37, 1  ;;  %v8173_v1 = vperm.slane %v2396_v37, 2  ;;  %v8175_v14 = vperm.slane %v2396_v37, 3 }
 0x37f   : > { %v3059_v26 = vunpack.c.l.b16 %v2838_v0  ;;  %v3063_v34 = vunpack.c.l.b16 %v2840_v12  ;;  %v3060_v8 = vunpack.c.h.b16 %v2838_v0  ;;  %v3064_v21 = vunpack.c.h.b16 %v2840_v12 }
 0x380   : > { %v2479_v57 = vmul.f32 %v8169_v35, %v9885_v44  ;;  %v2480_v49 = vmul.f32 %v8171_v16, %v9886_v38  ;;  %v2483_v29 = vmul.f32 %v8169_v35, %v9887_v53  ;;  %v2484_v32 = vmul.f32 %v8171_v16, %v9888_v42 }
 0x381   : > { %v2481_v9 = vmul.f32 %v8173_v1, %v7767_v23  ;;  %v2482_v61 = vmul.f32 %v8175_v14, %v7882_v24  ;;  %v2485_v59 = vmul.f32 %v8173_v1, %v7770_v13  ;;  %v2486_v39 = vmul.f32 %v8175_v14, %v7885_v58 }
 0x382   : > { %v2617_v10 = vadd.f32 %v7654_v6, %v2479_v57  ;;  %v2618_v45 = vadd.f32 %v7662_v62, %v2480_v49  ;;  %v2621_v15 = vadd.f32 %v7654_v6, %v2483_v29  ;;  %v2622_v51 = vadd.f32 %v7662_v62, %v2484_v32 }
 0x383   : > { %v2619_v24 = vadd.f32 %v7683_v40, %v2481_v9  ;;  %v2620_v18 = vadd.f32 %v7648_v36, %v2482_v61  ;;  %v2623_v11 = vadd.f32 %v7683_v40, %v2485_v59  ;;  %v2624_v13 = vadd.f32 %v7648_v36, %v2486_v39 }
 0x384   : > { %v2745_v23 = vmax.f32 %v2617_v10, 0.0  ;;  %v2746_v22 = vmax.f32 %v2618_v45, 0.0  ;;  %v2749_v54 = vmax.f32 %v2621_v15, 0.0  ;;  %v2750_v17 = vmax.f32 %v2622_v51, 0.0  ;;  %v3458_v19 = vpop.f32.mrf.mxu0  ;;  %v3547_v2 = vpop.f32.mrf.mxu1 }
 0x385   : > { %3492 = vmatmul.bf16.gmra.mxu0 %v3157_v52  ;;  %3581 = vmatmul.bf16.gmra.mxu1 %v3158_v3  ;;  %v3159_v31 = vpack.c.b16 %v3063_v34, %v3059_v26  ;;  %v3160_v20 = vpack.c.b16 %v3064_v21, %v3060_v8  ;;  %v2747_v56 = vmax.f32 %v2619_v24, 0.0  ;;  %v2748_v5 = vmax.f32 %v2620_v18, 0.0  ;;  %v9892_v52 = vld [vmem:[#allocation15_spill] sm:$0xff] }
 0x386   : > { %v2841_v33 = vpack.c.bf16 %v2746_v22, %v2745_v23  ;;  %v2843_v58 = vpack.c.bf16 %v2750_v17, %v2749_v54  ;;  %v2487_v41 = vmul.f32 %v8169_v35, %v9889_v55  ;;  %v3548_v25 = vadd.f32 %v3547_v2, %v3458_v19  ;;  %v9893_v26 = vld [vmem:[#allocation43_spill] sm:$0xff] }
 0x387   : > { %v2751_v43 = vmax.f32 %v2623_v11, 0.0  ;;  %v2752_v60 = vmax.f32 %v2624_v13, 0.0  ;;  %v2488_v37 = vmul.f32 %v8171_v16, %v9890_v27  ;;  %v2491_v47 = vmul.f32 %v8169_v35, %v9891_v4  ;;  %v9894_v21 = vld [vmem:[#allocation59_spill] sm:$0xff] }
 0x388   : > { %v3065_v46 = vunpack.c.l.b16 %v2841_v33  ;;  %v3069_v30 = vunpack.c.l.b16 %v2843_v58  ;;  %v3066_v50 = vunpack.c.h.b16 %v2841_v33  ;;  %v3070_v7 = vunpack.c.h.b16 %v2843_v58 }
 0x389   : > { %v2492_v3 = vmul.f32 %v8171_v16, %v9892_v52  ;;  %v2842_v44 = vpack.c.bf16 %v2748_v5, %v2747_v56  ;;  %v2844_v57 = vpack.c.bf16 %v2752_v60, %v2751_v43  ;;  %v2625_v53 = vadd.f32 %v7654_v6, %v2487_v41  ;;  %v9896_v60 = vld [vmem:[#allocation36_spill] sm:$0xff] }
 0x38a   : > { %v3161_v38 = vpack.c.b16 %v3069_v30, %v3065_v46  ;;  %v3162_v49 = vpack.c.b16 %v3070_v7, %v3066_v50  ;;  %v2626_v29 = vadd.f32 %v7662_v62, %v2488_v37  ;;  %v2629_v0 = vadd.f32 %v7654_v6, %v2491_v47  ;;  %v9897_v30 = vld [vmem:[#allocation21_spill] sm:$0xff]  ;;  %v9898_v7 = vld [vmem:[#allocation75_spill] sm:$0xff] }
 0x38b   : > { %v2630_v12 = vadd.f32 %v7662_v62, %v2492_v3  ;;  %v3067_v9 = vunpack.c.l.b16 %v2842_v44  ;;  %v3071_v10 = vunpack.c.l.b16 %v2844_v57  ;;  %v3068_v45 = vunpack.c.h.b16 %v2842_v44  ;;  %v3636_v15 = vpop.f32.mrf.mxu2 }
 0x38c   : > { %v3460_v42 = vpop.f32.mrf.mxu0  ;;  %v3549_v32 = vpop.f32.mrf.mxu1  ;;  %v3072_v51 = vunpack.c.h.b16 %v2844_v57  ;;  %v3637_v59 = vadd.f32 %v3636_v15, %v3548_v25  ;;  %v2753_v39 = vmax.f32 %v2625_v53, 0.0  ;;  %v2754_v23 = vmax.f32 %v2626_v29, 0.0 }
 0x38d   : > { %3670 = vmatmul.bf16.gmra.mxu2 %v3159_v31  ;;  %v3725_v61 = vpop.f32.mrf.mxu3  ;;  %v2757_v22 = vmax.f32 %v2629_v0, 0.0  ;;  %v2758_v54 = vmax.f32 %v2630_v12, 0.0  ;;  %v2489_v34 = vmul.f32 %v8173_v1, %v9893_v26  ;;  %v2490_v17 = vmul.f32 %v8175_v14, %v7888_v48 }
 0x38e   : > { %3759 = vmatmul.bf16.gmra.mxu3 %v3160_v20  ;;  %v8217_v8 = vadd.f32 %v3725_v61, %v3637_v59  ;;  %v2493_v24 = vmul.f32 %v8173_v1, %v9894_v21  ;;  %v2494_v18 = vmul.f32 %v8175_v14, %v7891_v28  ;;  %v3163_v11 = vpack.c.b16 %v3071_v10, %v3067_v9  ;;  %v9895_v28 = vld [vmem:[#allocation22_spill] sm:$0xff] }
 0x38f   : > { %v2845_v13 = vpack.c.bf16 %v2754_v23, %v2753_v39  ;;  %v3164_v33 = vpack.c.b16 %v3072_v51, %v3068_v45  ;;  %v2847_v58 = vpack.c.bf16 %v2758_v54, %v2757_v22  ;;  %v2627_v31 = vadd.f32 %v7683_v40, %v2489_v34 }
 0x390   : > { %v2628_v20 = vadd.f32 %v7648_v36, %v2490_v17  ;;  %v3550_v19 = vadd.f32 %v3549_v32, %v3460_v42  ;;  %v2631_v48 = vadd.f32 %v7683_v40, %v2493_v24  ;;  %v2632_v5 = vadd.f32 %v7648_v36, %v2494_v18  ;;  %v9899_v24 = vld [vmem:[#allocation44_spill] sm:$0xff] }
 0x391   : > { %v2495_v43 = vmul.f32 %v8169_v35, %v9895_v28  ;;  %v2496_v27 = vmul.f32 %v8171_v16, %v9896_v60  ;;  %v3073_v46 = vunpack.c.l.b16 %v2845_v13  ;;  %v2499_v50 = vmul.f32 %v8169_v35, %v9897_v30 }
 0x392   : > { %v2500_v4 = vmul.f32 %v8171_v16, %v9898_v7  ;;  %v3077_v47 = vunpack.c.l.b16 %v2847_v58  ;;  %v3074_v52 = vunpack.c.h.b16 %v2845_v13  ;;  %v2755_v3 = vmax.f32 %v2627_v31, 0.0  ;;  %v9902_v31 = vld [vmem:[#allocation16_spill] sm:$0xff] }
 0x393   : > { %v3638_v55 = vpop.f32.mrf.mxu2  ;;  %v2756_v44 = vmax.f32 %v2628_v20, 0.0  ;;  %v2760_v53 = vmax.f32 %v2632_v5, 0.0  ;;  %v2633_v29 = vadd.f32 %v7654_v6, %v2495_v43  ;;  %v2634_v0 = vadd.f32 %v7662_v62, %v2496_v27 }
 0x394   : > { %v3463_v2 = vpop.f32.mrf.mxu0  ;;  %v3552_v56 = vpop.f32.mrf.mxu1  ;;  %v3639_v37 = vadd.f32 %v3638_v55, %v3550_v19  ;;  %v3806_v12 = vsel %vm3805_vm6, %v8217_v8, 0.0  ;;  %v2637_v32 = vadd.f32 %v7654_v6, %v2499_v50  ;;  %v2638_v9 = vadd.f32 %v7662_v62, %v2500_v4  ;;  %v5596_v19 = vld [vmem:[%s9373_s7 + $0x10] sm:$0xff] }
 0x395   : > { %3497 = vmatmul.bf16.gmra.mxu0 %v3161_v38  ;;  %3586 = vmatmul.bf16.gmra.mxu1 %v3162_v49  ;;  %v3727_v41 = vpop.f32.mrf.mxu3  ;;  %v3553_v25 = vadd.f32 %v3552_v56, %v3463_v2  ;;  %v3078_v38 = vunpack.c.h.b16 %v2847_v58  ;;  %v2759_v49 = vmax.f32 %v2631_v48, 0.0  ;;  %v3165_v45 = vpack.c.b16 %v3077_v47, %v3073_v46 }
 0x396   : > { %v8235_v57 = vadd.f32 %v3727_v41, %v3639_v37  ;;  %v2846_v61 = vpack.c.bf16 %v2756_v44, %v2755_v3  ;;  %v2761_v54 = vmax.f32 %v2633_v29, 0.0  ;;  %v2762_v26 = vmax.f32 %v2634_v0, 0.0  ;;  %4350 = vmatpush.bf16.msrb.mxu0 %v5596_v19 }
 0x397   : > { %v3166_v15 = vpack.c.b16 %v3078_v38, %v3074_v52  ;;  %v2848_v51 = vpack.c.bf16 %v2760_v53, %v2759_v49  ;;  %v2765_v17 = vmax.f32 %v2637_v32, 0.0  ;;  %v2766_v21 = vmax.f32 %v2638_v9, 0.0 }
 0x398   : > { %v3807_v42 = vsel %vm3805_vm6, %v8235_v57, 0.0  ;;  %v2497_v18 = vmul.f32 %v8173_v1, %v9899_v24  ;;  %v2502_v20 = vmul.f32 %v8175_v14, %v9902_v31  ;;  %v3075_v2 = vunpack.c.l.b16 %v2846_v61 }
 0x399   : > { %v3808_v10 = vadd.f32 %v3807_v42, %v3806_v12  ;;  %v3079_v56 = vunpack.c.l.b16 %v2848_v51  ;;  %v3076_v5 = vunpack.c.h.b16 %v2846_v61  ;;  %v3080_v55 = vunpack.c.h.b16 %v2848_v51  ;;  %v9904_v61 = vld [vmem:[#allocation76_spill] sm:$0xff] }
 0x39a   : > { %v2849_v41 = vpack.c.bf16 %v2762_v26, %v2761_v54  ;;  %v2851_v28 = vpack.c.bf16 %v2766_v21, %v2765_v17  ;;  %v2635_v43 = vadd.f32 %v7683_v40, %v2497_v18  ;;  %v2640_v46 = vadd.f32 %v7648_v36, %v2502_v20  ;;  %v9908_v20 = vld [vmem:[#allocation86_spill] sm:$0xff] }
 0x39b   : > { %v3167_v30 = vpack.c.b16 %v3079_v56, %v3075_v2  ;;  %v3168_v47 = vpack.c.b16 %v3080_v55, %v3076_v5  ;;  %v2504_v51 = vmul.f32 %v8171_v16, %v9904_v61  ;;  %v2506_v19 = vmul.f32 %v8175_v14, %v9908_v20  ;;  %v9909_v2 = vld [vmem:[#allocation61_spill] sm:$0xff]  ;;  %v9910_v5 = vld [vmem:[#allocation87_spill] sm:$0xff]  ;;  %v9913_v61 = vld [vmem:[#allocation24_spill] sm:$0xff] }
 0x39c   : > { %v3465_v59 = vpop.f32.mrf.mxu0  ;;  %v3554_v39 = vpop.f32.mrf.mxu1  ;;  %v3081_v44 = vunpack.c.l.b16 %v2849_v41  ;;  %v3082_v38 = vunpack.c.h.b16 %v2849_v41  ;;  %v3085_v53 = vunpack.c.l.b16 %v2851_v28  ;;  %v3086_v29 = vunpack.c.h.b16 %v2851_v28 }
 0x39d   : > { %3675 = vmatmul.bf16.gmra.mxu2 %v3163_v11  ;;  %v3641_v23 = vpop.f32.mrf.mxu2  ;;  %v3730_v22 = vpop.f32.mrf.mxu3  ;;  %v9900_v11 = vld [vmem:[#allocation13_spill] sm:$0xff]  ;;  %v3555_v50 = vadd.f32 %v3554_v39, %v3465_v59  ;;  %v2763_v0 = vmax.f32 %v2635_v43, 0.0  ;;  %v2768_v9 = vmax.f32 %v2640_v46, 0.0  ;;  %v9905_v59 = vld [vmem:[#allocation14_spill] sm:$0xff]  ;;  %v2509_v56 = vmul.f32 %v8173_v1, %v9909_v2 }
 0x39e   : > { %3764 = vmatmul.bf16.gmra.mxu3 %v3164_v33  ;;  %v3642_v34 = vadd.f32 %v3641_v23, %v3553_v25  ;;  %v2498_v13 = vmul.f32 %v8175_v14, %v9900_v11  ;;  %v9901_v33 = vld [vmem:[#allocation60_spill] sm:$0xff]  ;;  %v2507_v39 = vmul.f32 %v8169_v35, %v9905_v59  ;;  %v9906_v23 = vld [vmem:[#allocation77_spill] sm:$0xff]  ;;  %v3169_v26 = vpack.c.b16 %v3085_v53, %v3081_v44  ;;  %v9914_v59 = vld [vmem:[#allocation79_spill] sm:$0xff] }
 0x39f   : > { %v2501_v58 = vmul.f32 %v8173_v1, %v9901_v33  ;;  %v3170_v17 = vpack.c.b16 %v3086_v29, %v3082_v38  ;;  %v2642_v11 = vadd.f32 %v7662_v62, %v2504_v51  ;;  %v2510_v55 = vmul.f32 %v8175_v14, %v9910_v5 }
 0x3a0   : > { %v8256_v48 = vadd.f32 %v3730_v22, %v3642_v34  ;;  %v2636_v27 = vadd.f32 %v7648_v36, %v2498_v13  ;;  %v2508_v22 = vmul.f32 %v8171_v16, %v9906_v23  ;;  %v2645_v13 = vadd.f32 %v7654_v6, %v2507_v39 }
 0x3a1   : > { %v2639_v37 = vadd.f32 %v7683_v40, %v2501_v58  ;;  %v9907_v58 = vld [vmem:[#allocation45_spill] sm:$0xff]  ;;  %v2770_v43 = vmax.f32 %v2642_v11, 0.0  ;;  %v2515_v51 = vmul.f32 %v8169_v35, %v9913_v61  ;;  %v2516_v39 = vmul.f32 %v8171_v16, %v9914_v59 }
 0x3a2   : > { %v3809_v25 = vsel %vm3805_vm6, %v8256_v48, 0.0  ;;  %v2764_v42 = vmax.f32 %v2636_v27, 0.0  ;;  %v2646_v33 = vadd.f32 %v7662_v62, %v2508_v22  ;;  %v2505_v31 = vmul.f32 %v8173_v1, %v9907_v58 }
 0x3a3   : > { %v3810_v60 = vadd.f32 %v3809_v25, %v3808_v10  ;;  %v2767_v32 = vmax.f32 %v2639_v37, 0.0  ;;  %v9903_v10 = vld [vmem:[#allocation23_spill] sm:$0xff]  ;;  %v2654_v20 = vadd.f32 %v7662_v62, %v2516_v39 }
 0x3a4   : > { %v2850_v21 = vpack.c.bf16 %v2764_v42, %v2763_v0  ;;  %v2774_v27 = vmax.f32 %v2646_v33, 0.0 }
 0x3a5   : > { %3502 = vmatmul.bf16.gmra.mxu0 %v3165_v45  ;;  %3591 = vmatmul.bf16.gmra.mxu1 %v3166_v15  ;;  %v3643_v52 = vpop.f32.mrf.mxu2  ;;  %v3732_v12 = vpop.f32.mrf.mxu3  ;;  %v2503_v45 = vmul.f32 %v8169_v35, %v9903_v10  ;;  %v2852_v24 = vpack.c.bf16 %v2768_v9, %v2767_v32  ;;  %v9911_v32 = vld [vmem:[#allocation25_spill] sm:$0xff]  ;;  %v9912_v10 = vld [vmem:[#allocation78_spill] sm:$0xff] }
 0x3a6   : > { %v3644_v49 = vadd.f32 %v3643_v52, %v3555_v50  ;;  %v3083_v41 = vunpack.c.l.b16 %v2850_v21  ;;  %v3084_v37 = vunpack.c.h.b16 %v2850_v21  ;;  %v2648_v52 = vadd.f32 %v7648_v36, %v2510_v55 }
 0x3a7   : > { %v3557_v4 = vpop.f32.mrf.mxu1  ;;  %v2641_v18 = vadd.f32 %v7654_v6, %v2503_v45  ;;  %v3087_v25 = vunpack.c.l.b16 %v2852_v24  ;;  %v3088_v46 = vunpack.c.h.b16 %v2852_v24  ;;  %v2511_v9 = vmul.f32 %v8169_v35, %v9911_v32 }
 0x3a8   : > { %v8268_v15 = vadd.f32 %v3732_v12, %v3644_v49  ;;  %v2776_v42 = vmax.f32 %v2648_v52, 0.0  ;;  %v2512_v45 = vmul.f32 %v8171_v16, %v9912_v10  ;;  %v2782_v52 = vmax.f32 %v2654_v20, 0.0  ;;  %v9921_v20 = vld [vmem:[#allocation17_spill] sm:$0xff] }
 0x3a9   : > { %v3468_v7 = vpop.f32.mrf.mxu0  ;;  %v2769_v28 = vmax.f32 %v2641_v18, 0.0  ;;  %v3171_v44 = vpack.c.b16 %v3087_v25, %v3083_v41  ;;  %v3172_v53 = vpack.c.b16 %v3088_v46, %v3084_v37  ;;  %v2649_v18 = vadd.f32 %v7654_v6, %v2511_v9  ;;  %v9916_v41 = vld [vmem:[#allocation49_spill] sm:$0xff] }
 0x3aa   : > { %v8264_v3 = vadd.f32 %v3557_v4, %v3468_v7  ;;  %v3811_v54 = vsel %vm3805_vm6, %v8268_v15, 0.0  ;;  %v2643_v7 = vadd.f32 %v7683_v40, %v2505_v31  ;;  %v2644_v4 = vadd.f32 %v7648_v36, %v2506_v19  ;;  %v9918_v37 = vld [vmem:[#allocation65_spill] sm:$0xff] }
 0x3ab   : > { %v8278_v34 = vadd.f32 %v3811_v54, %v3810_v60  ;;  %v2773_v60 = vmax.f32 %v2645_v13, 0.0  ;;  %v2853_v38 = vpack.c.bf16 %v2770_v43, %v2769_v28  ;;  %v2650_v58 = vadd.f32 %v7662_v62, %v2512_v45 }
 0x3ac   : > { %v2771_v29 = vmax.f32 %v2643_v7, 0.0  ;;  %v2772_v0 = vmax.f32 %v2644_v4, 0.0  ;;  %v2653_v31 = vadd.f32 %v7654_v6, %v2515_v51  ;;  %v2514_v25 = vmul.f32 %v8175_v14, %v9916_v41 }
 0x3ad   : > { %3680 = vmatmul.bf16.gmra.mxu2 %v3167_v30  ;;  %v2855_v49 = vpack.c.bf16 %v2774_v27, %v2773_v60  ;;  %v3089_v23 = vunpack.c.l.b16 %v2853_v38  ;;  %v3090_v54 = vunpack.c.h.b16 %v2853_v38  ;;  %v2777_v43 = vmax.f32 %v2649_v18, 0.0  ;;  %v9917_v60 = vld [vmem:[#allocation62_spill] sm:$0xff]  ;;  %v9920_v18 = vld [vmem:[#allocation80_spill] sm:$0xff] }
 0x3ae   : > { %3769 = vmatmul.bf16.gmra.mxu3 %v3168_v47  ;;  %v2647_v47 = vadd.f32 %v7683_v40, %v2509_v56  ;;  %v2854_v33 = vpack.c.bf16 %v2772_v0, %v2771_v29  ;;  %v2517_v27 = vmul.f32 %v8173_v1, %v9917_v60  ;;  %v2518_v46 = vmul.f32 %v8175_v14, %v9918_v37 }
 0x3af   : > { %v8294_v50 = vpop.f32.mrf.mxu1  ;;  %v3093_v22 = vunpack.c.l.b16 %v2855_v49  ;;  %v2778_v4 = vmax.f32 %v2650_v58, 0.0 }
 0x3b0   : > { %v2775_v12 = vmax.f32 %v2647_v47, 0.0  ;;  %v2781_v47 = vmax.f32 %v2653_v31, 0.0  ;;  %v2655_v32 = vadd.f32 %v7683_v40, %v2517_v27 }
 0x3b1   : > { %v8292_v30 = vpop.f32.mrf.mxu0  ;;  %v3173_v2 = vpack.c.b16 %v3093_v22, %v3089_v23  ;;  %v2857_v45 = vpack.c.bf16 %v2778_v4, %v2777_v43 }
 0x3b2   : > { %v2856_v5 = vpack.c.bf16 %v2776_v42, %v2775_v12  ;;  %v2652_v42 = vadd.f32 %v7648_v36, %v2514_v25  ;;  %v2859_v61 = vpack.c.bf16 %v2782_v52, %v2781_v47  ;;  %v2783_v22 = vmax.f32 %v2655_v32, 0.0  ;;  %v9923_v52 = vld [vmem:[#allocation47_spill] sm:$0xff] }
 0x3b3   : > { %v3098_v58 = vunpack.c.h.b16 %v2857_v45 }
 0x3b4   : > { %v3095_v38 = vunpack.c.l.b16 %v2856_v5  ;;  %v3096_v29 = vunpack.c.h.b16 %v2856_v5  ;;  %v2780_v23 = vmax.f32 %v2652_v42, 0.0  ;;  %v3102_v31 = vunpack.c.h.b16 %v2859_v61  ;;  %v9925_v42 = vld [vmem:[#allocation63_spill] sm:$0xff] }
 0x3b5   : > { %3507 = vmatmul.bf16.gmra.mxu0 %v3169_v26  ;;  %3596 = vmatmul.bf16.gmra.mxu1 %v3170_v17  ;;  %v3094_v26 = vunpack.c.h.b16 %v2855_v49  ;;  %v2525_v32 = vmul.f32 %v8173_v1, %v9925_v42 }
 0x3b7   : > { %v3174_v56 = vpack.c.b16 %v3094_v26, %v3090_v54  ;;  %v3097_v26 = vunpack.c.l.b16 %v2857_v45 }
 0x3bd   : > { %3685 = vmatmul.bf16.gmra.mxu2 %v3171_v44  ;;  %v3091_v44 = vunpack.c.l.b16 %v2854_v33 }
 0x3be   : > { %3774 = vmatmul.bf16.gmra.mxu3 %v3172_v53  ;;  %v3092_v53 = vunpack.c.h.b16 %v2854_v33  ;;  %v2520_v33 = vmul.f32 %v8171_v16, %v9920_v18 }
 0x3bf   : > { %v3175_v51 = vpack.c.b16 %v3095_v38, %v3091_v44  ;;  %v2521_v44 = vmul.f32 %v8173_v1, %v9923_v52  ;;  %v9924_v38 = vld [vmem:[#allocation50_spill] sm:$0xff] }
 0x3c0   : > { %v3646_v17 = vpop.f32.mrf.mxu2  ;;  %v3176_v59 = vpack.c.b16 %v3096_v29, %v3092_v53  ;;  %v2658_v27 = vadd.f32 %v7662_v62, %v2520_v33  ;;  %v2522_v53 = vmul.f32 %v8175_v14, %v9924_v38 }
 0x3c1   : > { %v3647_v21 = vadd.f32 %v3646_v17, %v8264_v3  ;;  %v3735_v24 = vpop.f32.mrf.mxu3  ;;  %v9915_v3 = vld [vmem:[#allocation46_spill] sm:$0xff]  ;;  %v3101_v17 = vunpack.c.l.b16 %v2859_v61 }
 0x3c2   : > { %v8310_v11 = vpop.f32.mrf.mxu0  ;;  %v8312_v13 = vpop.f32.mrf.mxu1  ;;  %v2513_v55 = vmul.f32 %v8173_v1, %v9915_v3 }
 0x3c3   : > { %v8317_v19 = vadd.f32 %v3735_v24, %v3647_v21  ;;  %v9919_v21 = vld [vmem:[#allocation26_spill] sm:$0xff]  ;;  %v3177_v37 = vpack.c.b16 %v3101_v17, %v3097_v26  ;;  %v2659_v17 = vadd.f32 %v7683_v40, %v2521_v44 }
 0x3c4   : > { %v2651_v12 = vadd.f32 %v7683_v40, %v2513_v55  ;;  %v2519_v24 = vmul.f32 %v8169_v35, %v9919_v21  ;;  %v2660_v21 = vadd.f32 %v7648_v36, %v2522_v53  ;;  %v9929_v53 = vld [vmem:[#allocation27_spill] sm:$0xff] }
 0x3c5   : > { %v3813_v28 = vsel %vm3805_vm6, %v8317_v19, 0.0  ;;  %3512 = vmatmul.bf16.gmra.mxu0 %v3173_v2  ;;  %3601 = vmatmul.bf16.gmra.mxu1 %v3174_v56  ;;  %v2523_v2 = vmul.f32 %v8169_v35, %v9921_v20  ;;  %v9922_v56 = vld [vmem:[#allocation81_spill] sm:$0xff] }
 0x3c6   : > { %v8330_v7 = vadd.f32 %v3813_v28, %v8278_v34  ;;  %v2656_v34 = vadd.f32 %v7648_v36, %v2518_v46  ;;  %v2779_v39 = vmax.f32 %v2651_v12, 0.0  ;;  %v2524_v5 = vmul.f32 %v8171_v16, %v9922_v56 }
 0x3c7   : > { %v2657_v60 = vadd.f32 %v7654_v6, %v2519_v24  ;;  %v3178_v46 = vpack.c.b16 %v3102_v31, %v3098_v58  ;;  %v2661_v4 = vadd.f32 %v7654_v6, %v2523_v2  ;;  %v2786_v12 = vmax.f32 %v2658_v27, 0.0  ;;  %v9928_v27 = vld [vmem:[#allocation82_spill] sm:$0xff] }
 0x3c8   : > { %v8332_v49 = vpop.f32.mrf.mxu2  ;;  %v2784_v54 = vmax.f32 %v2656_v34, 0.0  ;;  %v2858_v28 = vpack.c.bf16 %v2780_v23, %v2779_v39  ;;  %v2662_v47 = vadd.f32 %v7662_v62, %v2524_v5  ;;  %v9926_v34 = vld [vmem:[#allocation66_spill] sm:$0xff]  ;;  %v2663_v58 = vadd.f32 %v7683_v40, %v2525_v32 }
 0x3c9   : > { %v8334_v0 = vpop.f32.mrf.mxu3  ;;  %v2785_v29 = vmax.f32 %v2657_v60, 0.0  ;;  %v2526_v45 = vmul.f32 %v8175_v14, %v9926_v34  ;;  %v2787_v5 = vmax.f32 %v2659_v17, 0.0 }
 0x3ca   : > { %v8340_v9 = vpop.f32.mrf.mxu0  ;;  %v8342_v10 = vpop.f32.mrf.mxu1  ;;  %v2860_v43 = vpack.c.bf16 %v2784_v54, %v2783_v22  ;;  %v3099_v61 = vunpack.c.l.b16 %v2858_v28  ;;  %v2790_v39 = vmax.f32 %v2662_v47, 0.0  ;;  %v3100_v22 = vunpack.c.h.b16 %v2858_v28 }
 0x3cb   : > { %v2861_v33 = vpack.c.bf16 %v2786_v12, %v2785_v29  ;;  %v2664_v31 = vadd.f32 %v7648_v36, %v2526_v45  ;;  %v2788_v28 = vmax.f32 %v2660_v21, 0.0  ;;  %v2791_v47 = vmax.f32 %v2663_v58, 0.0  ;;  %v9930_v12 = vld [vmem:[#allocation83_spill] sm:$0xff] }
 0x3cc   : > { %v3104_v54 = vunpack.c.h.b16 %v2860_v43  ;;  %v2531_v29 = vmul.f32 %v8169_v35, %v9929_v53  ;;  %v2532_v42 = vmul.f32 %v8171_v16, %v9930_v12 }
 0x3cd   : > { %3690 = vmatmul.bf16.gmra.mxu2 %v3175_v51  ;;  %v3103_v51 = vunpack.c.l.b16 %v2860_v43  ;;  %v9927_v43 = vld [vmem:[#allocation28_spill] sm:$0xff]  ;;  %v2792_v52 = vmax.f32 %v2664_v31, 0.0 }
 0x3ce   : > { %3779 = vmatmul.bf16.gmra.mxu3 %v3176_v59  ;;  %v2789_v59 = vmax.f32 %v2661_v4, 0.0  ;;  %v3180_v56 = vpack.c.b16 %v3104_v54, %v3100_v22  ;;  %v2527_v60 = vmul.f32 %v8169_v35, %v9927_v43  ;;  %v3106_v4 = vunpack.c.h.b16 %v2861_v33 }
 0x3cf   : > { %v3179_v20 = vpack.c.b16 %v3103_v51, %v3099_v61  ;;  %v2864_v22 = vpack.c.bf16 %v2792_v52, %v2791_v47  ;;  %v2669_v21 = vadd.f32 %v7654_v6, %v2531_v29 }
 0x3d0   : > { %v8352_v3 = vpop.f32.mrf.mxu2  ;;  %v2863_v2 = vpack.c.bf16 %v2790_v39, %v2789_v59  ;;  %v2665_v45 = vadd.f32 %v7654_v6, %v2527_v60  ;;  %v2862_v39 = vpack.c.bf16 %v2788_v28, %v2787_v5  ;;  %v9933_v60 = vld [vmem:[#allocation64_spill] sm:$0xff] }
 0x3d1   : > { %v8354_v55 = vpop.f32.mrf.mxu3  ;;  %v2533_v5 = vmul.f32 %v8173_v1, %v9933_v60  ;;  %v9934_v28 = vld [vmem:[#allocation8_spill] sm:$0xff]  ;;  %v2797_v47 = vmax.f32 %v2669_v21, 0.0  ;;  %v3112_v53 = vunpack.c.h.b16 %v2864_v22 }
 0x3d2   : > { %v8356_v41 = vpop.f32.mrf.mxu0  ;;  %v8358_v25 = vpop.f32.mrf.mxu1  ;;  %v3109_v44 = vunpack.c.l.b16 %v2863_v2  ;;  %v3110_v38 = vunpack.c.h.b16 %v2863_v2  ;;  %v2793_v58 = vmax.f32 %v2665_v45, 0.0 }
 0x3d4   : > { %v3182_v17 = vpack.c.b16 %v3110_v38, %v3106_v4  ;;  %v3111_v4 = vunpack.c.l.b16 %v2864_v22  ;;  %v3108_v38 = vunpack.c.h.b16 %v2862_v39 }
 0x3d5   : > { %3517 = vmatmul.bf16.gmra.mxu0 %v3177_v37  ;;  %3606 = vmatmul.bf16.gmra.mxu1 %v3178_v46  ;;  %v2528_v37 = vmul.f32 %v8171_v16, %v9928_v27  ;;  %v3105_v46 = vunpack.c.l.b16 %v2861_v33  ;;  %v2670_v33 = vadd.f32 %v7662_v62, %v2532_v42  ;;  %v2534_v27 = vmul.f32 %v8175_v14, %v9934_v28  ;;  %v9936_v28 = vld [vmem:[#allocation84_spill] sm:$0xff] }
 0x3d7   : > { %v2666_v61 = vadd.f32 %v7662_v62, %v2528_v37  ;;  %v3181_v54 = vpack.c.b16 %v3109_v44, %v3105_v46  ;;  %v5595_v37 = vld [vmem:[%s9373_s7 + $0x8] sm:$0xff]  ;;  %v3107_v46 = vunpack.c.l.b16 %v2862_v39  ;;  %v2798_v52 = vmax.f32 %v2670_v33, 0.0 }
 0x3d8   : > { %v8372_v23 = vpop.f32.mrf.mxu2  ;;  %4351 = vmatpush.bf16.msrb.mxu0 %v5595_v37  ;;  %v3184_v33 = vpack.c.b16 %v3112_v53, %v3108_v38 }
 0x3d9   : > { %v8374_v26 = vpop.f32.mrf.mxu3  ;;  %v2794_v31 = vmax.f32 %v2666_v61, 0.0  ;;  %v2671_v61 = vadd.f32 %v7683_v40, %v2533_v5  ;;  %v2867_v21 = vpack.c.bf16 %v2798_v52, %v2797_v47  ;;  %v9938_v52 = vld [vmem:[#allocation85_spill] sm:$0xff] }
 0x3da   : > { %v8378_v24 = vpop.f32.mrf.mxu0  ;;  %v8380_v18 = vpop.f32.mrf.mxu1  ;;  %v2540_v38 = vmul.f32 %v8171_v16, %v9938_v52 }
 0x3db   : > { %v2865_v12 = vpack.c.bf16 %v2794_v31, %v2793_v58  ;;  %v9935_v58 = vld [vmem:[#allocation29_spill] sm:$0xff]  ;;  %v3117_v37 = vunpack.c.l.b16 %v2867_v21 }
 0x3dc   : > { %v2535_v31 = vmul.f32 %v8169_v35, %v9935_v58  ;;  %v2678_v58 = vadd.f32 %v7662_v62, %v2540_v38 }
 0x3dd   : > { %3695 = vmatmul.bf16.gmra.mxu2 %v3179_v20  ;;  %v9931_v20 = vld [vmem:[#allocation48_spill] sm:$0xff]  ;;  %v3113_v39 = vunpack.c.l.b16 %v2865_v12  ;;  %v3114_v22 = vunpack.c.h.b16 %v2865_v12 }
 0x3de   : > { %3784 = vmatmul.bf16.gmra.mxu3 %v3180_v56  ;;  %v2529_v2 = vmul.f32 %v8173_v1, %v9931_v20  ;;  %v9932_v56 = vld [vmem:[#allocation38_spill] sm:$0xff] }
 0x3df   : > { %v2530_v43 = vmul.f32 %v8175_v14, %v9932_v56 }
 0x3e0   : > { %v8392_v32 = vpop.f32.mrf.mxu2  ;;  %v2667_v42 = vadd.f32 %v7683_v40, %v2529_v2 }
 0x3e1   : > { %v8394_v34 = vpop.f32.mrf.mxu3  ;;  %v2668_v45 = vadd.f32 %v7648_v36, %v2530_v43  ;;  %v2799_v43 = vmax.f32 %v2671_v61, 0.0 }
 0x3e2   : > { %v8398_v51 = vpop.f32.mrf.mxu0  ;;  %v8400_v59 = vpop.f32.mrf.mxu1  ;;  %v2795_v60 = vmax.f32 %v2667_v42, 0.0 }
 0x3e3   : > { %v2796_v2 = vmax.f32 %v2668_v45, 0.0  ;;  %v2673_v45 = vadd.f32 %v7654_v6, %v2535_v31 }
 0x3e5   : > { %3522 = vmatmul.bf16.gmra.mxu0 %v3181_v54  ;;  %3611 = vmatmul.bf16.gmra.mxu1 %v3182_v17  ;;  %v2672_v54 = vadd.f32 %v7648_v36, %v2534_v27  ;;  %v3183_v17 = vpack.c.b16 %v3111_v4, %v3107_v46  ;;  %v2536_v27 = vmul.f32 %v8171_v16, %v9936_v28  ;;  %v3118_v46 = vunpack.c.h.b16 %v2867_v21  ;;  %v9937_v4 = vld [vmem:[#allocation9_spill] sm:$0xff] }
 0x3e6   : > { %v2539_v47 = vmul.f32 %v8169_v35, %v9937_v4  ;;  %v2866_v42 = vpack.c.bf16 %v2796_v2, %v2795_v60  ;;  %v9939_v35 = vld [vmem:[#allocation88_spill] sm:$0xff]  ;;  %v9940_v4 = vld [vmem:[#allocation39_spill] sm:$0xff] }
 0x3e7   : > { %v2800_v5 = vmax.f32 %v2672_v54, 0.0  ;;  %v2674_v61 = vadd.f32 %v7662_v62, %v2536_v27  ;;  %v3185_v54 = vpack.c.b16 %v3117_v37, %v3113_v39  ;;  %v2542_v28 = vmul.f32 %v8175_v14, %v9939_v35  ;;  %v9941_v27 = vld [vmem:[#allocation41_spill] sm:$0xff]  ;;  %v9942_v37 = vld [vmem:[#allocation10_spill] sm:$0xff] }
 0x3e8   : > { %v8415_v44 = vpop.f32.mrf.mxu2  ;;  %v2677_v21 = vadd.f32 %v7654_v6, %v2539_v47  ;;  %v2537_v60 = vmul.f32 %v8173_v1, %v9940_v4  ;;  %v3115_v31 = vunpack.c.l.b16 %v2866_v42  ;;  %v2801_v39 = vmax.f32 %v2673_v45, 0.0 }
 0x3e9   : > { %v8417_v29 = vpop.f32.mrf.mxu3  ;;  %v2806_v6 = vmax.f32 %v2678_v58, 0.0  ;;  %v2538_v62 = vmul.f32 %v8175_v14, %v9941_v27  ;;  %v3116_v52 = vunpack.c.h.b16 %v2866_v42  ;;  %v3560_v14 = vadd.f32 %v8294_v50, %v8292_v30 }
 0x3ea   : > { %v8423_v20 = vpop.f32.mrf.mxu0  ;;  %v8425_v56 = vpop.f32.mrf.mxu1  ;;  %v2675_v4 = vadd.f32 %v7683_v40, %v2537_v60  ;;  %v3563_v42 = vadd.f32 %v8312_v13, %v8310_v11  ;;  %v3565_v30 = vadd.f32 %v8342_v10, %v8340_v9  ;;  %v3570_v10 = vadd.f32 %v8380_v18, %v8378_v24 }
 0x3ed   : > { %3700 = vmatmul.bf16.gmra.mxu2 %v3183_v17  ;;  %v2868_v17 = vpack.c.bf16 %v2800_v5, %v2799_v43  ;;  %v2805_v5 = vmax.f32 %v2677_v21, 0.0  ;;  %v2676_v21 = vadd.f32 %v7648_v36, %v2538_v62  ;;  %v3568_v62 = vadd.f32 %v8358_v25, %v8356_v41 }
 0x3ee   : > { %3789 = vmatmul.bf16.gmra.mxu3 %v3184_v33  ;;  %v3186_v33 = vpack.c.b16 %v3118_v46, %v3114_v22  ;;  %v2802_v22 = vmax.f32 %v2674_v61, 0.0  ;;  %v2541_v46 = vmul.f32 %v8173_v1, %v9942_v37  ;;  %v3659_v41 = vadd.f32 %v8415_v44, %v3570_v10 }
 0x3ef   : > { %v3119_v43 = vunpack.c.l.b16 %v2868_v17  ;;  %v3120_v38 = vunpack.c.h.b16 %v2868_v17  ;;  %v2871_v61 = vpack.c.bf16 %v2806_v6, %v2805_v5  ;;  %v3649_v17 = vadd.f32 %v8332_v49, %v3560_v14 }
 0x3f0   : > { %v8435_v53 = vpop.f32.mrf.mxu2  ;;  %v2869_v35 = vpack.c.bf16 %v2802_v22, %v2801_v39  ;;  %v2679_v58 = vadd.f32 %v7683_v40, %v2541_v46  ;;  %v2804_v22 = vmax.f32 %v2676_v21, 0.0  ;;  %v3652_v6 = vadd.f32 %v8352_v3, %v3563_v42 }
 0x3f1   : > { %v8437_v12 = vpop.f32.mrf.mxu3  ;;  %v3187_v45 = vpack.c.b16 %v3119_v43, %v3115_v31  ;;  %v3188_v1 = vpack.c.b16 %v3120_v38, %v3116_v52  ;;  %v2803_v31 = vmax.f32 %v2675_v4, 0.0  ;;  %v3125_v39 = vunpack.c.l.b16 %v2871_v61 }
 0x3f2   : > { %v8445_v16 = vpop.f32.mrf.mxu0  ;;  %v8449_v2 = vpop.f32.mrf.mxu1  ;;  %v3122_v60 = vunpack.c.h.b16 %v2869_v35  ;;  %v2807_v40 = vmax.f32 %v2679_v58, 0.0  ;;  %v8470_v13 = vadd.f32 %v8334_v0, %v3649_v17  ;;  %v3654_v49 = vadd.f32 %v8372_v23, %v3565_v30 }
 0x3f3   : > { %v2870_v52 = vpack.c.bf16 %v2804_v22, %v2803_v31  ;;  %v3657_v9 = vadd.f32 %v8392_v32, %v3568_v62  ;;  %v3573_v25 = vadd.f32 %v8400_v59, %v8398_v51  ;;  %v8501_v58 = vadd.f32 %v8417_v29, %v3659_v41 }
 0x3f4   : > { %v3815_v0 = vsel %vm3805_vm6, %v8470_v13, 0.0  ;;  %v8484_v3 = vadd.f32 %v8374_v26, %v3654_v49  ;;  %v3575_v26 = vadd.f32 %v8425_v56, %v8423_v20 }
 0x3f5   : > { %3527 = vmatmul.bf16.gmra.mxu0 %v3185_v54  ;;  %3616 = vmatmul.bf16.gmra.mxu1 %v3186_v33  ;;  %v2680_v54 = vadd.f32 %v7648_v36, %v2542_v28  ;;  %v3121_v28 = vunpack.c.l.b16 %v2869_v35  ;;  %v3126_v36 = vunpack.c.h.b16 %v2871_v61  ;;  %v3124_v32 = vunpack.c.h.b16 %v2870_v52 }
 0x3f6   : > { %v8492_v18 = vadd.f32 %v8394_v34, %v3657_v9  ;;  %v3816_v61 = vadd.f32 %v3815_v0, %v8330_v7  ;;  %v3819_v51 = vsel %vm3805_vm6, %v8484_v3, 0.0  ;;  %v3578_v34 = vadd.f32 %v8449_v2, %v8445_v16 }
 0x3f7   : > { %v2808_v27 = vmax.f32 %v2680_v54, 0.0  ;;  %v3189_v37 = vpack.c.b16 %v3125_v39, %v3121_v28  ;;  %v3190_v46 = vpack.c.b16 %v3126_v36, %v3122_v60  ;;  %v8476_v54 = vadd.f32 %v8354_v55, %v3652_v6 }
 0x3f8   : > { %v3663_v47 = vpop.f32.mrf.mxu2  ;;  %v3123_v55 = vunpack.c.l.b16 %v2870_v52  ;;  %v3821_v20 = vsel %vm3805_vm6, %v8492_v18, 0.0  ;;  %v3823_v29 = vsel %vm3805_vm6, %v8501_v58, 0.0 }
 0x3f9   : > { %v8456_v33 = vpop.f32.mrf.mxu3  ;;  %v2872_v38 = vpack.c.bf16 %v2808_v27, %v2807_v40  ;;  %v3817_v24 = vsel %vm3805_vm6, %v8476_v54, 0.0  ;;  %v3664_v14 = vadd.f32 %v3663_v47, %v3575_v26 }
 0x3fa   : > { %v3490_v43 = vpop.f32.mrf.mxu0  ;;  %v3579_v5 = vpop.f32.mrf.mxu1 }
 0x3fb   : > { %v3127_v23 = vunpack.c.l.b16 %v2872_v38  ;;  %v3128_v4 = vunpack.c.h.b16 %v2872_v38  ;;  %v3580_v42 = vadd.f32 %v3579_v5, %v3490_v43  ;;  %v8513_v47 = vadd.f32 %v8456_v33, %v3664_v14 }
 0x3fd   : > { %3705 = vmatmul.bf16.gmra.mxu2 %v3187_v45  ;;  %v3662_v45 = vadd.f32 %v8435_v53, %v3573_v25  ;;  %v3818_v53 = vadd.f32 %v3817_v24, %v3816_v61  ;;  %v3192_v27 = vpack.c.b16 %v3128_v4, %v3124_v32  ;;  %v3827_v22 = vsel %vm3805_vm6, %v8513_v47, 0.0 }
 0x3fe   : > { %3794 = vmatmul.bf16.gmra.mxu3 %v3188_v1  ;;  %v3191_v1 = vpack.c.b16 %v3127_v23, %v3123_v55 }
 0x3ff   : > { %v8508_v7 = vadd.f32 %v8437_v12, %v3662_v45  ;;  %v3820_v17 = vadd.f32 %v3819_v51, %v3818_v53 }
 0x400   : > { %v3666_v50 = vpop.f32.mrf.mxu2 }
 0x401   : > { %v3755_v11 = vpop.f32.mrf.mxu3  ;;  %v3667_v56 = vadd.f32 %v3666_v50, %v3578_v34  ;;  %v3822_v28 = vadd.f32 %v3821_v20, %v3820_v17  ;;  %v3825_v31 = vsel %vm3805_vm6, %v8508_v7, 0.0 }
 0x402   : > { %v3493_v59 = vpop.f32.mrf.mxu0  ;;  %v3582_v21 = vpop.f32.mrf.mxu1 }
 0x403   : > { %v3583_v2 = vadd.f32 %v3582_v21, %v3493_v59  ;;  %v8517_v12 = vadd.f32 %v3755_v11, %v3667_v56  ;;  %v3824_v36 = vadd.f32 %v3823_v29, %v3822_v28 }
 0x405   : > { %3532 = vmatmul.bf16.gmra.mxu0 %v3189_v37  ;;  %3621 = vmatmul.bf16.gmra.mxu1 %v3190_v46  ;;  %v3826_v30 = vadd.f32 %v3825_v31, %v3824_v36  ;;  %v3829_v5 = vsel %vm3805_vm6, %v8517_v12, 0.0 }
 0x407   : > { %v3828_v49 = vadd.f32 %v3827_v22, %v3826_v30 }
 0x408   : > { %v3668_v35 = vpop.f32.mrf.mxu2 }
 0x409   : > { %v3757_v44 = vpop.f32.mrf.mxu3  ;;  %v3669_v16 = vadd.f32 %v3668_v35, %v3580_v42  ;;  %v3830_v37 = vadd.f32 %v3829_v5, %v3828_v49 }
 0x40a   : > { %v3495_v33 = vpop.f32.mrf.mxu0  ;;  %v3584_v50 = vpop.f32.mrf.mxu1 }
 0x40b   : > { %v8521_v40 = vadd.f32 %v3757_v44, %v3669_v16  ;;  %v3585_v62 = vadd.f32 %v3584_v50, %v3495_v33 }
 0x40d   : > { %3710 = vmatmul.bf16.gmra.mxu2 %v3191_v1  ;;  %v3831_v11 = vsel %vm3805_vm6, %v8521_v40, 0.0 }
 0x40e   : > { %3799 = vmatmul.bf16.gmra.mxu3 %v3192_v27  ;;  %v3832_v9 = vadd.f32 %v3831_v11, %v3830_v37 }
 0x410   : > { %v3671_v60 = vpop.f32.mrf.mxu2 }
 0x411   : > { %v3672_v39 = vadd.f32 %v3671_v60, %v3583_v2  ;;  %v3760_v43 = vpop.f32.mrf.mxu3 }
 0x413   : > { %v8525_v6 = vadd.f32 %v3760_v43, %v3672_v39 }
 0x415   : > { %v3833_v52 = vsel %vm3805_vm6, %v8525_v6, 0.0 }
 0x416   : > { %v3834_v41 = vadd.f32 %v3833_v52, %v3832_v9 }
 0x418   : > { %v3673_v46 = vpop.f32.mrf.mxu2 }
 0x419   : > { %v3674_v38 = vadd.f32 %v3673_v46, %v3585_v62  ;;  %v3762_v10 = vpop.f32.mrf.mxu3 }
 0x41b   : > { %v8531_v0 = vadd.f32 %v3762_v10, %v3674_v38 }
 0x41d   : > { %v3835_v25 = vsel %vm3805_vm6, %v8531_v0, 0.0 }
 0x41e   : > { %v3836_v55 = vadd.f32 %v3835_v25, %v3834_v41 }
 0x420   : > { %v3837_v23 = vrot.slane %v3836_v55, 4 }
 0x422   : > { %v3838_v35 = vadd.f32 %v3837_v23, %v3836_v55 }
 0x424   : > { %v3839_v32 = vrot.slane %v3838_v35, 2 }
 0x426   : > { %v3840_v4 = vadd.f32 %v3839_v32, %v3838_v35 }
 0x428   : > { %v3841_v24 = vrot.slane %v3840_v4, 1 }
 0x42a   : > { %v3842_v45 = vadd.f32 %v3841_v24, %v3840_v4 }
 0x42c   : > { %v3880_v26 = vmul.f32 %v3842_v45, %v6419_v63 }
 0x42e   : > { %v8537_v44 = vsub.f32 %v8217_v8, %v3880_v26  ;;  %v8540_v61 = vsub.f32 %v8235_v57, %v3880_v26  ;;  %v8543_v51 = vsub.f32 %v8256_v48, %v3880_v26  ;;  %v8546_v59 = vsub.f32 %v8268_v15, %v3880_v26 }
 0x42f   : > { %v8549_v21 = vsub.f32 %v8317_v19, %v3880_v26  ;;  %v8558_v57 = vsub.f32 %v8470_v13, %v3880_v26  ;;  %v8565_v53 = vsub.f32 %v8476_v54, %v3880_v26  ;;  %v8571_v13 = vsub.f32 %v8484_v3, %v3880_v26 }
 0x430   : > { %v3914_v14 = vmul.f32 %v8537_v44, %v8537_v44  ;;  %v3915_v34 = vmul.f32 %v8540_v61, %v8540_v61  ;;  %v3916_v8 = vmul.f32 %v8543_v51, %v8543_v51  ;;  %v3917_v48 = vmul.f32 %v8546_v59, %v8546_v59 }
 0x431   : > { %v3918_v27 = vmul.f32 %v8549_v21, %v8549_v21  ;;  %v3919_v42 = vmul.f32 %v8558_v57, %v8558_v57  ;;  %v8577_v16 = vsub.f32 %v8492_v18, %v3880_v26  ;;  %v3920_v54 = vmul.f32 %v8565_v53, %v8565_v53 }
 0x432   : > { %v3946_v15 = vsel %vm3805_vm6, %v3914_v14, 0.0  ;;  %v3947_v19 = vsel %vm3805_vm6, %v3915_v34, 0.0  ;;  %v3949_v20 = vsel %vm3805_vm6, %v3916_v8, 0.0  ;;  %v3951_v17 = vsel %vm3805_vm6, %v3917_v48, 0.0  ;;  %v3498_v8 = vpop.f32.mrf.mxu0  ;;  %v3587_v48 = vpop.f32.mrf.mxu1 }
 0x433   : > { %v3948_v1 = vadd.f32 %v3947_v19, %v3946_v15  ;;  %v3953_v2 = vsel %vm3805_vm6, %v3918_v27, 0.0  ;;  %v8583_v60 = vsub.f32 %v8501_v58, %v3880_v26  ;;  %v3921_v3 = vmul.f32 %v8571_v13, %v8571_v13  ;;  %v3765_v19 = vpop.f32.mrf.mxu3 }
 0x434   : > { %v3955_v31 = vsel %vm3805_vm6, %v3919_v42, 0.0  ;;  %v8589_v43 = vsub.f32 %v8508_v7, %v3880_v26  ;;  %v3922_v18 = vmul.f32 %v8577_v16, %v8577_v16  ;;  %v3957_v36 = vsel %vm3805_vm6, %v3920_v54, 0.0 }
 0x435   : > { %v3950_v56 = vadd.f32 %v3949_v20, %v3948_v1  ;;  %v8595_v30 = vsub.f32 %v8513_v47, %v3880_v26  ;;  %v3923_v58 = vmul.f32 %v8583_v60, %v8583_v60  ;;  %v3959_v33 = vsel %vm3805_vm6, %v3921_v3, 0.0 }
 0x436   : > { %v3924_v5 = vmul.f32 %v8589_v43, %v8589_v43  ;;  %v3961_v7 = vsel %vm3805_vm6, %v3922_v18, 0.0  ;;  %v8604_v11 = vsub.f32 %v8517_v12, %v3880_v26  ;;  %v8611_v38 = vsub.f32 %v8521_v40, %v3880_v26 }
 0x437   : > { %v3952_v29 = vadd.f32 %v3951_v17, %v3950_v56  ;;  %v3925_v62 = vmul.f32 %v8595_v30, %v8595_v30  ;;  %v3963_v47 = vsel %vm3805_vm6, %v3923_v58, 0.0  ;;  %v8617_v12 = vsub.f32 %v8525_v6, %v3880_v26 }
 0x438   : > { %v3965_v46 = vsel %vm3805_vm6, %v3924_v5, 0.0  ;;  %9943 = vst [vmem:[#allocation93_spill] sm:$0xff] %v8611_v38  ;;  %v3926_v9 = vmul.f32 %v8604_v11, %v8604_v11  ;;  %v3927_v25 = vmul.f32 %v8611_v38, %v8611_v38  ;;  %v8623_v35 = vsub.f32 %v8531_v0, %v3880_v26  ;;  %v3676_v26 = vpop.f32.mrf.mxu2 }
 0x439   : > { %v3954_v28 = vadd.f32 %v3953_v2, %v3952_v29  ;;  %v3967_v10 = vsel %vm3805_vm6, %v3925_v62, 0.0  ;;  %9944 = vst [vmem:[#allocation103_spill] sm:$0xff] %v8617_v12  ;;  %v3928_v40 = vmul.f32 %v8617_v12, %v8617_v12  ;;  %v3588_v15 = vadd.f32 %v3587_v48, %v3498_v8  ;;  %v5594_v29 = vld [vmem:[%s9373_s7] sm:$0xff] }
 0x43a   : > { %v3969_v55 = vsel %vm3805_vm6, %v3926_v9, 0.0  ;;  %9945 = vst [vmem:[#allocation40_spill] sm:$0xff] %v8623_v35  ;;  %v3971_v32 = vsel %vm3805_vm6, %v3927_v25, 0.0  ;;  %v3929_v24 = vmul.f32 %v8623_v35, %v8623_v35  ;;  %v3500_v20 = vpop.f32.mrf.mxu0  ;;  %v3589_v56 = vpop.f32.mrf.mxu1  ;;  %4352 = vmatpush.bf16.msrb.mxu0 %v5594_v29 }
 0x43b   : > { %v3956_v39 = vadd.f32 %v3955_v31, %v3954_v28  ;;  %v3973_v6 = vsel %vm3805_vm6, %v3928_v40, 0.0  ;;  %v3677_v1 = vadd.f32 %v3676_v26, %v3588_v15  ;;  %v3590_v54 = vadd.f32 %v3589_v56, %v3500_v20  ;;  %v3767_v28 = vpop.f32.mrf.mxu3 }
 0x43c   : > { %v3975_v14 = vsel %vm3805_vm6, %v3929_v24, 0.0 }
 0x43d   : > { %v3958_v22 = vadd.f32 %v3957_v36, %v3956_v39  ;;  %v8632_v42 = vadd.f32 %v3765_v19, %v3677_v1 }
 0x43f   : > { %v3960_v50 = vadd.f32 %v3959_v33, %v3958_v22  ;;  %v3843_v58 = vsel %vm3805_vm6, %v8632_v42, 0.0 }
 0x440   : > { %v3678_v2 = vpop.f32.mrf.mxu2 }
 0x441   : > { %v3962_v49 = vadd.f32 %v3961_v7, %v3960_v50  ;;  %v3679_v3 = vadd.f32 %v3678_v2, %v3590_v54 }
 0x442   : > { %v3503_v39 = vpop.f32.mrf.mxu0  ;;  %v3592_v18 = vpop.f32.mrf.mxu1 }
 0x443   : > { %v3964_v37 = vadd.f32 %v3963_v47, %v3962_v49  ;;  %v8637_v36 = vadd.f32 %v3767_v28, %v3679_v3  ;;  %v3593_v22 = vadd.f32 %v3592_v18, %v3503_v39  ;;  %v3770_v49 = vpop.f32.mrf.mxu3 }
 0x445   : > { %v3966_v52 = vadd.f32 %v3965_v46, %v3964_v37  ;;  %v3844_v33 = vsel %vm3805_vm6, %v8637_v36, 0.0 }
 0x446   : > { %v3845_v5 = vadd.f32 %v3844_v33, %v3843_v58 }
 0x447   : > { %v3968_v41 = vadd.f32 %v3967_v10, %v3966_v52 }
 0x448   : > { %v3681_v7 = vpop.f32.mrf.mxu2 }
 0x449   : > { %v3970_v23 = vadd.f32 %v3969_v55, %v3968_v41  ;;  %v3682_v62 = vadd.f32 %v3681_v7, %v3593_v22 }
 0x44a   : > { %v3505_v37 = vpop.f32.mrf.mxu0  ;;  %v3594_v46 = vpop.f32.mrf.mxu1 }
 0x44b   : > { %v3972_v4 = vadd.f32 %v3971_v32, %v3970_v23  ;;  %v8643_v52 = vadd.f32 %v3770_v49, %v3682_v62  ;;  %v3595_v25 = vadd.f32 %v3594_v46, %v3505_v37  ;;  %v3772_v23 = vpop.f32.mrf.mxu3  ;;  %v8681_v62 = vld [vmem:[%s9371_s5] sm:$0x1] }
 0x44c   : > { %9946 = vst [vmem:[#allocation90_spill] sm:$0xff] %v8681_v62 }
 0x44d   : > { %v3974_v45 = vadd.f32 %v3973_v6, %v3972_v4  ;;  %v3846_v9 = vsel %vm3805_vm6, %v8643_v52, 0.0 }
 0x44e   : > { %v3847_v41 = vadd.f32 %v3846_v9, %v3845_v5 }
 0x44f   : > { %v3976_v34 = vadd.f32 %v3975_v14, %v3974_v45 }
 0x450   : > { %v3683_v55 = vpop.f32.mrf.mxu2 }
 0x451   : > { %v3977_v0 = vrot.slane %v3976_v34, 4  ;;  %v3684_v40 = vadd.f32 %v3683_v55, %v3595_v25  ;;  %v8691_v55 = vld [vmem:[%s9372_s6] ss:$0 sm:$0xff] }
 0x452   : > { %v3508_v4 = vpop.f32.mrf.mxu0  ;;  %v3597_v24 = vpop.f32.mrf.mxu1 }
 0x453   : > { %v3978_v27 = vadd.f32 %v3977_v0, %v3976_v34  ;;  %v8648_v6 = vadd.f32 %v3772_v23, %v3684_v40  ;;  %v3598_v45 = vadd.f32 %v3597_v24, %v3508_v4  ;;  %v3775_v48 = vpop.f32.mrf.mxu3 }
 0x455   : > { %v3979_v17 = vrot.slane %v3978_v27, 2  ;;  %v3848_v14 = vsel %vm3805_vm6, %v8648_v6, 0.0 }
 0x456   : > { %v3849_v34 = vadd.f32 %v3848_v14, %v3847_v41 }
 0x457   : > { %v3980_v31 = vadd.f32 %v3979_v17, %v3978_v27 }
 0x458   : > { %v3686_v8 = vpop.f32.mrf.mxu2 }
 0x459   : > { %v3981_v50 = vrot.slane %v3980_v31, 1  ;;  %v3687_v15 = vadd.f32 %v3686_v8, %v3598_v45 }
 0x45a   : > { %v8652_v0 = vpop.f32.mrf.mxu0  ;;  %v8654_v26 = vpop.f32.mrf.mxu1 }
 0x45b   : > { %v3982_v47 = vadd.f32 %v3981_v50, %v3980_v31  ;;  %v8656_v19 = vadd.f32 %v3775_v48, %v3687_v15  ;;  %v8664_v29 = vpop.f32.mrf.mxu3 }
 0x45d   : > { %v4020_v10 = vmul.f32 %v3982_v47, %v6419_v63  ;;  %v3850_v27 = vsel %vm3805_vm6, %v8656_v19, 0.0 }
 0x45e   : > { %v8660_v20 = vadd.f32 %v3850_v27, %v3849_v34 }
 0x45f   : > { %v4023_v32 = vadd.f32 1e-05, %v4020_v10 }
 0x460   : > { %v8662_v17 = vpop.f32.mrf.mxu2 }
 0x461   : > { %5697 = vrsqrt.f32 %v4023_v32  ;;  %vm4031_vm14 = vweird.f32 %v4023_v32 }
 0x462   : > { %v3513_v54 = vpop.f32.mrf.mxu0  ;;  %v3602_v2 = vpop.f32.mrf.mxu1 }
 0x463   : > { %v8666_v39 = vpop.f32.mrf.mxu3 }
 0x467   : > { %v5698_v1 = vpop.eup %5697 }
 0x468   : > { %v4026_v56 = vmul.f32 %v5698_v1, %v4023_v32  ;;  %v3691_v31 = vpop.f32.mrf.mxu2  ;;  %vm4032_vm13 = vweird.f32 %v5698_v1 }
 0x469   : > { %vm4033_vm15 = vmor %vm4031_vm14, %vm4032_vm13 }
 0x46a   : > { %v4027_v28 = vmul.f32 %v5698_v1, %v4026_v56  ;;  %v8668_v18 = vpop.f32.mrf.mxu0  ;;  %v8670_v22 = vpop.f32.mrf.mxu1 }
 0x46b   : > { %v8674_v5 = vpop.f32.mrf.mxu3 }
 0x46c   : > { %v4028_v3 = vmul.f32 0.5, %v4027_v28 }
 0x46e   : > { %v4029_v58 = vsub.f32 1.5, %v4028_v3 }
 0x470   : > { %v4030_v33 = vmul.f32 %v5698_v1, %v4029_v58  ;;  %v8672_v50 = vpop.f32.mrf.mxu2 }
 0x472   : > { %v8676_v7 = vpop.f32.mrf.mxu0  ;;  %v3607_v49 = vpop.f32.mrf.mxu1  ;;  %v4034_v47 = vsel %vm4033_vm15, %v5698_v1, %v4030_v33 }
 0x473   : > { %v4045_v37 = vmul.f32 %v4034_v47, %v8681_v62  ;;  %v8684_v9 = vpop.f32.mrf.mxu3 }
 0x475   : > { %v8686_v10 = vperm.slane %v4045_v37, 0 }
 0x477   : > { %v4053_v23 = vmul.f32 %v8686_v10, %v8537_v44  ;;  %v4054_v40 = vmul.f32 %v8686_v10, %v8540_v61  ;;  %v4055_v33 = vmul.f32 %v8686_v10, %v8543_v51  ;;  %v4056_v47 = vmul.f32 %v8686_v10, %v8546_v59 }
 0x478   : > { %v3696_v46 = vpop.f32.mrf.mxu2  ;;  %v4057_v51 = vmul.f32 %v8686_v10, %v8549_v21  ;;  %v4058_v59 = vmul.f32 %v8686_v10, %v8558_v57  ;;  %v3605_v21 = vadd.f32 %v8670_v22, %v8668_v18 }
 0x479   : > { %v4089_v24 = vadd.f32 %v8691_v55, %v4053_v23  ;;  %v4090_v45 = vadd.f32 %v8691_v55, %v4054_v40  ;;  %v4091_v40 = vadd.f32 %v8691_v55, %v4055_v33  ;;  %v3603_v33 = vadd.f32 %v3602_v2, %v3513_v54 }
 0x47a   : > { %v3520_v41 = vpop.f32.mrf.mxu0  ;;  %v3609_v25 = vpop.f32.mrf.mxu1  ;;  %v4093_v38 = vadd.f32 %v8691_v55, %v4057_v51  ;;  %v3694_v54 = vadd.f32 %v8672_v50, %v3605_v21  ;;  %v3608_v2 = vadd.f32 %v3607_v49, %v8676_v7 }
 0x47b   : > { %v8697_v4 = vpop.f32.mrf.mxu3  ;;  %v4121_v8 = vmax.f32 %v4089_v24, 0.0  ;;  %v4122_v48 = vmax.f32 %v4090_v45, 0.0  ;;  %v4092_v24 = vadd.f32 %v8691_v55, %v4056_v47  ;;  %v3692_v12 = vadd.f32 %v3691_v31, %v3603_v33 }
 0x47c   : > { %v4125_v31 = vmax.f32 %v4093_v38, 0.0  ;;  %v8737_v22 = vadd.f32 %v8674_v5, %v3694_v54  ;;  %v4059_v33 = vmul.f32 %v8686_v10, %v8565_v53 }
 0x47d   : > { %v4153_v15 = vpack.c.bf16 %v4121_v8, %v4121_v8  ;;  %v4154_v1 = vpack.c.bf16 %v4122_v48, %v4122_v48  ;;  %v4123_v48 = vmax.f32 %v4091_v40, 0.0 }
 0x47e   : > { %v4157_v7 = vpack.c.bf16 %v4125_v31, %v4125_v31  ;;  %v3856_v5 = vsel %vm3805_vm6, %v8737_v22, 0.0  ;;  %v4095_v54 = vadd.f32 %v8691_v55, %v4059_v33  ;;  %v4062_v33 = vmul.f32 %v8686_v10, %v8583_v60 }
 0x47f   : > { %v4225_v27 = vunpack.c.l.b16 %v4153_v15  ;;  %v4226_v56 = vunpack.c.l.b16 %v4154_v1  ;;  %v4124_v15 = vmax.f32 %v4092_v24, 0.0  ;;  %v3600_v1 = vadd.f32 %v8654_v26, %v8652_v0 }
 0x480   : > { %v3698_v32 = vpop.f32.mrf.mxu2  ;;  %v4094_v0 = vadd.f32 %v8691_v55, %v4058_v59 }
 0x481   : > { %v4257_v3 = vpack.c.b16 %v4226_v56, %v4225_v27  ;;  %v4155_v27 = vpack.c.bf16 %v4123_v48, %v4123_v48  ;;  %v4156_v56 = vpack.c.bf16 %v4124_v15, %v4124_v15  ;;  %v3697_v15 = vadd.f32 %v3696_v46, %v3608_v2 }
 0x482   : > { %v3523_v14 = vpop.f32.mrf.mxu0  ;;  %v3612_v34 = vpop.f32.mrf.mxu1 }
 0x483   : > { %v8701_v44 = vpop.f32.mrf.mxu3  ;;  %5445 = vmatmul.msk.bf16.vlgmr.msrb.gmra.mxu0 %vm3805_vm6, %v4257_v3  ;;  %v3689_v3 = vadd.f32 %v8662_v17, %v3600_v1  ;;  %v4227_v62 = vunpack.c.l.b16 %v4155_v27  ;;  %v4228_v47 = vunpack.c.l.b16 %v4156_v56  ;;  %v8728_v17 = vadd.f32 %v8666_v39, %v3692_v12 }
 0x484   : > { %v3610_v1 = vadd.f32 %v3609_v25, %v3520_v41  ;;  %v3613_v12 = vadd.f32 %v3612_v34, %v3523_v14  ;;  %v8741_v49 = vadd.f32 %v8684_v9, %v3697_v15  ;;  %v4229_v34 = vunpack.c.l.b16 %v4157_v7 }
 0x485   : > { %v4258_v24 = vpack.c.b16 %v4228_v47, %v4227_v62  ;;  %v8722_v26 = vadd.f32 %v8664_v29, %v3689_v3  ;;  %v4126_v62 = vmax.f32 %v4094_v0, 0.0  ;;  %v3854_v18 = vsel %vm3805_vm6, %v8728_v17, 0.0 }
 0x486   : > { %v3699_v27 = vadd.f32 %v3698_v32, %v3610_v1  ;;  %v4060_v9 = vmul.f32 %v8686_v10, %v8571_v13  ;;  %v4127_v1 = vmax.f32 %v4095_v54, 0.0 }
 0x487   : > { %v3852_v29 = vsel %vm3805_vm6, %v8722_v26, 0.0  ;;  %v4158_v38 = vpack.c.bf16 %v4126_v62, %v4126_v62 }
 0x488   : > { %v3701_v28 = vpop.f32.mrf.mxu2  ;;  %v3853_v39 = vadd.f32 %v3852_v29, %v8660_v20  ;;  %v8746_v32 = vadd.f32 %v8697_v4, %v3699_v27 }
 0x489   : > { %v3702_v51 = vadd.f32 %v3701_v28, %v3613_v12  ;;  %v4230_v3 = vunpack.c.l.b16 %v4158_v38  ;;  %v3858_v28 = vsel %vm3805_vm6, %v8741_v49, 0.0 }
 0x48a   : > { %v3525_v61 = vpop.f32.mrf.mxu0  ;;  %v3614_v58 = vpop.f32.mrf.mxu1  ;;  %v3855_v41 = vadd.f32 %v3854_v18, %v3853_v39 }
 0x48b   : > { %v8708_v23 = vpop.f32.mrf.mxu3  ;;  %v3615_v46 = vadd.f32 %v3614_v58, %v3525_v61  ;;  %v8755_v61 = vadd.f32 %v8701_v44, %v3702_v51  ;;  %v4259_v21 = vpack.c.b16 %v4230_v3, %v4229_v34  ;;  %v4096_v44 = vadd.f32 %v8691_v55, %v4060_v9 }
 0x48c   : > { %v3857_v4 = vadd.f32 %v3856_v5, %v3855_v41  ;;  %v4159_v51 = vpack.c.bf16 %v4127_v1, %v4127_v1 }
 0x48d   : > { %v4128_v18 = vmax.f32 %v4096_v44, 0.0  ;;  %v4063_v44 = vmul.f32 %v8686_v10, %v8589_v43 }
 0x48e   : > { %v4231_v34 = vunpack.c.l.b16 %v4159_v51 }
 0x490   : > { %v3703_v37 = vpop.f32.mrf.mxu2 }
 0x491   : > { %v3704_v14 = vadd.f32 %v3703_v37, %v3615_v46  ;;  %v3860_v37 = vsel %vm3805_vm6, %v8746_v32, 0.0 }
 0x492   : > { %v3528_v45 = vpop.f32.mrf.mxu0  ;;  %v3617_v8 = vpop.f32.mrf.mxu1 }
 0x493   : > { %v3795_v40 = vpop.f32.mrf.mxu3  ;;  %5446 = vmatmul.msk.bf16.gmra.mxu0 %vm3805_vm6, %v4258_v24  ;;  %v3618_v20 = vadd.f32 %v3617_v8, %v3528_v45  ;;  %v8760_v45 = vadd.f32 %v8708_v23, %v3704_v14  ;;  %v3859_v24 = vadd.f32 %v3858_v28, %v3857_v4  ;;  %v4061_v14 = vmul.f32 %v8686_v10, %v8577_v16 }
 0x495   : > { %v3861_v2 = vadd.f32 %v3860_v37, %v3859_v24  ;;  %v3864_v23 = vsel %vm3805_vm6, %v8760_v45, 0.0  ;;  %v4097_v4 = vadd.f32 %v8691_v55, %v4061_v14  ;;  %v4098_v37 = vadd.f32 %v8691_v55, %v4062_v33  ;;  %v9947_v33 = vld [vmem:[#allocation93_spill] sm:$0xff] }
 0x497   : > { %v4130_v24 = vmax.f32 %v4098_v37, 0.0 }
 0x498   : > { %v3706_v35 = vpop.f32.mrf.mxu2 }
 0x499   : > { %v3707_v58 = vadd.f32 %v3706_v35, %v3618_v20  ;;  %v3862_v35 = vsel %vm3805_vm6, %v8755_v61, 0.0  ;;  %v4162_v60 = vpack.c.bf16 %v4130_v24, %v4130_v24 }
 0x49a   : > { %v3530_v57 = vpop.f32.mrf.mxu0  ;;  %v3619_v48 = vpop.f32.mrf.mxu1  ;;  %v3863_v62 = vadd.f32 %v3862_v35, %v3861_v2 }
 0x49b   : > { %v3797_v56 = vpop.f32.mrf.mxu3  ;;  %v3620_v47 = vadd.f32 %v3619_v48, %v3530_v57  ;;  %v8766_v57 = vadd.f32 %v3795_v40, %v3707_v58  ;;  %v4234_v2 = vunpack.c.l.b16 %v4162_v60 }
 0x49c   : > { %v3865_v40 = vadd.f32 %v3864_v23, %v3863_v62  ;;  %v4064_v23 = vmul.f32 %v8686_v10, %v8595_v30  ;;  %v4099_v30 = vadd.f32 %v8691_v55, %v4063_v44 }
 0x49d   : > { %v3866_v27 = vsel %vm3805_vm6, %v8766_v57, 0.0 }
 0x49e   : > { %v3867_v7 = vadd.f32 %v3866_v27, %v3865_v40  ;;  %v4131_v27 = vmax.f32 %v4099_v30, 0.0 }
 0x4a0   : > { %v3708_v50 = vpop.f32.mrf.mxu2  ;;  %v4163_v51 = vpack.c.bf16 %v4131_v27, %v4131_v27 }
 0x4a1   : > { %v3709_v8 = vadd.f32 %v3708_v50, %v3620_v47 }
 0x4a2   : > { %v3533_v25 = vpop.f32.mrf.mxu0  ;;  %v3622_v59 = vpop.f32.mrf.mxu1 }
 0x4a3   : > { %v3623_v53 = vadd.f32 %v3622_v59, %v3533_v25  ;;  %v3800_v13 = vpop.f32.mrf.mxu3  ;;  %5447 = vmatmul.msk.bf16.gmra.mxu0 %vm3805_vm6, %v4259_v21  ;;  %v8771_v31 = vadd.f32 %v3797_v56, %v3709_v8  ;;  %v4160_v56 = vpack.c.bf16 %v4128_v18, %v4128_v18  ;;  %v4100_v18 = vadd.f32 %v8691_v55, %v4064_v23 }
 0x4a5   : > { %v3868_v39 = vsel %vm3805_vm6, %v8771_v31, 0.0  ;;  %v4232_v3 = vunpack.c.l.b16 %v4160_v56  ;;  %v4132_v40 = vmax.f32 %v4100_v18, 0.0 }
 0x4a6   : > { %v3869_v25 = vadd.f32 %v3868_v39, %v3867_v7 }
 0x4a7   : > { %v4260_v47 = vpack.c.b16 %v4232_v3, %v4231_v34  ;;  %v4235_v3 = vunpack.c.l.b16 %v4163_v51 }
 0x4a8   : > { %v3711_v0 = vpop.f32.mrf.mxu2 }
 0x4a9   : > { %v3712_v48 = vadd.f32 %v3711_v0, %v3623_v53  ;;  %v4129_v53 = vmax.f32 %v4097_v4, 0.0 }
 0x4aa   : > { %v3535_v29 = vpop.f32.mrf.mxu0  ;;  %v3624_v15 = vpop.f32.mrf.mxu1 }
 0x4ab   : > { %v8775_v12 = vadd.f32 %v3800_v13, %v3712_v48  ;;  %v3625_v50 = vadd.f32 %v3624_v15, %v3535_v29  ;;  %v3802_v59 = vpop.f32.mrf.mxu3  ;;  %v4161_v21 = vpack.c.bf16 %v4129_v53, %v4129_v53 }
 0x4ad   : > { %v3870_v46 = vsel %vm3805_vm6, %v8775_v12, 0.0  ;;  %v4233_v48 = vunpack.c.l.b16 %v4161_v21 }
 0x4ae   : > { %v3871_v20 = vadd.f32 %v3870_v46, %v3869_v25 }
 0x4b0   : > { %v3713_v38 = vpop.f32.mrf.mxu2 }
 0x4b1   : > { %v3714_v41 = vadd.f32 %v3713_v38, %v3625_v50 }
 0x4b3   : > { %v8781_v5 = vadd.f32 %v3802_v59, %v3714_v41  ;;  %5448 = vmatmul.msk.bf16.gmra.mxu0 %vm3805_vm6, %v4260_v47 }
 0x4b5   : > { %v3872_v9 = vsel %vm3805_vm6, %v8781_v5, 0.0 }
 0x4b6   : > { %v3873_v28 = vadd.f32 %v3872_v9, %v3871_v20  ;;  %v4066_v9 = vmul.f32 %v8686_v10, %v9947_v33 }
 0x4b8   : > { %v3874_v58 = vrot.slane %v3873_v28, 4  ;;  %v4102_v53 = vadd.f32 %v8691_v55, %v4066_v9 }
 0x4ba   : > { %v3875_v8 = vadd.f32 %v3874_v58, %v3873_v28 }
 0x4bc   : > { %v3876_v16 = vrot.slane %v3875_v8, 2 }
 0x4be   : > { %v3877_v0 = vadd.f32 %v3876_v16, %v3875_v8 }
 0x4c0   : > { %v3878_v13 = vrot.slane %v3877_v0, 1 }
 0x4c2   : > { %v3879_v54 = vadd.f32 %v3878_v13, %v3877_v0 }
 0x4c4   : > { %v8795_v35 = vmul.f32 %v3879_v54, %v6419_v63 }
 0x4c6   : > { %v8801_v62 = vsub.f32 %v8632_v42, %v8795_v35  ;;  %v8805_v29 = vsub.f32 %v8637_v36, %v8795_v35  ;;  %v8809_v15 = vsub.f32 %v8643_v52, %v8795_v35  ;;  %v8813_v43 = vsub.f32 %v8648_v6, %v8795_v35 }
 0x4c7   : > { %v8817_v1 = vsub.f32 %v8656_v19, %v8795_v35  ;;  %v4261_v42 = vpack.c.b16 %v4234_v2, %v4233_v48  ;;  %v8830_v19 = vsub.f32 %v8722_v26, %v8795_v35  ;;  %v8838_v56 = vsub.f32 %v8728_v17, %v8795_v35 }
 0x4c8   : > { %v3930_v36 = vmul.f32 %v8801_v62, %v8801_v62  ;;  %v3931_v52 = vmul.f32 %v8805_v29, %v8805_v29  ;;  %v3932_v6 = vmul.f32 %v8809_v15, %v8809_v15  ;;  %v3933_v39 = vmul.f32 %v8813_v43, %v8813_v43 }
 0x4c9   : > { %5449 = vmatmul.msk.bf16.gmra.mxu0 %vm3805_vm6, %v4261_v42  ;;  %v3934_v46 = vmul.f32 %v8817_v1, %v8817_v1  ;;  %v4164_v26 = vpack.c.bf16 %v4132_v40, %v4132_v40  ;;  %v8845_v59 = vsub.f32 %v8737_v22, %v8795_v35  ;;  %v3935_v14 = vmul.f32 %v8830_v19, %v8830_v19 }
 0x4ca   : > { %v3983_v50 = vsel %vm3805_vm6, %v3930_v36, 0.0  ;;  %v3984_v7 = vsel %vm3805_vm6, %v3931_v52, 0.0  ;;  %v3986_v41 = vsel %vm3805_vm6, %v3932_v6, 0.0  ;;  %v3988_v20 = vsel %vm3805_vm6, %v3933_v39, 0.0 }
 0x4cb   : > { %v3985_v38 = vadd.f32 %v3984_v7, %v3983_v50  ;;  %v4065_v17 = vmul.f32 %v8686_v10, %v8604_v11  ;;  %v8856_v28 = vsub.f32 %v8741_v49, %v8795_v35  ;;  %v3936_v22 = vmul.f32 %v8838_v56, %v8838_v56 }
 0x4cc   : > { %v3990_v58 = vsel %vm3805_vm6, %v3934_v46, 0.0  ;;  %v4236_v47 = vunpack.c.l.b16 %v4164_v26  ;;  %v8863_v37 = vsub.f32 %v8746_v32, %v8795_v35  ;;  %v3937_v11 = vmul.f32 %v8845_v59, %v8845_v59  ;;  %v9948_v46 = vld [vmem:[#allocation40_spill] sm:$0xff]  ;;  %v9949_v26 = vld [vmem:[#allocation103_spill] sm:$0xff] }
 0x4cd   : > { %v3987_v25 = vadd.f32 %v3986_v41, %v3985_v38  ;;  %v3992_v8 = vsel %vm3805_vm6, %v3935_v14, 0.0  ;;  %v4101_v49 = vadd.f32 %v8691_v55, %v4065_v17  ;;  %v8872_v24 = vsub.f32 %v8755_v61, %v8795_v35 }
 0x4ce   : > { %v3938_v0 = vmul.f32 %v8856_v28, %v8856_v28  ;;  %v3994_v32 = vsel %vm3805_vm6, %v3936_v22, 0.0  ;;  %v4262_v13 = vpack.c.b16 %v4236_v47, %v4235_v3  ;;  %v8879_v60 = vsub.f32 %v8760_v45, %v8795_v35 }
 0x4cf   : > { %v3989_v34 = vadd.f32 %v3988_v20, %v3987_v25  ;;  %v3939_v54 = vmul.f32 %v8863_v37, %v8863_v37  ;;  %v3996_v44 = vsel %vm3805_vm6, %v3937_v11, 0.0  ;;  %v4133_v48 = vmax.f32 %v4101_v49, 0.0 }
 0x4d0   : > { %v8887_v2 = vsub.f32 %v8766_v57, %v8795_v35  ;;  %v3940_v23 = vmul.f32 %v8872_v24, %v8872_v24  ;;  %v3998_v30 = vsel %vm3805_vm6, %v3938_v0, 0.0  ;;  %v4134_v45 = vmax.f32 %v4102_v53, 0.0 }
 0x4d1   : > { %v3991_v4 = vadd.f32 %v3990_v58, %v3989_v34  ;;  %v8894_v18 = vsub.f32 %v8771_v31, %v8795_v35  ;;  %v3941_v36 = vmul.f32 %v8879_v60, %v8879_v60  ;;  %v4000_v52 = vsel %vm3805_vm6, %v3939_v54, 0.0 }
 0x4d2   : > { %v4165_v6 = vpack.c.bf16 %v4133_v48, %v4133_v48  ;;  %v8901_v57 = vsub.f32 %v8775_v12, %v8795_v35  ;;  %v3942_v40 = vmul.f32 %v8887_v2, %v8887_v2  ;;  %v4002_v39 = vsel %vm3805_vm6, %v3940_v23, 0.0 }
 0x4d3   : > { %v3993_v16 = vadd.f32 %v3992_v8, %v3991_v4  ;;  %v4166_v50 = vpack.c.bf16 %v4134_v45, %v4134_v45  ;;  %v8908_v31 = vsub.f32 %v8781_v5, %v8795_v35  ;;  %v3943_v38 = vmul.f32 %v8894_v18, %v8894_v18 }
 0x4d4   : > { %v4004_v51 = vsel %vm3805_vm6, %v3941_v36, 0.0  ;;  %v4068_v12 = vmul.f32 %v8686_v10, %v9948_v46  ;;  %v4067_v25 = vmul.f32 %v8686_v10, %v9949_v26  ;;  %v3944_v14 = vmul.f32 %v8901_v57, %v8901_v57 }
 0x4d5   : > { %v3995_v21 = vadd.f32 %v3994_v32, %v3993_v16  ;;  %v4006_v20 = vsel %vm3805_vm6, %v3942_v40, 0.0  ;;  %v4237_v34 = vunpack.c.l.b16 %v4165_v6  ;;  %v4238_v5 = vunpack.c.l.b16 %v4166_v50 }
 0x4d6   : > { %v3945_v3 = vmul.f32 %v8908_v31, %v8908_v31  ;;  %v4008_v17 = vsel %vm3805_vm6, %v3943_v38, 0.0  ;;  %v4104_v9 = vadd.f32 %v8691_v55, %v4068_v12  ;;  %v4010_v22 = vsel %vm3805_vm6, %v3944_v14, 0.0  ;;  %v9950_v38 = vld [vmem:[#allocation90_spill] sm:$0xff] }
 0x4d7   : > { %v3997_v61 = vadd.f32 %v3996_v44, %v3995_v21  ;;  %v4263_v58 = vpack.c.b16 %v4238_v5, %v4237_v34  ;;  %v4103_v10 = vadd.f32 %v8691_v55, %v4067_v25 }
 0x4d8   : > { %v4012_v4 = vsel %vm3805_vm6, %v3945_v3, 0.0  ;;  %v4136_v8 = vmax.f32 %v4104_v9, 0.0 }
 0x4d9   : > { %5450 = vmatmul.msk.bf16.gmra.mxu0 %vm3805_vm6, %v4262_v13  ;;  %v3999_v42 = vadd.f32 %v3998_v30, %v3997_v61  ;;  %v4135_v16 = vmax.f32 %v4103_v10, 0.0 }
 0x4da   : > { %v4168_v0 = vpack.c.bf16 %v4136_v8, %v4136_v8 }
 0x4db   : > { %v4001_v27 = vadd.f32 %v4000_v52, %v3999_v42  ;;  %v4167_v32 = vpack.c.bf16 %v4135_v16, %v4135_v16  ;;  %v8933_v52 = vld [vmem:[%s9374_s8] ss:$0 sm:$0xff] }
 0x4dc   : > { %v4240_v54 = vunpack.c.l.b16 %v4168_v0 }
 0x4dd   : > { %v4003_v7 = vadd.f32 %v4002_v39, %v4001_v27  ;;  %v4239_v44 = vunpack.c.l.b16 %v4167_v32 }
 0x4df   : > { %v4005_v41 = vadd.f32 %v4004_v51, %v4003_v7  ;;  %v4264_v23 = vpack.c.b16 %v4240_v54, %v4239_v44 }
 0x4e1   : > { %v4007_v35 = vadd.f32 %v4006_v20, %v4005_v41 }
 0x4e3   : > { %v4009_v33 = vadd.f32 %v4008_v17, %v4007_v35 }
 0x4e5   : > { %v4011_v47 = vadd.f32 %v4010_v22, %v4009_v33 }
 0x4e7   : > { %v4013_v11 = vadd.f32 %v4012_v4, %v4011_v47 }
 0x4e9   : > { %5451 = vmatmul.msk.bf16.gmra.mxu0 %vm3805_vm6, %v4263_v58  ;;  %v4014_v49 = vrot.slane %v4013_v11, 4 }
 0x4eb   : > { %v4015_v53 = vadd.f32 %v4014_v49, %v4013_v11 }
 0x4ed   : > { %v4016_v13 = vrot.slane %v4015_v53, 2 }
 0x4ef   : > { %v4017_v21 = vadd.f32 %v4016_v13, %v4015_v53 }
 0x4f1   : > { %v4018_v61 = vrot.slane %v4017_v21, 1 }
 0x4f3   : > { %v4019_v48 = vadd.f32 %v4018_v61, %v4017_v21 }
 0x4f5   : > { %v4021_v30 = vmul.f32 %v4019_v48, %v6419_v63 }
 0x4f7   : > { %v4024_v45 = vadd.f32 1e-05, %v4021_v30 }
 0x4f9   : > { %5452 = vmatmul.msk.bf16.gmra.mxu0 %vm3805_vm6, %v4264_v23  ;;  %5699 = vrsqrt.f32 %v4024_v45  ;;  %vm4041_vm1 = vweird.f32 %v4024_v45 }
 0x4ff   : > { %v5700_v42 = vpop.eup %5699 }
 0x500   : > { %v4036_v36 = vmul.f32 %v5700_v42, %v4024_v45  ;;  %v4354_v6 = vpop.f32.mrf.mxu0  ;;  %vm4042_vm0 = vweird.f32 %v5700_v42 }
 0x501   : > { %v8936_v39 = vadd.f32 %v8933_v52, %v4354_v6  ;;  %vm4043_vm2 = vmor %vm4041_vm1, %vm4042_vm0 }
 0x502   : > { %v4037_v27 = vmul.f32 %v5700_v42, %v4036_v36 }
 0x503   : > { %4470 = vmax.xlane.f32.xlu0 %v8936_v39 }
 0x504   : > { %v4038_v40 = vmul.f32 0.5, %v4037_v27 }
 0x506   : > { %v4039_v50 = vsub.f32 1.5, %v4038_v40 }
 0x508   : > { %v4040_v63 = vmul.f32 %v5700_v42, %v4039_v50  ;;  %v4356_v46 = vpop.f32.mrf.mxu0 }
 0x509   : > { %v8941_v12 = vadd.f32 %v8933_v52, %v4356_v46 }
 0x50a   : > { %v4044_v7 = vsel %vm4043_vm2, %v5700_v42, %v4040_v63 }
 0x50b   : > { %v4046_v51 = vmul.f32 %v4044_v7, %v9950_v38  ;;  %4472 = vmax.xlane.f32.xlu0 %v8941_v12 }
 0x50d   : > { %v8943_v41 = vperm.slane %v4046_v51, 0 }
 0x50f   : > { %v4069_v26 = vmul.f32 %v8943_v41, %v8801_v62  ;;  %v4070_v25 = vmul.f32 %v8943_v41, %v8805_v29  ;;  %v4071_v9 = vmul.f32 %v8943_v41, %v8809_v15  ;;  %v4072_v62 = vmul.f32 %v8943_v41, %v8813_v43 }
 0x510   : > { %v4359_v35 = vpop.f32.mrf.mxu0  ;;  %v4073_v13 = vmul.f32 %v8943_v41, %v8817_v1  ;;  %v4074_v21 = vmul.f32 %v8943_v41, %v8830_v19  ;;  %v4075_v40 = vmul.f32 %v8943_v41, %v8838_v56  ;;  %v4076_v50 = vmul.f32 %v8943_v41, %v8845_v59 }
 0x511   : > { %v4105_v14 = vadd.f32 %v8691_v55, %v4069_v26  ;;  %v4106_v20 = vadd.f32 %v8691_v55, %v4070_v25  ;;  %v8953_v3 = vadd.f32 %v8933_v52, %v4359_v35  ;;  %v4107_v10 = vadd.f32 %v8691_v55, %v4071_v9 }
 0x512   : > { %v4108_v47 = vadd.f32 %v8691_v55, %v4072_v62  ;;  %v4109_v44 = vadd.f32 %v8691_v55, %v4073_v13  ;;  %v4110_v61 = vadd.f32 %v8691_v55, %v4074_v21  ;;  %v4111_v7 = vadd.f32 %v8691_v55, %v4075_v40 }
 0x513   : > { %v4137_v34 = vmax.f32 %v4105_v14, 0.0  ;;  %v4138_v5 = vmax.f32 %v4106_v20, 0.0  ;;  %4474 = vmax.xlane.f32.xlu1 %v8953_v3  ;;  %v4139_v8 = vmax.f32 %v4107_v10, 0.0  ;;  %v4112_v38 = vadd.f32 %v8691_v55, %v4076_v50 }
 0x514   : > { %v4140_v15 = vmax.f32 %v4108_v47, 0.0  ;;  %v4141_v30 = vmax.f32 %v4109_v44, 0.0  ;;  %v4142_v45 = vmax.f32 %v4110_v61, 0.0  ;;  %v4143_v26 = vmax.f32 %v4111_v7, 0.0 }
 0x515   : > { %v4169_v17 = vpack.c.bf16 %v4137_v34, %v4137_v34  ;;  %v4170_v33 = vpack.c.bf16 %v4138_v5, %v4138_v5  ;;  %v4171_v43 = vpack.c.bf16 %v4139_v8, %v4139_v8  ;;  %v4144_v25 = vmax.f32 %v4112_v38, 0.0 }
 0x516   : > { %v4172_v16 = vpack.c.bf16 %v4140_v15, %v4140_v15  ;;  %v4173_v1 = vpack.c.bf16 %v4141_v30, %v4141_v30  ;;  %v4174_v42 = vpack.c.bf16 %v4142_v45, %v4142_v45  ;;  %v4175_v56 = vpack.c.bf16 %v4143_v26, %v4143_v26 }
 0x517   : > { %v4241_v29 = vunpack.c.l.b16 %v4169_v17  ;;  %v4242_v22 = vunpack.c.l.b16 %v4170_v33  ;;  %v4243_v0 = vunpack.c.l.b16 %v4171_v43  ;;  %v4176_v14 = vpack.c.bf16 %v4144_v25, %v4144_v25 }
 0x518   : > { %v4361_v4 = vpop.f32.mrf.mxu0  ;;  %v4244_v32 = vunpack.c.l.b16 %v4172_v16  ;;  %v4245_v27 = vunpack.c.l.b16 %v4173_v1  ;;  %v4246_v6 = vunpack.c.l.b16 %v4174_v42  ;;  %v4247_v34 = vunpack.c.l.b16 %v4175_v56 }
 0x519   : > { %v4265_v58 = vpack.c.b16 %v4242_v22, %v4241_v29  ;;  %v8964_v11 = vadd.f32 %v8933_v52, %v4361_v4  ;;  %v4248_v5 = vunpack.c.l.b16 %v4176_v14  ;;  %v4077_v35 = vmul.f32 %v8943_v41, %v8856_v28 }
 0x51a   : > { %v4266_v54 = vpack.c.b16 %v4244_v32, %v4243_v0  ;;  %v4267_v63 = vpack.c.b16 %v4246_v6, %v4245_v27  ;;  %v4078_v17 = vmul.f32 %v8943_v41, %v8863_v37  ;;  %v4079_v43 = vmul.f32 %v8943_v41, %v8872_v24 }
 0x51b   : > { %5453 = vmatmul.msk.bf16.gmra.mxu0 %vm3805_vm6, %v4265_v58  ;;  %4476 = vmax.xlane.f32.xlu1 %v8964_v11  ;;  %v4268_v33 = vpack.c.b16 %v4248_v5, %v4247_v34  ;;  %v4113_v9 = vadd.f32 %v8691_v55, %v4077_v35  ;;  %v4080_v16 = vmul.f32 %v8943_v41, %v8879_v60 }
 0x51c   : > { %v4114_v62 = vadd.f32 %v8691_v55, %v4078_v17  ;;  %v4115_v0 = vadd.f32 %v8691_v55, %v4079_v43  ;;  %v4081_v1 = vmul.f32 %v8943_v41, %v8887_v2  ;;  %v4082_v42 = vmul.f32 %v8943_v41, %v8894_v18 }
 0x51d   : > { %v4145_v58 = vmax.f32 %v4113_v9, 0.0  ;;  %v4116_v32 = vadd.f32 %v8691_v55, %v4080_v16  ;;  %v4084_v26 = vmul.f32 %v8943_v41, %v8908_v31  ;;  %v4083_v14 = vmul.f32 %v8943_v41, %v8901_v57 }
 0x51e   : > { %v4146_v10 = vmax.f32 %v4114_v62, 0.0  ;;  %v4117_v27 = vadd.f32 %v8691_v55, %v4081_v1  ;;  %v4118_v6 = vadd.f32 %v8691_v55, %v4082_v42 }
 0x51f   : > { %v4177_v28 = vpack.c.bf16 %v4145_v58, %v4145_v58  ;;  %v4148_v44 = vmax.f32 %v4116_v32, 0.0  ;;  %v4119_v5 = vadd.f32 %v8691_v55, %v4083_v14 }
 0x520   : > { %v4364_v49 = vpop.f32.mrf.mxu0  ;;  %v4178_v47 = vpack.c.bf16 %v4146_v10, %v4146_v10  ;;  %v4150_v7 = vmax.f32 %v4118_v6, 0.0 }
 0x521   : > { %v8968_v53 = vadd.f32 %v8933_v52, %v4364_v49  ;;  %v4249_v8 = vunpack.c.l.b16 %v4177_v28  ;;  %v4180_v61 = vpack.c.bf16 %v4148_v44, %v4148_v44  ;;  %v4151_v41 = vmax.f32 %v4119_v5, 0.0 }
 0x522   : > { %v4250_v15 = vunpack.c.l.b16 %v4178_v47  ;;  %v4182_v38 = vpack.c.bf16 %v4150_v7, %v4150_v7 }
 0x523   : > { %4478 = vmax.xlane.f32.xlu2 %v8968_v53  ;;  %v4252_v45 = vunpack.c.l.b16 %v4180_v61 }
 0x524   : > { %v4269_v49 = vpack.c.b16 %v4250_v15, %v4249_v8  ;;  %v4254_v56 = vunpack.c.l.b16 %v4182_v38 }
 0x528   : > { %v4366_v48 = vpop.f32.mrf.mxu0 }
 0x529   : > { %v8979_v23 = vadd.f32 %v8933_v52, %v4366_v48 }
 0x52b   : > { %5454 = vmatmul.msk.bf16.gmra.mxu0 %vm3805_vm6, %v4266_v54  ;;  %4480 = vmax.xlane.f32.xlu2 %v8979_v23  ;;  %v4147_v54 = vmax.f32 %v4115_v0, 0.0 }
 0x52d   : > { %v4179_v24 = vpack.c.bf16 %v4147_v54, %v4147_v54 }
 0x52f   : > { %v4251_v30 = vunpack.c.l.b16 %v4179_v24 }
 0x530   : > { %v4369_v19 = vpop.f32.mrf.mxu0 }
 0x531   : > { %v8983_v36 = vadd.f32 %v8933_v52, %v4369_v19  ;;  %v4270_v19 = vpack.c.b16 %v4252_v45, %v4251_v30 }
 0x533   : > { %4482 = vmax.xlane.f32.xlu0 %v8983_v36 }
 0x538   : > { %v4371_v51 = vpop.f32.mrf.mxu0 }
 0x539   : > { %v8994_v46 = vadd.f32 %v8933_v52, %v4371_v51 }
 0x53b   : > { %5455 = vmatmul.msk.bf16.gmra.mxu0 %vm3805_vm6, %v4267_v63  ;;  %4484 = vmax.xlane.f32.xlu1 %v8994_v46  ;;  %v4149_v63 = vmax.f32 %v4117_v27, 0.0 }
 0x53d   : > { %v4181_v2 = vpack.c.bf16 %v4149_v63, %v4149_v63 }
 0x53f   : > { %v4253_v25 = vunpack.c.l.b16 %v4181_v2 }
 0x541   : > { %v4271_v34 = vpack.c.b16 %v4254_v56, %v4253_v25 }
 0x546   : > { %v4374_v59 = vpop.f32.mrf.mxu0 }
 0x547   : > { %v8998_v20 = vadd.f32 %v8933_v52, %v4374_v59  ;;  %v4120_v59 = vadd.f32 %v8691_v55, %v4084_v26 }
 0x549   : > { %4486 = vmax.xlane.f32.xlu2 %v8998_v20  ;;  %v4152_v57 = vmax.f32 %v4120_v59, 0.0 }
 0x54b   : > { %5456 = vmatmul.msk.bf16.gmra.mxu0 %vm3805_vm6, %v4268_v33  ;;  %v4184_v62 = vpack.c.bf16 %v4152_v57, %v4152_v57 }
 0x54d   : > { %v4256_v28 = vunpack.c.l.b16 %v4184_v62 }
 0x54e   : > { %v4376_v29 = vpop.f32.mrf.mxu0 }
 0x54f   : > { %v9009_v22 = vadd.f32 %v8933_v52, %v4376_v29  ;;  %v4183_v29 = vpack.c.bf16 %v4151_v41, %v4151_v41 }
 0x551   : > { %4488 = vmax.xlane.f32.xlu0 %v9009_v22  ;;  %v4255_v47 = vunpack.c.l.b16 %v4183_v29 }
 0x556   : > { %v4379_v37 = vpop.f32.mrf.mxu0 }
 0x557   : > { %v9013_v4 = vadd.f32 %v8933_v52, %v4379_v37  ;;  %v4272_v37 = vpack.c.b16 %v4256_v28, %v4255_v47 }
 0x559   : > { %4490 = vmax.xlane.f32.xlu1 %v9013_v4 }
 0x55b   : > { %5457 = vmatmul.msk.bf16.gmra.mxu0 %vm3805_vm6, %v4269_v49 }
 0x55e   : > { %v4381_v13 = vpop.f32.mrf.mxu0 }
 0x55f   : > { %v9024_v21 = vadd.f32 %v8933_v52, %v4381_v13 }
 0x561   : > { %4492 = vmax.xlane.f32.xlu2 %v9024_v21 }
 0x566   : > { %v4384_v60 = vpop.f32.mrf.mxu0 }
 0x567   : > { %v9028_v48 = vadd.f32 %v8933_v52, %v4384_v60 }
 0x569   : > { %4494 = vmax.xlane.f32.xlu0 %v9028_v48 }
 0x56b   : > { %5458 = vmatmul.msk.bf16.gmra.mxu0 %vm3805_vm6, %v4270_v19 }
 0x56e   : > { %v4386_v40 = vpop.f32.mrf.mxu0 }
 0x56f   : > { %v9039_v50 = vadd.f32 %v8933_v52, %v4386_v40 }
 0x571   : > { %4496 = vmax.xlane.f32.xlu1 %v9039_v50 }
 0x576   : > { %v4389_v18 = vpop.f32.mrf.mxu0  ;;  %v4471_v35 = vpop.xlane.xlu0 %4470 }
 0x577   : > { %v9043_v51 = vadd.f32 %v8933_v52, %v4389_v18  ;;  %v9053_v17 = vsub.f32 %v8936_v39, %v4471_v35 }
 0x579   : > { %4498 = vmax.xlane.f32.xlu2 %v9043_v51  ;;  %v4566_v31 = vmul.f32 1.442695, %v9053_v17 }
 0x57b   : > { %5459 = vmatmul.msk.bf16.gmra.mxu0 %vm3805_vm6, %v4271_v34  ;;  %5701 = vpow2.f32 %v4566_v31 }
 0x57e   : > { %v4391_v33 = vpop.f32.mrf.mxu0  ;;  %v4473_v55 = vpop.xlane.xlu0 %4472 }
 0x57f   : > { %v9058_v9 = vadd.f32 %v8933_v52, %v4391_v33  ;;  %v9062_v58 = vsub.f32 %v8941_v12, %v4473_v55 }
 0x581   : > { %4500 = vmax.xlane.f32.xlu0 %v9058_v9  ;;  %v5702_v39 = vpop.eup %5701  ;;  %v4568_v10 = vmul.f32 1.442695, %v9062_v58 }
 0x582   : > { %4630 = vadd.xlane.f32.xlu2 %v5702_v39 }
 0x583   : > { %5703 = vpow2.f32 %v4568_v10 }
 0x586   : > { %v4475_v15 = vpop.xlane.xlu1 %4474 }
 0x587   : > { %v9067_v43 = vsub.f32 %v8953_v3, %v4475_v15 }
 0x589   : > { %v5704_v8 = vpop.eup %5703  ;;  %v4570_v16 = vmul.f32 1.442695, %v9067_v43 }
 0x58a   : > { %4632 = vadd.xlane.f32.xlu0 %v5704_v8 }
 0x58b   : > { %5460 = vmatmul.msk.bf16.gmra.mxu0 %vm3805_vm6, %v4272_v37  ;;  %5705 = vpow2.f32 %v4570_v16 }
 0x58e   : > { %v4477_v12 = vpop.xlane.xlu1 %4476 }
 0x58f   : > { %v9074_v32 = vsub.f32 %v8964_v11, %v4477_v12 }
 0x591   : > { %v4572_v54 = vmul.f32 1.442695, %v9074_v32  ;;  %v5706_v44 = vpop.eup %5705 }
 0x593   : > { %5707 = vpow2.f32 %v4572_v54 }
 0x596   : > { %v4479_v13 = vpop.xlane.xlu2 %4478 }
 0x597   : > { %v9082_v61 = vsub.f32 %v8968_v53, %v4479_v13 }
 0x598   : > { %v4394_v49 = vpop.f32.mrf.mxu0 }
 0x599   : > { %v9071_v0 = vadd.f32 %v8933_v52, %v4394_v49  ;;  %v4574_v11 = vmul.f32 1.442695, %v9082_v61  ;;  %v5708_v30 = vpop.eup %5707 }
 0x59b   : > { %4502 = vmax.xlane.f32.xlu1 %v9071_v0  ;;  %5709 = vpow2.f32 %v4574_v11 }
 0x59e   : > { %v4481_v60 = vpop.xlane.xlu2 %4480 }
 0x59f   : > { %v9090_v42 = vsub.f32 %v8979_v23, %v4481_v60 }
 0x5a0   : > { %v4396_v24 = vpop.f32.mrf.mxu0 }
 0x5a1   : > { %v9079_v3 = vadd.f32 %v8933_v52, %v4396_v24  ;;  %v4576_v53 = vmul.f32 1.442695, %v9090_v42  ;;  %v5710_v27 = vpop.eup %5709 }
 0x5a3   : > { %4504 = vmax.xlane.f32.xlu2 %v9079_v3  ;;  %4634 = vadd.xlane.f32.xlu1 %v5706_v44  ;;  %5711 = vpow2.f32 %v4576_v53 }
 0x5a6   : > { %v4483_v19 = vpop.xlane.xlu0 %4482 }
 0x5a7   : > { %v9098_v63 = vsub.f32 %v8983_v36, %v4483_v19 }
 0x5a8   : > { %v4399_v45 = vpop.f32.mrf.mxu0 }
 0x5a9   : > { %v9087_v1 = vadd.f32 %v8933_v52, %v4399_v45  ;;  %v4578_v23 = vmul.f32 1.442695, %v9098_v63  ;;  %v5712_v2 = vpop.eup %5711 }
 0x5ab   : > { %4506 = vmax.xlane.f32.xlu0 %v9087_v1  ;;  %4636 = vadd.xlane.f32.xlu2 %v5708_v30  ;;  %5713 = vpow2.f32 %v4578_v23 }
 0x5ae   : > { %v4485_v7 = vpop.xlane.xlu1 %4484 }
 0x5af   : > { %v9106_v26 = vsub.f32 %v8994_v46, %v4485_v7 }
 0x5b0   : > { %v4401_v6 = vpop.f32.mrf.mxu0 }
 0x5b1   : > { %v9095_v40 = vadd.f32 %v8933_v52, %v4401_v6  ;;  %v4580_v36 = vmul.f32 1.442695, %v9106_v26  ;;  %v5714_v56 = vpop.eup %5713 }
 0x5b3   : > { %4508 = vmax.xlane.f32.xlu1 %v9095_v40  ;;  %4638 = vadd.xlane.f32.xlu0 %v5710_v27  ;;  %5715 = vpow2.f32 %v4580_v36 }
 0x5b8   : > { %v4404_v38 = vpop.f32.mrf.mxu0 }
 0x5b9   : > { %v9103_v18 = vadd.f32 %v8933_v52, %v4404_v38  ;;  %v5716_v35 = vpop.eup %5715 }
 0x5bb   : > { %4510 = vmax.xlane.f32.xlu2 %v9103_v18  ;;  %4640 = vadd.xlane.f32.xlu1 %v5712_v2 }
 0x5bc   : > { %v4487_v25 = vpop.xlane.xlu2 %4486 }
 0x5bd   : > { %v9114_v34 = vsub.f32 %v8998_v20, %v4487_v25 }
 0x5bf   : > { %v4582_v46 = vmul.f32 1.442695, %v9114_v34 }
 0x5c0   : > { %v4406_v14 = vpop.f32.mrf.mxu0 }
 0x5c1   : > { %v9111_v59 = vadd.f32 %v8933_v52, %v4406_v14  ;;  %5717 = vpow2.f32 %v4582_v46 }
 0x5c3   : > { %4512 = vmax.xlane.f32.xlu0 %v9111_v59  ;;  %4642 = vadd.xlane.f32.xlu2 %v5714_v56 }
 0x5c4   : > { %v4489_v5 = vpop.xlane.xlu0 %4488 }
 0x5c5   : > { %v9122_v57 = vsub.f32 %v9009_v22, %v4489_v5 }
 0x5c7   : > { %v4584_v20 = vmul.f32 1.442695, %v9122_v57  ;;  %v5718_v62 = vpop.eup %5717 }
 0x5c8   : > { %v4409_v33 = vpop.f32.mrf.mxu0 }
 0x5c9   : > { %v9119_v31 = vadd.f32 %v8933_v52, %v4409_v33  ;;  %5719 = vpow2.f32 %v4584_v20 }
 0x5cb   : > { %4514 = vmax.xlane.f32.xlu1 %v9119_v31  ;;  %4644 = vadd.xlane.f32.xlu0 %v5716_v35 }
 0x5cc   : > { %v4491_v41 = vpop.xlane.xlu1 %4490 }
 0x5cd   : > { %v9130_v39 = vsub.f32 %v9013_v4, %v4491_v41 }
 0x5cf   : > { %v4586_v22 = vmul.f32 1.442695, %v9130_v39  ;;  %v5720_v10 = vpop.eup %5719 }
 0x5d0   : > { %v4411_v29 = vpop.f32.mrf.mxu0 }
 0x5d1   : > { %v9127_v55 = vadd.f32 %v8933_v52, %v4411_v29  ;;  %5721 = vpow2.f32 %v4586_v22 }
 0x5d3   : > { %4516 = vmax.xlane.f32.xlu2 %v9127_v55  ;;  %4646 = vadd.xlane.f32.xlu1 %v5718_v62 }
 0x5d4   : > { %v4493_v15 = vpop.xlane.xlu2 %4492 }
 0x5d7   : > { %v5722_v37 = vpop.eup %5721 }
 0x5d8   : > { %v4414_v28 = vpop.f32.mrf.mxu0 }
 0x5d9   : > { %v9135_v47 = vadd.f32 %v8933_v52, %v4414_v28 }
 0x5db   : > { %4518 = vmax.xlane.f32.xlu0 %v9135_v47  ;;  %4648 = vadd.xlane.f32.xlu2 %v5720_v10 }
 0x5dc   : > { %v4495_v49 = vpop.xlane.xlu0 %4494 }
 0x5dd   : > { %v9157_v45 = vsub.f32 %v9028_v48, %v4495_v49 }
 0x5df   : > { %v4590_v19 = vmul.f32 1.442695, %v9157_v45 }
 0x5e0   : > { %v4416_v8 = vpop.f32.mrf.mxu0 }
 0x5e1   : > { %v9139_v4 = vadd.f32 %v8933_v52, %v4416_v8 }
 0x5e3   : > { %4520 = vmax.xlane.f32.xlu1 %v9139_v4  ;;  %4650 = vadd.xlane.f32.xlu0 %v5722_v37 }
 0x5e4   : > { %v4497_v7 = vpop.xlane.xlu1 %4496 }
 0x5e5   : > { %v9174_v36 = vsub.f32 %v9039_v50, %v4497_v7  ;;  %v9188_v50 = vsub.f32 %v9024_v21, %v4493_v15 }
 0x5e7   : > { %v4592_v14 = vmul.f32 1.442695, %v9174_v36  ;;  %v4588_v29 = vmul.f32 1.442695, %v9188_v50 }
 0x5e8   : > { %v4419_v16 = vpop.f32.mrf.mxu0 }
 0x5e9   : > { %v9143_v12 = vadd.f32 %v8933_v52, %v4419_v16 }
 0x5eb   : > { %4522 = vmax.xlane.f32.xlu2 %v9143_v12 }
 0x5ec   : > { %v4499_v54 = vpop.xlane.xlu2 %4498 }
 0x5ed   : > { %v9200_v21 = vsub.f32 %v9043_v51, %v4499_v54 }
 0x5ef   : > { %v4594_v8 = vmul.f32 1.442695, %v9200_v21 }
 0x5f0   : > { %v4421_v13 = vpop.f32.mrf.mxu0 }
 0x5f1   : > { %v9147_v44 = vadd.f32 %v8933_v52, %v4421_v13 }
 0x5f3   : > { %4524 = vmax.xlane.f32.xlu0 %v9147_v44 }
 0x5f4   : > { %v4501_v24 = vpop.xlane.xlu0 %4500 }
 0x5f5   : > { %v4631_v60 = vpop.xlane.xlu2 %4630  ;;  %v9169_v48 = vsub.f32 %v9058_v9, %v4501_v24 }
 0x5f6   : > { %5723 = vlog2.f32 %v4631_v60 }
 0x5f7   : > { %v4596_v25 = vmul.f32 1.442695, %v9169_v48 }
 0x5f8   : > { %v4424_v11 = vpop.f32.mrf.mxu0 }
 0x5f9   : > { %v9153_v30 = vadd.f32 %v8933_v52, %v4424_v11 }
 0x5fb   : > { %4526 = vmax.xlane.f32.xlu1 %v9153_v30 }
 0x5fc   : > { %v5724_v53 = vpop.eup %5723 }
 0x5fd   : > { %v4695_v6 = vmul.f32 0.6931472, %v5724_v53  ;;  %v4633_v23 = vpop.xlane.xlu0 %4632 }
 0x5fe   : > { %5725 = vlog2.f32 %v4633_v23 }
 0x5ff   : > { %v4758_v38 = vsub.f32 %v9053_v17, %v4695_v6  ;;  %5727 = vpow2.f32 %v4590_v19 }
 0x600   : > { %v4426_v27 = vpop.f32.mrf.mxu0  ;;  %5729 = vpow2.f32 %v4596_v25 }
 0x601   : > { %v9161_v2 = vadd.f32 %v8933_v52, %v4426_v27  ;;  %4791 = vst.msk [vmem:[%s9166_s26] sm:$0xff] %vm4790_vm3, %v4758_v38  ;;  %5731 = vpow2.f32 %v4592_v14 }
 0x603   : > { %4528 = vmax.xlane.f32.xlu2 %v9161_v2 }
 0x604   : > { %v5726_v56 = vpop.eup %5725 }
 0x605   : > { %v4697_v5 = vmul.f32 0.6931472, %v5726_v56  ;;  %v5728_v17 = vpop.eup %5727 }
 0x606   : > { %v5730_v41 = vpop.eup %5729 }
 0x607   : > { %v4759_v35 = vsub.f32 %v9062_v58, %v4697_v5  ;;  %v5732_v10 = vpop.eup %5731 }
 0x608   : > { %v4429_v46 = vpop.f32.mrf.mxu0 }
 0x609   : > { %v9181_v9 = vadd.f32 %v8933_v52, %v4429_v46  ;;  %4792 = vst.msk [vmem:[%s9166_s26 + $0x8] sm:$0xff] %vm4790_vm3, %v4759_v35 }
 0x60b   : > { %4654 = vadd.xlane.f32.xlu2 %v5728_v17  ;;  %4530 = vmax.xlane.f32.xlu0 %v9181_v9 }
 0x60e   : > { %v4503_v33 = vpop.xlane.xlu1 %4502 }
 0x60f   : > { %v9191_v20 = vsub.f32 %v9071_v0, %v4503_v33 }
 0x610   : > { %v4431_v62 = vpop.f32.mrf.mxu0 }
 0x611   : > { %v4598_v22 = vmul.f32 1.442695, %v9191_v20  ;;  %v9196_v58 = vadd.f32 %v8933_v52, %v4431_v62 }
 0x613   : > { %5733 = vpow2.f32 %v4598_v22  ;;  %4660 = vadd.xlane.f32.xlu2 %v5730_v41  ;;  %4656 = vadd.xlane.f32.xlu0 %v5732_v10 }
 0x614   : > { %4532 = vmax.xlane.f32.xlu1 %v9196_v58  ;;  %5735 = vpow2.f32 %v4588_v29 }
 0x616   : > { %v4505_v0 = vpop.xlane.xlu2 %4504  ;;  %v4635_v28 = vpop.xlane.xlu1 %4634 }
 0x617   : > { %5737 = vlog2.f32 %v4635_v28  ;;  %v9204_v16 = vsub.f32 %v9079_v3, %v4505_v0 }
 0x618   : > { %5739 = vpow2.f32 %v4594_v8 }
 0x619   : > { %v5734_v37 = vpop.eup %5733  ;;  %v4600_v11 = vmul.f32 1.442695, %v9204_v16 }
 0x61a   : > { %v5736_v15 = vpop.eup %5735 }
 0x61b   : > { %4662 = vadd.xlane.f32.xlu0 %v5734_v37 }
 0x61c   : > { %4652 = vadd.xlane.f32.xlu1 %v5736_v15 }
 0x61d   : > { %v5738_v52 = vpop.eup %5737 }
 0x61e   : > { %v4699_v49 = vmul.f32 0.6931472, %v5738_v52  ;;  %v4507_v13 = vpop.xlane.xlu0 %4506  ;;  %v4637_v24 = vpop.xlane.xlu2 %4636 }
 0x61f   : > { %v9207_v51 = vsub.f32 %v9087_v1, %v4507_v13  ;;  %5741 = vlog2.f32 %v4637_v24  ;;  %v5740_v53 = vpop.eup %5739 }
 0x620   : > { %v4760_v54 = vsub.f32 %v9067_v43, %v4699_v49 }
 0x621   : > { %v4602_v60 = vmul.f32 1.442695, %v9207_v51 }
 0x622   : > { %4793 = vst.msk [vmem:[%s9166_s26 + $0x10] sm:$0xff] %vm4790_vm3, %v4760_v54 }
 0x623   : > { %5743 = vpow2.f32 %v4602_v60 }
 0x624   : > { %4658 = vadd.xlane.f32.xlu1 %v5740_v53  ;;  %5745 = vpow2.f32 %v4600_v11 }
 0x625   : > { %v5742_v3 = vpop.eup %5741 }
 0x626   : > { %v4701_v19 = vmul.f32 0.6931472, %v5742_v3  ;;  %v4509_v27 = vpop.xlane.xlu1 %4508  ;;  %v4639_v6 = vpop.xlane.xlu0 %4638 }
 0x627   : > { %v9215_v1 = vsub.f32 %v9095_v40, %v4509_v27  ;;  %5747 = vlog2.f32 %v4639_v6 }
 0x628   : > { %v4761_v43 = vsub.f32 %v9074_v32, %v4701_v19 }
 0x629   : > { %v5744_v23 = vpop.eup %5743  ;;  %v4604_v7 = vmul.f32 1.442695, %v9215_v1 }
 0x62a   : > { %4794 = vst.msk [vmem:[%s9166_s26 + $0x18] sm:$0xff] %vm4790_vm3, %v4761_v43  ;;  %4666 = vadd.xlane.f32.xlu2 %v5744_v23  ;;  %v5746_v38 = vpop.eup %5745 }
 0x62b   : > { %5749 = vpow2.f32 %v4604_v7 }
 0x62c   : > { %4664 = vadd.xlane.f32.xlu1 %v5746_v38 }
 0x62d   : > { %v5748_v25 = vpop.eup %5747 }
 0x62e   : > { %v4703_v56 = vmul.f32 0.6931472, %v5748_v25  ;;  %v4511_v14 = vpop.xlane.xlu2 %4510  ;;  %v4641_v46 = vpop.xlane.xlu1 %4640 }
 0x62f   : > { %v9222_v40 = vsub.f32 %v9103_v18, %v4511_v14  ;;  %5751 = vlog2.f32 %v4641_v46 }
 0x630   : > { %v4762_v32 = vsub.f32 %v9082_v61, %v4703_v56 }
 0x631   : > { %v5750_v5 = vpop.eup %5749  ;;  %v4606_v17 = vmul.f32 1.442695, %v9222_v40 }
 0x632   : > { %4795 = vst.msk [vmem:[%s9166_s26 + $0x20] sm:$0xff] %vm4790_vm3, %v4762_v32  ;;  %4668 = vadd.xlane.f32.xlu0 %v5750_v5 }
 0x633   : > { %5753 = vpow2.f32 %v4606_v17 }
 0x635   : > { %v5752_v35 = vpop.eup %5751 }
 0x636   : > { %v4705_v33 = vmul.f32 0.6931472, %v5752_v35  ;;  %v4513_v41 = vpop.xlane.xlu0 %4512  ;;  %v4643_v62 = vpop.xlane.xlu2 %4642 }
 0x637   : > { %v9229_v29 = vsub.f32 %v9111_v59, %v4513_v41  ;;  %5755 = vlog2.f32 %v4643_v62 }
 0x638   : > { %v4763_v18 = vsub.f32 %v9090_v42, %v4705_v33 }
 0x639   : > { %v5754_v22 = vpop.eup %5753  ;;  %v4608_v61 = vmul.f32 1.442695, %v9229_v29 }
 0x63a   : > { %4796 = vst.msk [vmem:[%s9166_s26 + $0x28] sm:$0xff] %vm4790_vm3, %v4763_v18  ;;  %4670 = vadd.xlane.f32.xlu1 %v5754_v22 }
 0x63b   : > { %5757 = vpow2.f32 %v4608_v61 }
 0x63d   : > { %v5756_v10 = vpop.eup %5755 }
 0x63e   : > { %v4707_v0 = vmul.f32 0.6931472, %v5756_v10  ;;  %v4515_v28 = vpop.xlane.xlu1 %4514  ;;  %v4645_v37 = vpop.xlane.xlu0 %4644 }
 0x63f   : > { %v9236_v8 = vsub.f32 %v9119_v31, %v4515_v28  ;;  %5759 = vlog2.f32 %v4645_v37 }
 0x640   : > { %v4764_v59 = vsub.f32 %v9098_v63, %v4707_v0 }
 0x641   : > { %v5758_v15 = vpop.eup %5757  ;;  %v4610_v42 = vmul.f32 1.442695, %v9236_v8 }
 0x642   : > { %4797 = vst.msk [vmem:[%s9166_s26 + $0x30] sm:$0xff] %vm4790_vm3, %v4764_v59  ;;  %4672 = vadd.xlane.f32.xlu2 %v5758_v15 }
 0x643   : > { %5761 = vpow2.f32 %v4610_v42 }
 0x645   : > { %v5760_v52 = vpop.eup %5759 }
 0x646   : > { %v4709_v49 = vmul.f32 0.6931472, %v5760_v52  ;;  %v4517_v13 = vpop.xlane.xlu2 %4516  ;;  %v4647_v24 = vpop.xlane.xlu1 %4646 }
 0x647   : > { %v9243_v54 = vsub.f32 %v9127_v55, %v4517_v13  ;;  %5763 = vlog2.f32 %v4647_v24 }
 0x648   : > { %v4765_v31 = vsub.f32 %v9106_v26, %v4709_v49 }
 0x649   : > { %v5762_v11 = vpop.eup %5761  ;;  %v4612_v63 = vmul.f32 1.442695, %v9243_v54 }
 0x64a   : > { %4798 = vst.msk [vmem:[%s9166_s26 + $0x38] sm:$0xff] %vm4790_vm3, %v4765_v31  ;;  %4674 = vadd.xlane.f32.xlu0 %v5762_v11 }
 0x64b   : > { %5765 = vpow2.f32 %v4612_v63 }
 0x64d   : > { %v5764_v60 = vpop.eup %5763 }
 0x64e   : > { %v4711_v53 = vmul.f32 0.6931472, %v5764_v60  ;;  %v4519_v3 = vpop.xlane.xlu0 %4518  ;;  %v4649_v19 = vpop.xlane.xlu2 %4648 }
 0x64f   : > { %v9250_v27 = vsub.f32 %v9135_v47, %v4519_v3  ;;  %5767 = vlog2.f32 %v4649_v19 }
 0x650   : > { %v4766_v55 = vsub.f32 %v9114_v34, %v4711_v53 }
 0x651   : > { %v5766_v6 = vpop.eup %5765  ;;  %v4614_v26 = vmul.f32 1.442695, %v9250_v27 }
 0x652   : > { %4799 = vst.msk [vmem:[%s9166_s26 + $0x40] sm:$0xff] %vm4790_vm3, %v4766_v55  ;;  %4676 = vadd.xlane.f32.xlu1 %v5766_v6 }
 0x653   : > { %5769 = vpow2.f32 %v4614_v26 }
 0x655   : > { %v5768_v43 = vpop.eup %5767 }
 0x656   : > { %v4713_v23 = vmul.f32 0.6931472, %v5768_v43  ;;  %v4521_v7 = vpop.xlane.xlu1 %4520  ;;  %v4651_v38 = vpop.xlane.xlu0 %4650 }
 0x657   : > { %v9257_v25 = vsub.f32 %v9139_v4, %v4521_v7  ;;  %5771 = vlog2.f32 %v4651_v38 }
 0x658   : > { %v4767_v47 = vsub.f32 %v9122_v57, %v4713_v23 }
 0x659   : > { %v5770_v56 = vpop.eup %5769  ;;  %v4616_v34 = vmul.f32 1.442695, %v9257_v25 }
 0x65a   : > { %4800 = vst.msk [vmem:[%s9166_s26 + $0x48] sm:$0xff] %vm4790_vm3, %v4767_v47  ;;  %4678 = vadd.xlane.f32.xlu2 %v5770_v56 }
 0x65b   : > { %5773 = vpow2.f32 %v4616_v34 }
 0x65d   : > { %v5772_v14 = vpop.eup %5771 }
 0x65e   : > { %v4715_v46 = vmul.f32 0.6931472, %v5772_v14  ;;  %v4523_v32 = vpop.xlane.xlu2 %4522 }
 0x65f   : > { %v9264_v5 = vsub.f32 %v9143_v12, %v4523_v32 }
 0x660   : > { %v4768_v17 = vsub.f32 %v9130_v39, %v4715_v46 }
 0x661   : > { %v5774_v4 = vpop.eup %5773  ;;  %v4618_v35 = vmul.f32 1.442695, %v9264_v5 }
 0x662   : > { %4801 = vst.msk [vmem:[%s9166_s26 + $0x50] sm:$0xff] %vm4790_vm3, %v4768_v17  ;;  %4680 = vadd.xlane.f32.xlu0 %v5774_v4 }
 0x663   : > { %5775 = vpow2.f32 %v4618_v35 }
 0x666   : > { %v4525_v57 = vpop.xlane.xlu0 %4524 }
 0x667   : > { %v9271_v33 = vsub.f32 %v9147_v44, %v4525_v57 }
 0x669   : > { %v5776_v41 = vpop.eup %5775  ;;  %v4620_v62 = vmul.f32 1.442695, %v9271_v33 }
 0x66a   : > { %4682 = vadd.xlane.f32.xlu1 %v5776_v41 }
 0x66b   : > { %5777 = vpow2.f32 %v4620_v62 }
 0x66e   : > { %v4527_v12 = vpop.xlane.xlu1 %4526 }
 0x66f   : > { %v9275_v18 = vsub.f32 %v9153_v30, %v4527_v12 }
 0x671   : > { %v5778_v39 = vpop.eup %5777  ;;  %v4622_v22 = vmul.f32 1.442695, %v9275_v18 }
 0x672   : > { %4684 = vadd.xlane.f32.xlu2 %v5778_v39 }
 0x673   : > { %5779 = vpow2.f32 %v4622_v22 }
 0x676   : > { %v4529_v61 = vpop.xlane.xlu2 %4528 }
 0x677   : > { %v9279_v10 = vsub.f32 %v9161_v2, %v4529_v61 }
 0x679   : > { %v5780_v44 = vpop.eup %5779  ;;  %v4624_v0 = vmul.f32 1.442695, %v9279_v10 }
 0x67a   : > { %4686 = vadd.xlane.f32.xlu0 %v5780_v44 }
 0x67b   : > { %5781 = vpow2.f32 %v4624_v0 }
 0x67e   : > { %v4655_v28 = vpop.xlane.xlu2 %4654  ;;  %v4531_v37 = vpop.xlane.xlu0 %4530 }
 0x67f   : > { %5783 = vlog2.f32 %v4655_v28  ;;  %v9283_v30 = vsub.f32 %v9181_v9, %v4531_v37 }
 0x681   : > { %v5782_v59 = vpop.eup %5781  ;;  %v4626_v15 = vmul.f32 1.442695, %v9283_v30 }
 0x682   : > { %4688 = vadd.xlane.f32.xlu1 %v5782_v59 }
 0x683   : > { %5785 = vpow2.f32 %v4626_v15 }
 0x685   : > { %v5784_v42 = vpop.eup %5783 }
 0x686   : > { %v4719_v2 = vmul.f32 0.6931472, %v5784_v42  ;;  %v4661_v52 = vpop.xlane.xlu2 %4660  ;;  %v4657_v49 = vpop.xlane.xlu0 %4656 }
 0x687   : > { %5787 = vlog2.f32 %v4661_v52  ;;  %v4533_v13 = vpop.xlane.xlu1 %4532 }
 0x688   : > { %v4770_v24 = vsub.f32 %v9157_v45, %v4719_v2  ;;  %5789 = vlog2.f32 %v4657_v49  ;;  %v9288_v31 = vsub.f32 %v9196_v58, %v4533_v13 }
 0x689   : > { %v5786_v11 = vpop.eup %5785 }
 0x68a   : > { %4803 = vst.msk [vmem:[%s9166_s26 + $0x60] sm:$0xff] %vm4790_vm3, %v4770_v24  ;;  %v4628_v9 = vmul.f32 1.442695, %v9288_v31  ;;  %4690 = vadd.xlane.f32.xlu2 %v5786_v11 }
 0x68c   : > { %5791 = vpow2.f32 %v4628_v9 }
 0x68d   : > { %v5788_v63 = vpop.eup %5787 }
 0x68e   : > { %v5790_v60 = vpop.eup %5789  ;;  %v4725_v53 = vmul.f32 0.6931472, %v5788_v63  ;;  %v4663_v3 = vpop.xlane.xlu0 %4662 }
 0x68f   : > { %v4721_v19 = vmul.f32 0.6931472, %v5790_v60  ;;  %5793 = vlog2.f32 %v4663_v3  ;;  %v4653_v45 = vpop.xlane.xlu1 %4652 }
 0x690   : > { %v4773_v58 = vsub.f32 %v9169_v48, %v4725_v53  ;;  %5795 = vlog2.f32 %v4653_v45 }
 0x691   : > { %v4771_v55 = vsub.f32 %v9174_v36, %v4721_v19 }
 0x692   : > { %v5792_v6 = vpop.eup %5791  ;;  %4806 = vst.msk [vmem:[%s9166_s26 + $0x78] sm:$0xff] %vm4790_vm3, %v4773_v58 }
 0x693   : > { %4804 = vst.msk [vmem:[%s9166_s26 + $0x68] sm:$0xff] %vm4790_vm3, %v4771_v55  ;;  %4692 = vadd.xlane.f32.xlu0 %v5792_v6 }
 0x695   : > { %v5794_v26 = vpop.eup %5793 }
 0x696   : > { %v5796_v43 = vpop.eup %5795  ;;  %v4727_v23 = vmul.f32 0.6931472, %v5794_v26 }
 0x697   : > { %v4717_v7 = vmul.f32 0.6931472, %v5796_v43  ;;  %v4659_v38 = vpop.xlane.xlu1 %4658 }
 0x698   : > { %v4774_v47 = vsub.f32 %v9191_v20, %v4727_v23  ;;  %5797 = vlog2.f32 %v4659_v38 }
 0x699   : > { %v4769_v48 = vsub.f32 %v9188_v50, %v4717_v7 }
 0x69a   : > { %4807 = vst.msk [vmem:[%s9166_s26 + $0x80] sm:$0xff] %vm4790_vm3, %v4774_v47 }
 0x69b   : > { %4802 = vst.msk [vmem:[%s9166_s26 + $0x58] sm:$0xff] %vm4790_vm3, %v4769_v48 }
 0x69d   : > { %v4667_v36 = vpop.xlane.xlu2 %4666 }
 0x69e   : > { %v5798_v56 = vpop.eup %5797  ;;  %5799 = vlog2.f32 %v4667_v36 }
 0x69f   : > { %v4723_v34 = vmul.f32 0.6931472, %v5798_v56  ;;  %v4665_v14 = vpop.xlane.xlu1 %4664 }
 0x6a0   : > { %5801 = vlog2.f32 %v4665_v14 }
 0x6a1   : > { %v4772_v46 = vsub.f32 %v9200_v21, %v4723_v34 }
 0x6a3   : > { %4805 = vst.msk [vmem:[%s9166_s26 + $0x70] sm:$0xff] %vm4790_vm3, %v4772_v46 }
 0x6a4   : > { %v5800_v20 = vpop.eup %5799 }
 0x6a5   : > { %v4731_v32 = vmul.f32 0.6931472, %v5800_v20  ;;  %v4669_v50 = vpop.xlane.xlu0 %4668 }
 0x6a6   : > { %v5802_v17 = vpop.eup %5801  ;;  %5803 = vlog2.f32 %v4669_v50 }
 0x6a7   : > { %v4776_v4 = vsub.f32 %v9207_v51, %v4731_v32  ;;  %v4729_v35 = vmul.f32 0.6931472, %v5802_v17 }
 0x6a9   : > { %4809 = vst.msk [vmem:[%s9166_s26 + $0x90] sm:$0xff] %vm4790_vm3, %v4776_v4  ;;  %v4775_v57 = vsub.f32 %v9204_v16, %v4729_v35 }
 0x6ab   : > { %4808 = vst.msk [vmem:[%s9166_s26 + $0x88] sm:$0xff] %vm4790_vm3, %v4775_v57 }
 0x6ac   : > { %v5804_v41 = vpop.eup %5803 }
 0x6ad   : > { %v4733_v21 = vmul.f32 0.6931472, %v5804_v41  ;;  %v4671_v62 = vpop.xlane.xlu1 %4670 }
 0x6ae   : > { %5805 = vlog2.f32 %v4671_v62 }
 0x6af   : > { %v4777_v12 = vsub.f32 %v9215_v1, %v4733_v21 }
 0x6b1   : > { %4810 = vst.msk [vmem:[%s9166_s26 + $0x98] sm:$0xff] %vm4790_vm3, %v4777_v12 }
 0x6b4   : > { %v5806_v39 = vpop.eup %5805 }
 0x6b5   : > { %v4735_v22 = vmul.f32 0.6931472, %v5806_v39  ;;  %v4673_v51 = vpop.xlane.xlu2 %4672 }
 0x6b6   : > { %5807 = vlog2.f32 %v4673_v51 }
 0x6b7   : > { %v4778_v61 = vsub.f32 %v9222_v40, %v4735_v22 }
 0x6b9   : > { %4811 = vst.msk [vmem:[%s9166_s26 + $0xa0] sm:$0xff] %vm4790_vm3, %v4778_v61 }
 0x6bc   : > { %v5808_v16 = vpop.eup %5807 }
 0x6bd   : > { %v4737_v44 = vmul.f32 0.6931472, %v5808_v16  ;;  %v4675_v0 = vpop.xlane.xlu0 %4674 }
 0x6be   : > { %5809 = vlog2.f32 %v4675_v0 }
 0x6bf   : > { %v4779_v28 = vsub.f32 %v9229_v29, %v4737_v44 }
 0x6c1   : > { %4812 = vst.msk [vmem:[%s9166_s26 + $0xa8] sm:$0xff] %vm4790_vm3, %v4779_v28 }
 0x6c4   : > { %v5810_v1 = vpop.eup %5809 }
 0x6c5   : > { %v4739_v37 = vmul.f32 0.6931472, %v5810_v1  ;;  %v4677_v59 = vpop.xlane.xlu1 %4676 }
 0x6c6   : > { %5811 = vlog2.f32 %v4677_v59 }
 0x6c7   : > { %v4780_v15 = vsub.f32 %v9236_v8, %v4739_v37 }
 0x6c9   : > { %4813 = vst.msk [vmem:[%s9166_s26 + $0xb0] sm:$0xff] %vm4790_vm3, %v4780_v15 }
 0x6cc   : > { %v5812_v40 = vpop.eup %5811 }
 0x6cd   : > { %v4741_v42 = vmul.f32 0.6931472, %v5812_v40  ;;  %v4679_v2 = vpop.xlane.xlu2 %4678 }
 0x6ce   : > { %5813 = vlog2.f32 %v4679_v2 }
 0x6cf   : > { %v4781_v52 = vsub.f32 %v9243_v54, %v4741_v42 }
 0x6d1   : > { %4814 = vst.msk [vmem:[%s9166_s26 + $0xb8] sm:$0xff] %vm4790_vm3, %v4781_v52 }
 0x6d4   : > { %v5814_v29 = vpop.eup %5813 }
 0x6d5   : > { %v4743_v49 = vmul.f32 0.6931472, %v5814_v29  ;;  %v4681_v13 = vpop.xlane.xlu0 %4680 }
 0x6d6   : > { %5815 = vlog2.f32 %v4681_v13 }
 0x6d7   : > { %v4782_v24 = vsub.f32 %v9250_v27, %v4743_v49 }
 0x6d9   : > { %4815 = vst.msk [vmem:[%s9166_s26 + $0xc0] sm:$0xff] %vm4790_vm3, %v4782_v24 }
 0x6dc   : > { %v5816_v8 = vpop.eup %5815 }
 0x6dd   : > { %v4745_v11 = vmul.f32 0.6931472, %v5816_v8  ;;  %v4683_v9 = vpop.xlane.xlu1 %4682 }
 0x6de   : > { %5817 = vlog2.f32 %v4683_v9 }
 0x6df   : > { %v4783_v63 = vsub.f32 %v9257_v25, %v4745_v11 }
 0x6e1   : > { %4816 = vst.msk [vmem:[%s9166_s26 + $0xc8] sm:$0xff] %vm4790_vm3, %v4783_v63 }
 0x6e4   : > { %v5818_v54 = vpop.eup %5817 }
 0x6e5   : > { %v4747_v60 = vmul.f32 0.6931472, %v5818_v54  ;;  %v4685_v53 = vpop.xlane.xlu2 %4684 }
 0x6e6   : > { %5819 = vlog2.f32 %v4685_v53 }
 0x6e7   : > { %v4784_v3 = vsub.f32 %v9264_v5, %v4747_v60 }
 0x6e9   : > { %4817 = vst.msk [vmem:[%s9166_s26 + $0xd0] sm:$0xff] %vm4790_vm3, %v4784_v3 }
 0x6ec   : > { %v5820_v27 = vpop.eup %5819 }
 0x6ed   : > { %v4749_v19 = vmul.f32 0.6931472, %v5820_v27  ;;  %v4687_v45 = vpop.xlane.xlu0 %4686 }
 0x6ee   : > { %5821 = vlog2.f32 %v4687_v45 }
 0x6ef   : > { %v4785_v58 = vsub.f32 %v9271_v33, %v4749_v19 }
 0x6f1   : > { %4818 = vst.msk [vmem:[%s9166_s26 + $0xd8] sm:$0xff] %vm4790_vm3, %v4785_v58 }
 0x6f4   : > { %v5822_v25 = vpop.eup %5821 }
 0x6f5   : > { %v4751_v55 = vmul.f32 0.6931472, %v5822_v25  ;;  %v4689_v6 = vpop.xlane.xlu1 %4688 }
 0x6f6   : > { %5823 = vlog2.f32 %v4689_v6 }
 0x6f7   : > { %v4786_v26 = vsub.f32 %v9275_v18, %v4751_v55 }
 0x6f9   : > { %4819 = vst.msk [vmem:[%s9166_s26 + $0xe0] sm:$0xff] %vm4790_vm3, %v4786_v26 }
 0x6fc   : > { %v5824_v5 = vpop.eup %5823 }
 0x6fd   : > { %v4753_v43 = vmul.f32 0.6931472, %v5824_v5  ;;  %v4691_v23 = vpop.xlane.xlu2 %4690 }
 0x6fe   : > { %5825 = vlog2.f32 %v4691_v23 }
 0x6ff   : > { %v4787_v7 = vsub.f32 %v9279_v10, %v4753_v43 }
 0x701   : > { %4820 = vst.msk [vmem:[%s9166_s26 + $0xe8] sm:$0xff] %vm4790_vm3, %v4787_v7 }
 0x704   : > { %v5826_v33 = vpop.eup %5825 }
 0x705   : > { %v4755_v38 = vmul.f32 0.6931472, %v5826_v33 }
 0x706   : > { %v4693_v47 = vpop.xlane.xlu0 %4692 }
 0x707   : > { %v4788_v48 = vsub.f32 %v9283_v30, %v4755_v38  ;;  %5827 = vlog2.f32 %v4693_v47 }
 0x709   : > { %4821 = vst.msk [vmem:[%s9166_s26 + $0xf0] sm:$0xff] %vm4790_vm3, %v4788_v48 }
 0x70d   : > { %v5828_v18 = vpop.eup %5827 }
 0x70e   : > { %v4757_v36 = vmul.f32 0.6931472, %v5828_v18 }
 0x710   : > { %v4789_v56 = vsub.f32 %v9288_v31, %v4757_v36 }
 0x712   : > { %4822 = vst.msk [vmem:[%s9166_s26 + $0xf8] sm:$0xff] %vm4790_vm3, %v4789_v56 }
 0x713 PF: > { %p20_p4 = scmp.ge.s32.totalorder %s6032_s22, 10   ;;  %s9953_s30 = smov %s5920_s10 }
 0x714   : > { %s9954_s10 = smov %s5924_s11  ;;  %s9955_s11 = smov %s6042_s27 }
 0x715   : > { %s9956_s12 = smov %s6032_s22  ;;  %22 = sbr.rel (!%p20_p4) target bundleno = 7 (0x7), region = 100 }
 0x71a   :  { %4847 = vsyncpa [#allocation3], 1 }
 0x71b   :  { %4849 = vsyncpa [#allocation3 + $0x1], 1 }
 0x71c   :  { %4850 = vsyncpa [#allocation5], 1 }

</bundles_post_ra>
